<compile_context>
chip_gen: v5e
topology: v5e:2x2
jax: 0.10.0
libtpu: 0.0.40
codegen_flags: <defaults>
</compile_context>

<pallas_src>
import jax
import jax.numpy as jnp
from jax.experimental import pallas as pl
from jax.experimental.pallas import tpu as pltpu


# ----------------------------- in-kernel math helpers ------------------------

_SQRT_HALF = 0.7071067811865476


def _erf(x):
    # Abramowitz & Stegun 7.1.26 (max abs err ~1.5e-7). The divide is routed to the EUP
    # via an approximate reciprocal (perf review item): adds ~1e-4 rel error, well below
    # the bf16 noise already present in the activations.
    a1, a2, a3, a4, a5 = 0.254829592, -0.284496736, 1.421413741, -1.453152027, 1.061405429
    p = 0.3275911
    ax = jnp.abs(x)
    t = pl.reciprocal(1.0 + p * ax, approx=True)
    poly = ((((a5 * t + a4) * t + a3) * t + a2) * t + a1) * t
    y = 1.0 - poly * jnp.exp(-ax * ax)
    return jnp.where(x >= 0, y, -y)


def _gelu_exact(x):
    # matches torch.nn.GELU() (erf formulation)
    return 0.5 * x * (1.0 + _erf(x * _SQRT_HALF))


def _layernorm_cf(x, g, b, eps=1e-5):
    # Channels-first LayerNorm: x (d, TP); g, b (d, 1). Normalizes over channels.
    mu = jnp.mean(x, axis=0, keepdims=True)
    xc = x - mu
    var = jnp.mean(xc * xc, axis=0, keepdims=True)
    return xc * jax.lax.rsqrt(var + eps) * g + b


# ----------------------------- fused Pallas kernel ----------------------------

def _make_fused_kernel(n_views, has_skip):
    def kernel(*refs):
        if has_skip:
            (q_ref, val_ref, mask_ref, skip_ref,
             g1_ref, bg1_ref, w1_ref, c1_ref, w2_ref, c2_ref,
             g2_ref, bg2_ref, o_ref) = refs
        else:
            (q_ref, val_ref, mask_ref,
             g1_ref, bg1_ref, w1_ref, c1_ref, w2_ref, c2_ref,
             g2_ref, bg2_ref, o_ref) = refs
            skip_ref = None

        q = q_ref[0]                                      # (d, TP) f32, raw query tokens
        m = mask_ref[0].astype(jnp.float32)               # (n, TP)

        # ---- guided attention over the n reference views -------------------
        # F.normalize(..., eps=1e-12) folded into the dot:
        #   dot = <q, val> / (max(|q|,eps) * max(|val|,eps))
        # Static per-view unroll: only (d, TP) f32 temporaries, never (n, d, TP).
        inv_q = jax.lax.rsqrt(jnp.maximum(jnp.sum(q * q, axis=0, keepdims=True), 1e-24))

        dots = []
        sqs = []
        for k in range(n_views):
            vk = val_ref[0, k].astype(jnp.float32)         # (d, TP)
            dots.append(jnp.sum(q * vk, axis=0, keepdims=True))   # (1, TP)
            sqs.append(jnp.sum(vk * vk, axis=0, keepdims=True))   # (1, TP)
        dot = jnp.concatenate(dots, axis=0)                # (n, TP)
        sq = jnp.concatenate(sqs, axis=0)                  # (n, TP)
        inv_v = jax.lax.rsqrt(jnp.maximum(sq, 1e-24))
        dot = dot * inv_q * inv_v * m                      # mask multiplies logits (torch ref)

        # softmax over views (axis 0)
        dmax = jnp.max(dot, axis=0, keepdims=True)
        e = jnp.exp(dot - dmax)
        att = e * pl.reciprocal(jnp.sum(e, axis=0, keepdims=True), approx=True)  # (n, TP)

        # weighted sum of the *raw* val, + query (+ skip)
        z = q
        for k in range(n_views):
            vk = val_ref[0, k].astype(jnp.float32)         # (d, TP)
            z = z + att[k:k + 1, :] * vk
        if has_skip:
            z = z + skip_ref[0]

        # ---- FFN: prenorm -> Linear(d,2d) -> GELU -> Linear(2d,d) -> +h -> postnorm
        # (residual adds the post-prenorm activation h, exactly like the reference)
        h = _layernorm_cf(z, g1_ref[...], bg1_ref[...])                       # (d, TP)
        h1 = jnp.dot(w1_ref[...], h.astype(jnp.bfloat16),
                     preferred_element_type=jnp.float32) + c1_ref[...]        # (2d, TP)
        h1 = _gelu_exact(h1)
        h2 = jnp.dot(w2_ref[...], h1.astype(jnp.bfloat16),
                     preferred_element_type=jnp.float32) + c2_ref[...]        # (d, TP)
        y = h + h2
        o_ref[0] = _layernorm_cf(y, g2_ref[...], bg2_ref[...])

    return kernel


# ----------------------------- plain-JAX glue ---------------------------------

def _bilinear_interpolate_cf(feat, x, y):
    """Interpolator (channels-first): feat (B, C, H, W); x, y (B, P) pixel coords.
    Returns val (B, C, P) f32 and mask (B, P) [1.0 inside [0,W-1]x[0,H-1]]."""
    B, C, H, W = feat.shape
    featf = feat.reshape(B, C, H * W)                   # (B, C, HW)
    x0 = jnp.floor(x)
    y0 = jnp.floor(y)
    wx1 = x - x0
    wx0 = 1.0 - wx1
    wy1 = y - y0
    wy0 = 1.0 - wy1
    mask = ((x >= 0) & (x <= W - 1) & (y >= 0) & (y <= H - 1)).astype(feat.dtype)
    x0c = jnp.clip(x0, 0, W - 1).astype(jnp.int32)
    x1c = jnp.clip(x0 + 1.0, 0, W - 1).astype(jnp.int32)
    y0c = jnp.clip(y0, 0, H - 1).astype(jnp.int32)
    y1c = jnp.clip(y0 + 1.0, 0, H - 1).astype(jnp.int32)

    def g(iy, ix):
        idx = iy * W + ix                                           # (B, P)
        return jnp.take_along_axis(featf, idx[:, None, :], axis=2)  # (B, C, P)

    val = ((wy0 * wx0)[:, None, :] * g(y0c, x0c)
           + (wy0 * wx1)[:, None, :] * g(y0c, x1c)
           + (wy1 * wx0)[:, None, :] * g(y1c, x0c)
           + (wy1 * wx1)[:, None, :] * g(y1c, x1c))
    return val, mask


def _vmem_capacity_bytes():
    try:
        return int(pltpu.get_tpu_info().vmem_capacity_bytes)
    except Exception:
        return 64 * 1024 * 1024   # conservative default = v7x per-TC VMEM


def _tile_footprint_bytes(tp, n, d, has_skip):
    f32, bf16 = 4, 2
    per_step = d * tp * f32                 # query tile
    per_step += n * d * tp * bf16           # val tile (dominant stream)
    per_step += n * tp * bf16               # mask tile
    per_step += d * tp * f32                # output tile
    if has_skip:
        per_step += d * tp * f32            # skip tile
    pipelined = 2 * per_step                # double buffering of pipelined operands
    temps = 12 * d * tp * f32               # h/h1/h2/y + per-view f32 temporaries (slack)
    return pipelined + temps + (1 << 20)    # + ~1 MiB for resident params / misc


def _pick_tp(P, b, n, d, has_skip):
    """Largest token tile (multiple of 128, dividing P) whose double-buffered footprint
    fits in ~half the chip's VMEM, preferring tiles that still leave >= 4 grid steps so
    megacore (v7x: 2 TCs) keeps pipelined work on both cores."""
    cap = _vmem_capacity_bytes()
    budget = cap // 2
    fitting = [tp for tp in (4096, 2048, 1024, 512, 256, 128)
               if P % tp == 0 and _tile_footprint_bytes(tp, n, d, has_skip) <= budget]
    if not fitting:
        return P, cap   # whole-P block (last dim == full array dim is always legal)
    for tp in fitting:                      # descending: largest tile with >= 4 steps
        if b * (P // tp) >= 4:
            return tp, cap
    return fitting[0], cap


def init_params(key, d):
    # Weight layout matches PyTorch nn.Linear.weight: (out_features, in_features),
    # so the channels-first matmul is simply y = W @ x.
    k1, k2 = jax.random.split(key)
    return dict(
        ln1_g=jnp.ones((d, 1), jnp.float32),
        ln1_b=jnp.zeros((d, 1), jnp.float32),
        w1=jax.random.normal(k1, (2 * d, d), jnp.float32) * 0.02,
        b1=jnp.zeros((2 * d, 1), jnp.float32),
        w2=jax.random.normal(k2, (d, 2 * d), jnp.float32) * 0.02,
        b2=jnp.zeros((d, 1), jnp.float32),
        ln2_g=jnp.ones((d, 1), jnp.float32),
        ln2_b=jnp.zeros((d, 1), jnp.float32),
    )


def homo_guide_attention(query, ref, homo_uv, params, skip=None):
    """query (b,d,H,W); ref (b,n,d,H,W); homo_uv (b,n,2,H,W) in [0,1]. Returns (b,d,H,W)."""
    b, n, d, H, W = ref.shape
    P = H * W

    # uv in pixel coords; channels-first throughout (no transposes needed).
    uv = homo_uv.reshape(b * n, 2, P)
    px = uv[:, 0, :] * W
    py = uv[:, 1, :] * H

    val, mask = _bilinear_interpolate_cf(ref.reshape(b * n, d, H, W), px, py)
    val = val.astype(jnp.bfloat16).reshape(b, n, d, P)       # dominant DMA stream -> bf16
    mask = mask.astype(jnp.bfloat16).reshape(b, n, P)        # 0/1 values: bf16 is lossless
    q = query.reshape(b, d, P).astype(jnp.float32)

    has_skip = skip is not None
    TP, vmem_cap = _pick_tp(P, b, n, d, has_skip)
    grid = (b, P // TP)

    # FFN weights pre-cast to bf16 once here (resident via constant index_maps).
    w1 = params["w1"].astype(jnp.bfloat16)
    w2 = params["w2"].astype(jnp.bfloat16)

    in_specs = [
        pl.BlockSpec((1, d, TP), lambda i, j: (i, 0, j)),          # query tokens
        pl.BlockSpec((1, n, d, TP), lambda i, j: (i, 0, 0, j)),    # sampled ref features
        pl.BlockSpec((1, n, TP), lambda i, j: (i, 0, j)),          # in-bounds mask
    ]
    inputs = [q, val, mask]
    if has_skip:
        in_specs.append(pl.BlockSpec((1, d, TP), lambda i, j: (i, 0, j)))
        inputs.append(skip.reshape(b, d, P).astype(jnp.float32))

    # FFN params: constant index_map -> fetched once, stay resident across the grid.
    in_specs += [
        pl.BlockSpec((d, 1), lambda i, j: (0, 0)),        # ln1 gamma
        pl.BlockSpec((d, 1), lambda i, j: (0, 0)),        # ln1 beta
        pl.BlockSpec((2 * d, d), lambda i, j: (0, 0)),    # W1 (bf16)
        pl.BlockSpec((2 * d, 1), lambda i, j: (0, 0)),    # b1
        pl.BlockSpec((d, 2 * d), lambda i, j: (0, 0)),    # W2 (bf16)
        pl.BlockSpec((d, 1), lambda i, j: (0, 0)),        # b2
        pl.BlockSpec((d, 1), lambda i, j: (0, 0)),        # ln2 gamma
        pl.BlockSpec((d, 1), lambda i, j: (0, 0)),        # ln2 beta
    ]
    inputs += [params["ln1_g"], params["ln1_b"], w1, params["b1"],
               w2, params["b2"], params["ln2_g"], params["ln2_b"]]

    footprint = _tile_footprint_bytes(TP, n, d, has_skip)
    vmem_limit = min(int(0.6 * vmem_cap), max(32 * 1024 * 1024, 2 * footprint))

    out = pl.pallas_call(
        _make_fused_kernel(n, has_skip),
        grid=grid,
        in_specs=in_specs,
        out_specs=pl.BlockSpec((1, d, TP), lambda i, j: (i, 0, j)),
        out_shape=jax.ShapeDtypeStruct((b, d, P), jnp.float32),
        compiler_params=pltpu.CompilerParams(
            dimension_semantics=("parallel", "parallel"),
            vmem_limit_bytes=vmem_limit,
        ),
    )(*inputs)

    return out.reshape(b, d, H, W)


if __name__ == "__main__":
    key = jax.random.PRNGKey(0)
    kq, kr, ku, kp = jax.random.split(key, 4)

    b, n, d, H, W = 2, 3, 32, 32, 32          # P = 1024
    query = jax.random.normal(kq, (b, d, H, W), jnp.float32)
    ref = jax.random.normal(kr, (b, n, d, H, W), jnp.float32)
    homo_uv = jax.random.uniform(ku, (b, n, 2, H, W), jnp.float32)
    params = init_params(kp, d)

    # jit the whole wrapper so the bilinear gather + bf16 cast of `val` fuse and the
    # f32 val never round-trips through HBM before the kernel.
    run = jax.jit(lambda q_, r_, uv_, p_: homo_guide_attention(q_, r_, uv_, p_))
    out = run(query, ref, homo_uv, params)
    jax.block_until_ready(out)
    assert out.shape == (b, d, H, W) and out.dtype == jnp.float32
    assert bool(jnp.isfinite(out).all())
    print("KERNEL_OK")
</pallas_src>

<mosaic_0001>
module attributes {stable_mosaic.version = 11 : i64} {
  func.func @kernel(%arg0: i32, %arg1: i32, %arg2: memref<1x32x512xf32, #tpu.memory_space<vmem>>, %arg3: memref<1x3x32x512xbf16, #tpu.memory_space<vmem>>, %arg4: memref<1x3x512xbf16, #tpu.memory_space<vmem>>, %arg5: memref<32x1xf32, #tpu.memory_space<vmem>>, %arg6: memref<32x1xf32, #tpu.memory_space<vmem>>, %arg7: memref<64x32xbf16, #tpu.memory_space<vmem>>, %arg8: memref<64x1xf32, #tpu.memory_space<vmem>>, %arg9: memref<32x64xbf16, #tpu.memory_space<vmem>>, %arg10: memref<32x1xf32, #tpu.memory_space<vmem>>, %arg11: memref<32x1xf32, #tpu.memory_space<vmem>>, %arg12: memref<32x1xf32, #tpu.memory_space<vmem>>, %arg13: memref<1x32x512xf32, #tpu.memory_space<vmem>>) attributes {dimension_semantics = [#tpu.dimension_semantics<parallel>, #tpu.dimension_semantics<parallel>], iteration_bounds = array<i64: 2, 2>, scalar_prefetch = 0 : i64, scratch_operands = 0 : i64, tpu.core_type = #tpu.core_type<tc>, window_params = [{transform_indices = @transform_0, window_bounds = array<i64: 1, 32, 512>}, {transform_indices = @transform_1, window_bounds = array<i64: 1, 3, 32, 512>}, {transform_indices = @transform_2, window_bounds = array<i64: 1, 3, 512>}, {pipeline_mode = #tpu.pipeline_mode<synchronous>, transform_indices = @transform_3, window_bounds = array<i64: 32, 1>}, {pipeline_mode = #tpu.pipeline_mode<synchronous>, transform_indices = @transform_4, window_bounds = array<i64: 32, 1>}, {pipeline_mode = #tpu.pipeline_mode<synchronous>, transform_indices = @transform_5, window_bounds = array<i64: 64, 32>}, {pipeline_mode = #tpu.pipeline_mode<synchronous>, transform_indices = @transform_6, window_bounds = array<i64: 64, 1>}, {pipeline_mode = #tpu.pipeline_mode<synchronous>, transform_indices = @transform_7, window_bounds = array<i64: 32, 64>}, {pipeline_mode = #tpu.pipeline_mode<synchronous>, transform_indices = @transform_8, window_bounds = array<i64: 32, 1>}, {pipeline_mode = #tpu.pipeline_mode<synchronous>, transform_indices = @transform_9, window_bounds = array<i64: 32, 1>}, {pipeline_mode = #tpu.pipeline_mode<synchronous>, transform_indices = @transform_10, window_bounds = array<i64: 32, 1>}, {transform_indices = @transform_11, window_bounds = array<i64: 1, 32, 512>}]} {
    %c0 = arith.constant 0 : index
    %c0_0 = arith.constant 0 : index
    %c0_1 = arith.constant 0 : index
    %0 = vector.load %arg2[%c0, %c0_0, %c0_1] : memref<1x32x512xf32, #tpu.memory_space<vmem>>, vector<1x32x512xf32>
    %1 = vector.shape_cast %0 : vector<1x32x512xf32> to vector<32x512xf32>
    %c0_2 = arith.constant 0 : index
    %c0_3 = arith.constant 0 : index
    %c0_4 = arith.constant 0 : index
    %2 = vector.load %arg4[%c0_2, %c0_3, %c0_4] : memref<1x3x512xbf16, #tpu.memory_space<vmem>>, vector<1x3x512xbf16>
    %3 = vector.shape_cast %2 : vector<1x3x512xbf16> to vector<3x512xbf16>
    %4 = arith.extf %3 : vector<3x512xbf16> to vector<3x512xf32>
    %5 = arith.mulf %1, %1 : vector<32x512xf32>
    %cst = arith.constant dense<0.000000e+00> : vector<512xf32>
    %6 = vector.multi_reduction <add>, %5, %cst [0] : vector<32x512xf32> to vector<512xf32>
    %7 = vector.shape_cast %6 : vector<512xf32> to vector<1x512xf32>
    %cst_5 = arith.constant 1.000000e-24 : f32
    %8 = vector.broadcast %cst_5 : f32 to vector<1x512xf32>
    %9 = arith.maximumf %7, %8 : vector<1x512xf32>
    %10 = math.rsqrt %9 : vector<1x512xf32>
    %c0_6 = arith.constant 0 : index
    %c0_7 = arith.constant 0 : index
    %c0_8 = arith.constant 0 : index
    %c0_9 = arith.constant 0 : index
    %11 = vector.load %arg3[%c0_6, %c0_7, %c0_8, %c0_9] : memref<1x3x32x512xbf16, #tpu.memory_space<vmem>>, vector<1x1x32x512xbf16>
    %12 = vector.shape_cast %11 : vector<1x1x32x512xbf16> to vector<32x512xbf16>
    %13 = arith.extf %12 : vector<32x512xbf16> to vector<32x512xf32>
    %14 = arith.mulf %1, %13 : vector<32x512xf32>
    %cst_10 = arith.constant dense<0.000000e+00> : vector<512xf32>
    %15 = vector.multi_reduction <add>, %14, %cst_10 [0] : vector<32x512xf32> to vector<512xf32>
    %16 = vector.shape_cast %15 : vector<512xf32> to vector<1x512xf32>
    %17 = arith.mulf %13, %13 : vector<32x512xf32>
    %cst_11 = arith.constant dense<0.000000e+00> : vector<512xf32>
    %18 = vector.multi_reduction <add>, %17, %cst_11 [0] : vector<32x512xf32> to vector<512xf32>
    %19 = vector.shape_cast %18 : vector<512xf32> to vector<1x512xf32>
    %c0_12 = arith.constant 0 : index
    %c1 = arith.constant 1 : index
    %c0_13 = arith.constant 0 : index
    %c0_14 = arith.constant 0 : index
    %20 = vector.load %arg3[%c0_12, %c1, %c0_13, %c0_14] : memref<1x3x32x512xbf16, #tpu.memory_space<vmem>>, vector<1x1x32x512xbf16>
    %21 = vector.shape_cast %20 : vector<1x1x32x512xbf16> to vector<32x512xbf16>
    %22 = arith.extf %21 : vector<32x512xbf16> to vector<32x512xf32>
    %23 = arith.mulf %1, %22 : vector<32x512xf32>
    %cst_15 = arith.constant dense<0.000000e+00> : vector<512xf32>
    %24 = vector.multi_reduction <add>, %23, %cst_15 [0] : vector<32x512xf32> to vector<512xf32>
    %25 = vector.shape_cast %24 : vector<512xf32> to vector<1x512xf32>
    %26 = arith.mulf %22, %22 : vector<32x512xf32>
    %cst_16 = arith.constant dense<0.000000e+00> : vector<512xf32>
    %27 = vector.multi_reduction <add>, %26, %cst_16 [0] : vector<32x512xf32> to vector<512xf32>
    %28 = vector.shape_cast %27 : vector<512xf32> to vector<1x512xf32>
    %c0_17 = arith.constant 0 : index
    %c2 = arith.constant 2 : index
    %c0_18 = arith.constant 0 : index
    %c0_19 = arith.constant 0 : index
    %29 = vector.load %arg3[%c0_17, %c2, %c0_18, %c0_19] : memref<1x3x32x512xbf16, #tpu.memory_space<vmem>>, vector<1x1x32x512xbf16>
    %30 = vector.shape_cast %29 : vector<1x1x32x512xbf16> to vector<32x512xbf16>
    %31 = arith.extf %30 : vector<32x512xbf16> to vector<32x512xf32>
    %32 = arith.mulf %1, %31 : vector<32x512xf32>
    %cst_20 = arith.constant dense<0.000000e+00> : vector<512xf32>
    %33 = vector.multi_reduction <add>, %32, %cst_20 [0] : vector<32x512xf32> to vector<512xf32>
    %34 = vector.shape_cast %33 : vector<512xf32> to vector<1x512xf32>
    %35 = arith.mulf %31, %31 : vector<32x512xf32>
    %cst_21 = arith.constant dense<0.000000e+00> : vector<512xf32>
    %36 = vector.multi_reduction <add>, %35, %cst_21 [0] : vector<32x512xf32> to vector<512xf32>
    %37 = vector.shape_cast %36 : vector<512xf32> to vector<1x512xf32>
    %38 = tpu.concatenate %16, %25, %34 in 0 : vector<1x512xf32>, vector<1x512xf32>, vector<1x512xf32> -> vector<3x512xf32>
    %39 = tpu.concatenate %19, %28, %37 in 0 : vector<1x512xf32>, vector<1x512xf32>, vector<1x512xf32> -> vector<3x512xf32>
    %cst_22 = arith.constant 1.000000e-24 : f32
    %40 = vector.broadcast %cst_22 : f32 to vector<3x512xf32>
    %41 = arith.maximumf %39, %40 : vector<3x512xf32>
    %42 = math.rsqrt %41 : vector<3x512xf32>
    %43 = vector.broadcast %10 : vector<1x512xf32> to vector<3x512xf32>
    %44 = arith.mulf %38, %43 : vector<3x512xf32>
    %45 = arith.mulf %44, %42 : vector<3x512xf32>
    %46 = arith.mulf %45, %4 : vector<3x512xf32>
    %cst_23 = arith.constant dense<0xFF800000> : vector<512xf32>
    %47 = vector.multi_reduction <maximumf>, %46, %cst_23 [0] : vector<3x512xf32> to vector<512xf32>
    %48 = vector.shape_cast %47 : vector<512xf32> to vector<1x512xf32>
    %49 = vector.broadcast %48 : vector<1x512xf32> to vector<3x512xf32>
    %50 = arith.subf %46, %49 : vector<3x512xf32>
    %51 = math.exp %50 : vector<3x512xf32>
    %cst_24 = arith.constant dense<0.000000e+00> : vector<512xf32>
    %52 = vector.multi_reduction <add>, %51, %cst_24 [0] : vector<3x512xf32> to vector<512xf32>
    %53 = vector.shape_cast %52 : vector<512xf32> to vector<1x512xf32>
    %54 = tpu.reciprocal %53 {approx = true} : vector<1x512xf32> -> vector<1x512xf32>
    %55 = vector.broadcast %54 : vector<1x512xf32> to vector<3x512xf32>
    %56 = arith.mulf %51, %55 : vector<3x512xf32>
    %c0_25 = arith.constant 0 : index
    %c0_26 = arith.constant 0 : index
    %c0_27 = arith.constant 0 : index
    %c0_28 = arith.constant 0 : index
    %57 = vector.load %arg3[%c0_25, %c0_26, %c0_27, %c0_28] : memref<1x3x32x512xbf16, #tpu.memory_space<vmem>>, vector<1x1x32x512xbf16>
    %58 = vector.shape_cast %57 : vector<1x1x32x512xbf16> to vector<32x512xbf16>
    %59 = arith.extf %58 : vector<32x512xbf16> to vector<32x512xf32>
    %60 = vector.extract_strided_slice %56 {offsets = [0, 0], sizes = [1, 512], strides = [1, 1]} : vector<3x512xf32> to vector<1x512xf32>
    %61 = vector.broadcast %60 : vector<1x512xf32> to vector<32x512xf32>
    %62 = arith.mulf %61, %59 : vector<32x512xf32>
    %63 = arith.addf %1, %62 : vector<32x512xf32>
    %c0_29 = arith.constant 0 : index
    %c1_30 = arith.constant 1 : index
    %c0_31 = arith.constant 0 : index
    %c0_32 = arith.constant 0 : index
    %64 = vector.load %arg3[%c0_29, %c1_30, %c0_31, %c0_32] : memref<1x3x32x512xbf16, #tpu.memory_space<vmem>>, vector<1x1x32x512xbf16>
    %65 = vector.shape_cast %64 : vector<1x1x32x512xbf16> to vector<32x512xbf16>
    %66 = arith.extf %65 : vector<32x512xbf16> to vector<32x512xf32>
    %67 = vector.extract_strided_slice %56 {offsets = [1, 0], sizes = [1, 512], strides = [1, 1]} : vector<3x512xf32> to vector<1x512xf32>
    %68 = vector.broadcast %67 : vector<1x512xf32> to vector<32x512xf32>
    %69 = arith.mulf %68, %66 : vector<32x512xf32>
    %70 = arith.addf %63, %69 : vector<32x512xf32>
    %c0_33 = arith.constant 0 : index
    %c2_34 = arith.constant 2 : index
    %c0_35 = arith.constant 0 : index
    %c0_36 = arith.constant 0 : index
    %71 = vector.load %arg3[%c0_33, %c2_34, %c0_35, %c0_36] : memref<1x3x32x512xbf16, #tpu.memory_space<vmem>>, vector<1x1x32x512xbf16>
    %72 = vector.shape_cast %71 : vector<1x1x32x512xbf16> to vector<32x512xbf16>
    %73 = arith.extf %72 : vector<32x512xbf16> to vector<32x512xf32>
    %74 = vector.extract_strided_slice %56 {offsets = [2, 0], sizes = [1, 512], strides = [1, 1]} : vector<3x512xf32> to vector<1x512xf32>
    %75 = vector.broadcast %74 : vector<1x512xf32> to vector<32x512xf32>
    %76 = arith.mulf %75, %73 : vector<32x512xf32>
    %77 = arith.addf %70, %76 : vector<32x512xf32>
    %c0_37 = arith.constant 0 : index
    %c0_38 = arith.constant 0 : index
    %78 = vector.load %arg5[%c0_37, %c0_38] : memref<32x1xf32, #tpu.memory_space<vmem>>, vector<32x1xf32>
    %c0_39 = arith.constant 0 : index
    %c0_40 = arith.constant 0 : index
    %79 = vector.load %arg6[%c0_39, %c0_40] : memref<32x1xf32, #tpu.memory_space<vmem>>, vector<32x1xf32>
    %cst_41 = arith.constant dense<0.000000e+00> : vector<512xf32>
    %80 = vector.multi_reduction <add>, %77, %cst_41 [0] : vector<32x512xf32> to vector<512xf32>
    %81 = vector.shape_cast %80 : vector<512xf32> to vector<1x512xf32>
    %cst_42 = arith.constant 3.200000e+01 : f32
    %82 = vector.broadcast %cst_42 : f32 to vector<1x512xf32>
    %83 = arith.divf %81, %82 : vector<1x512xf32>
    %84 = vector.broadcast %83 : vector<1x512xf32> to vector<32x512xf32>
    %85 = arith.subf %77, %84 : vector<32x512xf32>
    %86 = arith.mulf %85, %85 : vector<32x512xf32>
    %cst_43 = arith.constant dense<0.000000e+00> : vector<512xf32>
    %87 = vector.multi_reduction <add>, %86, %cst_43 [0] : vector<32x512xf32> to vector<512xf32>
    %88 = vector.shape_cast %87 : vector<512xf32> to vector<1x512xf32>
    %cst_44 = arith.constant 3.200000e+01 : f32
    %89 = vector.broadcast %cst_44 : f32 to vector<1x512xf32>
    %90 = arith.divf %88, %89 : vector<1x512xf32>
    %cst_45 = arith.constant 9.99999974E-6 : f32
    %91 = vector.broadcast %cst_45 : f32 to vector<1x512xf32>
    %92 = arith.addf %90, %91 : vector<1x512xf32>
    %93 = math.rsqrt %92 : vector<1x512xf32>
    %94 = vector.broadcast %93 : vector<1x512xf32> to vector<32x512xf32>
    %95 = arith.mulf %85, %94 : vector<32x512xf32>
    %96 = vector.broadcast %78 : vector<32x1xf32> to vector<32x512xf32>
    %97 = arith.mulf %95, %96 : vector<32x512xf32>
    %98 = vector.broadcast %79 : vector<32x1xf32> to vector<32x512xf32>
    %99 = arith.addf %97, %98 : vector<32x512xf32>
    %c0_46 = arith.constant 0 : index
    %c0_47 = arith.constant 0 : index
    %100 = vector.load %arg7[%c0_46, %c0_47] : memref<64x32xbf16, #tpu.memory_space<vmem>>, vector<64x32xbf16>
    %101 = arith.truncf %99 : vector<32x512xf32> to vector<32x512xbf16>
    %cst_48 = arith.constant dense<0.000000e+00> : vector<64x512xf32>
    %102 = tpu.matmul %100, %101, %cst_48 {dimension_numbers = #tpu.dot_dimension_numbers<[1], [0], [0], [1], [0, 0, 1, 1], [], []>} : vector<64x32xbf16>, vector<32x512xbf16>, vector<64x512xf32> -> vector<64x512xf32>
    %c0_49 = arith.constant 0 : index
    %c0_50 = arith.constant 0 : index
    %103 = vector.load %arg8[%c0_49, %c0_50] : memref<64x1xf32, #tpu.memory_space<vmem>>, vector<64x1xf32>
    %104 = vector.broadcast %103 : vector<64x1xf32> to vector<64x512xf32>
    %105 = arith.addf %102, %104 : vector<64x512xf32>
    %cst_51 = arith.constant 5.000000e-01 : f32
    %106 = vector.broadcast %cst_51 : f32 to vector<64x512xf32>
    %107 = arith.mulf %106, %105 : vector<64x512xf32>
    %cst_52 = arith.constant 0.707106769 : f32
    %108 = vector.broadcast %cst_52 : f32 to vector<64x512xf32>
    %109 = arith.mulf %105, %108 : vector<64x512xf32>
    %110 = math.absf %109 : vector<64x512xf32>
    %cst_53 = arith.constant 0.327591091 : f32
    %111 = vector.broadcast %cst_53 : f32 to vector<64x512xf32>
    %112 = arith.mulf %111, %110 : vector<64x512xf32>
    %cst_54 = arith.constant 1.000000e+00 : f32
    %113 = vector.broadcast %cst_54 : f32 to vector<64x512xf32>
    %114 = arith.addf %113, %112 : vector<64x512xf32>
    %115 = tpu.reciprocal %114 {approx = true} : vector<64x512xf32> -> vector<64x512xf32>
    %cst_55 = arith.constant 1.06140542 : f32
    %116 = vector.broadcast %cst_55 : f32 to vector<64x512xf32>
    %117 = arith.mulf %116, %115 : vector<64x512xf32>
    %cst_56 = arith.constant -1.45315206 : f32
    %118 = vector.broadcast %cst_56 : f32 to vector<64x512xf32>
    %119 = arith.addf %117, %118 : vector<64x512xf32>
    %120 = arith.mulf %119, %115 : vector<64x512xf32>
    %cst_57 = arith.constant 1.42141378 : f32
    %121 = vector.broadcast %cst_57 : f32 to vector<64x512xf32>
    %122 = arith.addf %120, %121 : vector<64x512xf32>
    %123 = arith.mulf %122, %115 : vector<64x512xf32>
    %cst_58 = arith.constant -0.284496725 : f32
    %124 = vector.broadcast %cst_58 : f32 to vector<64x512xf32>
    %125 = arith.addf %123, %124 : vector<64x512xf32>
    %126 = arith.mulf %125, %115 : vector<64x512xf32>
    %cst_59 = arith.constant 0.254829586 : f32
    %127 = vector.broadcast %cst_59 : f32 to vector<64x512xf32>
    %128 = arith.addf %126, %127 : vector<64x512xf32>
    %129 = arith.mulf %128, %115 : vector<64x512xf32>
    %cst_60 = arith.constant 0.000000e+00 : f32
    %130 = vector.broadcast %cst_60 : f32 to vector<64x512xf32>
    %131 = arith.subf %130, %110 : vector<64x512xf32>
    %132 = arith.mulf %131, %110 : vector<64x512xf32>
    %133 = math.exp %132 : vector<64x512xf32>
    %134 = arith.mulf %129, %133 : vector<64x512xf32>
    %cst_61 = arith.constant 1.000000e+00 : f32
    %135 = vector.broadcast %cst_61 : f32 to vector<64x512xf32>
    %136 = arith.subf %135, %134 : vector<64x512xf32>
    %cst_62 = arith.constant 0.000000e+00 : f32
    %137 = vector.broadcast %cst_62 : f32 to vector<64x512xf32>
    %138 = arith.cmpf oge, %109, %137 : vector<64x512xf32>
    %cst_63 = arith.constant 0.000000e+00 : f32
    %139 = vector.broadcast %cst_63 : f32 to vector<64x512xf32>
    %140 = arith.subf %139, %136 : vector<64x512xf32>
    %141 = arith.select %138, %136, %140 : vector<64x512xi1>, vector<64x512xf32>
    %cst_64 = arith.constant 1.000000e+00 : f32
    %142 = vector.broadcast %cst_64 : f32 to vector<64x512xf32>
    %143 = arith.addf %142, %141 : vector<64x512xf32>
    %144 = arith.mulf %107, %143 : vector<64x512xf32>
    %c0_65 = arith.constant 0 : index
    %c0_66 = arith.constant 0 : index
    %145 = vector.load %arg9[%c0_65, %c0_66] : memref<32x64xbf16, #tpu.memory_space<vmem>>, vector<32x64xbf16>
    %146 = arith.truncf %144 : vector<64x512xf32> to vector<64x512xbf16>
    %cst_67 = arith.constant dense<0.000000e+00> : vector<32x512xf32>
    %147 = tpu.matmul %145, %146, %cst_67 {dimension_numbers = #tpu.dot_dimension_numbers<[1], [0], [0], [1], [0, 0, 1, 1], [], []>} : vector<32x64xbf16>, vector<64x512xbf16>, vector<32x512xf32> -> vector<32x512xf32>
    %c0_68 = arith.constant 0 : index
    %c0_69 = arith.constant 0 : index
    %148 = vector.load %arg10[%c0_68, %c0_69] : memref<32x1xf32, #tpu.memory_space<vmem>>, vector<32x1xf32>
    %149 = vector.broadcast %148 : vector<32x1xf32> to vector<32x512xf32>
    %150 = arith.addf %147, %149 : vector<32x512xf32>
    %151 = arith.addf %99, %150 : vector<32x512xf32>
    %c0_70 = arith.constant 0 : index
    %c0_71 = arith.constant 0 : index
    %152 = vector.load %arg11[%c0_70, %c0_71] : memref<32x1xf32, #tpu.memory_space<vmem>>, vector<32x1xf32>
    %c0_72 = arith.constant 0 : index
    %c0_73 = arith.constant 0 : index
    %153 = vector.load %arg12[%c0_72, %c0_73] : memref<32x1xf32, #tpu.memory_space<vmem>>, vector<32x1xf32>
    %cst_74 = arith.constant dense<0.000000e+00> : vector<512xf32>
    %154 = vector.multi_reduction <add>, %151, %cst_74 [0] : vector<32x512xf32> to vector<512xf32>
    %155 = vector.shape_cast %154 : vector<512xf32> to vector<1x512xf32>
    %cst_75 = arith.constant 3.200000e+01 : f32
    %156 = vector.broadcast %cst_75 : f32 to vector<1x512xf32>
    %157 = arith.divf %155, %156 : vector<1x512xf32>
    %158 = vector.broadcast %157 : vector<1x512xf32> to vector<32x512xf32>
    %159 = arith.subf %151, %158 : vector<32x512xf32>
    %160 = arith.mulf %159, %159 : vector<32x512xf32>
    %cst_76 = arith.constant dense<0.000000e+00> : vector<512xf32>
    %161 = vector.multi_reduction <add>, %160, %cst_76 [0] : vector<32x512xf32> to vector<512xf32>
    %162 = vector.shape_cast %161 : vector<512xf32> to vector<1x512xf32>
    %cst_77 = arith.constant 3.200000e+01 : f32
    %163 = vector.broadcast %cst_77 : f32 to vector<1x512xf32>
    %164 = arith.divf %162, %163 : vector<1x512xf32>
    %cst_78 = arith.constant 9.99999974E-6 : f32
    %165 = vector.broadcast %cst_78 : f32 to vector<1x512xf32>
    %166 = arith.addf %164, %165 : vector<1x512xf32>
    %167 = math.rsqrt %166 : vector<1x512xf32>
    %168 = vector.broadcast %167 : vector<1x512xf32> to vector<32x512xf32>
    %169 = arith.mulf %159, %168 : vector<32x512xf32>
    %170 = vector.broadcast %152 : vector<32x1xf32> to vector<32x512xf32>
    %171 = arith.mulf %169, %170 : vector<32x512xf32>
    %172 = vector.broadcast %153 : vector<32x1xf32> to vector<32x512xf32>
    %173 = arith.addf %171, %172 : vector<32x512xf32>
    %c0_79 = arith.constant 0 : index
    %c0_80 = arith.constant 0 : index
    %c0_81 = arith.constant 0 : index
    %174 = vector.load %arg13[%c0_79, %c0_80, %c0_81] : memref<1x32x512xf32, #tpu.memory_space<vmem>>, vector<1x32x512xf32>
    %175 = vector.shape_cast %174 : vector<1x32x512xf32> to vector<32x512xf32>
    %176 = vector.shape_cast %173 : vector<32x512xf32> to vector<1x32x512xf32>
    tpu.vector_store %arg13[%c0_79, %c0_80, %c0_81], %176 {strides = array<i32>} : memref<1x32x512xf32, #tpu.memory_space<vmem>>, vector<1x32x512xf32>,
    return
  }
  func.func @transform_0(%arg0: i32, %arg1: i32) -> (i32, i32, i32) {
    %c0_i32 = arith.constant 0 : i32
    %c0_i32_0 = arith.constant 0 : i32
    return %arg0, %c0_i32, %arg1 : i32, i32, i32
  }
  func.func @transform_1(%arg0: i32, %arg1: i32) -> (i32, i32, i32, i32) {
    %c0_i32 = arith.constant 0 : i32
    %c0_i32_0 = arith.constant 0 : i32
    %c0_i32_1 = arith.constant 0 : i32
    return %arg0, %c0_i32, %c0_i32_0, %arg1 : i32, i32, i32, i32
  }
  func.func @transform_2(%arg0: i32, %arg1: i32) -> (i32, i32, i32) {
    %c0_i32 = arith.constant 0 : i32
    %c0_i32_0 = arith.constant 0 : i32
    return %arg0, %c0_i32, %arg1 : i32, i32, i32
  }
  func.func @transform_3(%arg0: i32, %arg1: i32) -> (i32, i32) {
    %c0_i32 = arith.constant 0 : i32
    %c0_i32_0 = arith.constant 0 : i32
    %c0_i32_1 = arith.constant 0 : i32
    return %c0_i32, %c0_i32_0 : i32, i32
  }
  func.func @transform_4(%arg0: i32, %arg1: i32) -> (i32, i32) {
    %c0_i32 = arith.constant 0 : i32
    %c0_i32_0 = arith.constant 0 : i32
    %c0_i32_1 = arith.constant 0 : i32
    return %c0_i32, %c0_i32_0 : i32, i32
  }
  func.func @transform_5(%arg0: i32, %arg1: i32) -> (i32, i32) {
    %c0_i32 = arith.constant 0 : i32
    %c0_i32_0 = arith.constant 0 : i32
    %c0_i32_1 = arith.constant 0 : i32
    return %c0_i32, %c0_i32_0 : i32, i32
  }
  func.func @transform_6(%arg0: i32, %arg1: i32) -> (i32, i32) {
    %c0_i32 = arith.constant 0 : i32
    %c0_i32_0 = arith.constant 0 : i32
    %c0_i32_1 = arith.constant 0 : i32
    return %c0_i32, %c0_i32_0 : i32, i32
  }
  func.func @transform_7(%arg0: i32, %arg1: i32) -> (i32, i32) {
    %c0_i32 = arith.constant 0 : i32
    %c0_i32_0 = arith.constant 0 : i32
    %c0_i32_1 = arith.constant 0 : i32
    return %c0_i32, %c0_i32_0 : i32, i32
  }
  func.func @transform_8(%arg0: i32, %arg1: i32) -> (i32, i32) {
    %c0_i32 = arith.constant 0 : i32
    %c0_i32_0 = arith.constant 0 : i32
    %c0_i32_1 = arith.constant 0 : i32
    return %c0_i32, %c0_i32_0 : i32, i32
  }
  func.func @transform_9(%arg0: i32, %arg1: i32) -> (i32, i32) {
    %c0_i32 = arith.constant 0 : i32
    %c0_i32_0 = arith.constant 0 : i32
    %c0_i32_1 = arith.constant 0 : i32
    return %c0_i32, %c0_i32_0 : i32, i32
  }
  func.func @transform_10(%arg0: i32, %arg1: i32) -> (i32, i32) {
    %c0_i32 = arith.constant 0 : i32
    %c0_i32_0 = arith.constant 0 : i32
    %c0_i32_1 = arith.constant 0 : i32
    return %c0_i32, %c0_i32_0 : i32, i32
  }
  func.func @transform_11(%arg0: i32, %arg1: i32) -> (i32, i32, i32) {
    %c0_i32 = arith.constant 0 : i32
    %c0_i32_0 = arith.constant 0 : i32
    return %arg0, %c0_i32, %arg1 : i32, i32, i32
  }
}

</mosaic_0001>

<bundles_post_ra>
// kernel: _lambda_.1
= control target key start
LH: loop header
LB: loop body
LE: loop exit
PB: predicated region body
PF: predicated region fallthrough
CT: control target
= control target key end

     0   :  { %s5958_s0 = inlined_call_operand.vmem [shape: f32[2,32,1024], index: 0, kind: input, shape index: {}]   ;;  %s5959_s1 = inlined_call_operand.vmem [shape: bf16[2,3,32,1024], index: 1, kind: input, shape index: {}]   ;;  %s5960_s2 = inlined_call_operand.vmem [shape: bf16[2,3,1024], index: 2, kind: input, shape index: {}]   ;;  %s5961_s3 = inlined_call_operand.vmem [shape: f32[32,1], index: 3, kind: input, shape index: {}]   ;;  %s5962_s4 = inlined_call_operand.vmem [shape: f32[32,1], index: 4, kind: input, shape index: {}]   ;;  %s5963_s5 = inlined_call_operand.vmem [shape: bf16[64,32], index: 5, kind: input, shape index: {}]   ;;  %s5964_s6 = inlined_call_operand.vmem [shape: f32[64,1], index: 6, kind: input, shape index: {}]   ;;  %s5965_s7 = inlined_call_operand.vmem [shape: bf16[32,64], index: 7, kind: input, shape index: {}]   ;;  %s5966_s8 = inlined_call_operand.vmem [shape: f32[32,1], index: 8, kind: input, shape index: {}]   ;;  %s5967_s9 = inlined_call_operand.vmem [shape: f32[32,1], index: 9, kind: input, shape index: {}]   ;;  %s5968_s10 = inlined_call_operand.vmem [shape: f32[32,1], index: 10, kind: input, shape index: {}]   ;;  %s5969_s11 = inlined_call_operand.vmem [shape: f32[2,32,1024], index: 11, kind: output, shape index: {}]  }
   0x1   :  { %6077 = sst [smem:[#allocation106_spill]] %s5969_s11 }
   0x2   :  { %s3713_s17 = smov 0   ;;  %s3715_s18 = smov 0  }
   0x3   :  { %s3717_s19 = smov 0   ;;  %s3719_s20 = smov 0  }
   0x4   :  { %s3721_s21 = smov 0   ;;  %s3723_s22 = smov 0  }
   0x5   :  { %s3725_s23 = smov 0  }
   0x6 LB: > { %s30_s24 = sadd.s32 1, %s3641_s21  ;;  %s33_s25 = sadd.s32 1, %s3645_s22  ;;  %s3649_s23 = sphi %s3725_s23, %s21_s23   ;;  %s3645_s22 = sphi %s3723_s22, %s6359_s22   ;;  %s3641_s21 = sphi %s3721_s21, %s6358_s21   ;;  %s3637_s20 = sphi %s3719_s20, %s6357_s20   ;;  %s3633_s19 = sphi %s3717_s19, %s6356_s19   ;;  %s3629_s18 = sphi %s3715_s18, %s6355_s18   ;;  %s3625_s17 = sphi %s3713_s17, %s6354_s17  }
   0x7   : > { %p31_p0 = scmp.ge.s32.totalorder %s30_s24, 2  ;;  %s3249_s26 = sadd.s32 4294967295, %s3649_s23  }
   0x8   : > { %p49_p1 = scmp.ne.s32.totalorder %s3629_s18, %s3625_s17  ;;  %p50_p2 = scmp.eq.s32.totalorder %s3649_s23, 0 }
   0x9   : > { %s6361_s24 = smov (%p31_p0, %s30_s24), 0  ;;  %s6363_s25 = smov (!%p31_p0, %s33_s25), %s3645_s22 }
   0xa   : > { %6078 = sst [smem:[#allocation5_spill]] %s6361_s24  ;;  %p35_p3 = scmp.ge.s32.totalorder %s6363_s25, 2 }
   0xb   : > { %p305_p4 = scmp.eq.s32.totalorder %s3249_s26, 3  ;;  %s38_s27 = ssub.s32 %s3641_s21, %s6361_s24 }
   0xc   : > { %p3759_p5 = por %p50_p2, %p49_p1  ;;  %s6365_s25 = smov (%p35_p3, %s6363_s25), 0 }
   0xd   : > { %6080 = sst [smem:[#allocation6_spill]] %s6365_s25  ;;  %p3765_p6 = por %p305_p4, %p49_p1 }
   0xe   : > { %s37_s30 = ssub.s32 %s3645_s22, %s6365_s25  ;;  %s42_s13 = sadd.s32 1, %s3629_s18 }
   0xf   : > { %s39_s12 = sor.u32 %s38_s27, %s37_s30  ;;  %p3252_p8 = scmp.ge.s32.totalorder %s3649_s23, 4 }
  0x10   : > { %p40_p7 = scmp.eq.s32.totalorder %s39_s12, 0 }
  0x11   : > { %351 = sbr.rel (%p3252_p8) target bundleno = 77 (0x4d), region = 48 }
  0x12   : > { %s3773_s14 = scalar_select %p40_p7, %s3629_s18, %s42_s13  }
  0x16   : > { %354 = sbr.rel (!%p3759_p5) target bundleno = 45 (0x2d), region = 52  ;;  %s356_s15 = sand.u32 (%p3759_p5), 1, %s3629_s18  }
  0x17   : > { %s3254_s16 = sshll.u32 (%p3759_p5), %s3641_s21, 2  ;;  %s3253_s26 = sshll.u32 (%p3759_p5), %s356_s15, 7 }
  0x18   : > { %s3255_s24 = sshll.u32 (%p3759_p5), %s3645_s22, 5 }
  0x19   : > { %s361_s11 = sadd.s32 (%p3759_p5), %s3255_s24, %s3254_s16  ;;  %s358_s24 = scalar_lea.vmem (%p3759_p5), [#allocation2], %s3253_s26 }
  0x1a   : > { %s3256_s25 = sshll.u32 (%p3759_p5), %s361_s11, 3 }
  0x1b   : > { %s3784_s12 = scalar_lea.vmem %s5958_s0, %s3256_s25 }
  0x1c   : > { %v376_v0 = vld [vmem:[%s3784_s12] sm:$0xff]  ;;  %v378_v1 = vld [vmem:[%s3784_s12 + $0x8] sm:$0xff]  ;;  %v380_v2 = vld [vmem:[%s3784_s12 + $0x10] sm:$0xff] }
  0x1d   : > { %377 = vst [vmem:[%s358_s24] sm:$0xff] %v376_v0  ;;  %v382_v3 = vld [vmem:[%s3784_s12 + $0x18] sm:$0xff]  ;;  %v384_v4 = vld [vmem:[%s3784_s12 + $0x40] sm:$0xff]  ;;  %v386_v5 = vld [vmem:[%s3784_s12 + $0x48] sm:$0xff] }
  0x1e   : > { %379 = vst [vmem:[%s358_s24 + $0x8] sm:$0xff] %v378_v1  ;;  %v388_v6 = vld [vmem:[%s3784_s12 + $0x50] sm:$0xff]  ;;  %v390_v7 = vld [vmem:[%s3784_s12 + $0x58] sm:$0xff]  ;;  %v392_v8 = vld [vmem:[%s3784_s12 + $0x80] sm:$0xff] }
  0x1f   : > { %381 = vst [vmem:[%s358_s24 + $0x10] sm:$0xff] %v380_v2  ;;  %v394_v9 = vld [vmem:[%s3784_s12 + $0x88] sm:$0xff]  ;;  %v396_v10 = vld [vmem:[%s3784_s12 + $0x90] sm:$0xff]  ;;  %v398_v11 = vld [vmem:[%s3784_s12 + $0x98] sm:$0xff] }
  0x20   : > { %383 = vst [vmem:[%s358_s24 + $0x18] sm:$0xff] %v382_v3  ;;  %v400_v12 = vld [vmem:[%s3784_s12 + $0xc0] sm:$0xff]  ;;  %v402_v13 = vld [vmem:[%s3784_s12 + $0xc8] sm:$0xff]  ;;  %v404_v14 = vld [vmem:[%s3784_s12 + $0xd0] sm:$0xff] }
  0x21   : > { %385 = vst [vmem:[%s358_s24 + $0x20] sm:$0xff] %v384_v4  ;;  %v406_v15 = vld [vmem:[%s3784_s12 + $0xd8] sm:$0xff] }
  0x22   : > { %387 = vst [vmem:[%s358_s24 + $0x28] sm:$0xff] %v386_v5 }
  0x23   : > { %389 = vst [vmem:[%s358_s24 + $0x30] sm:$0xff] %v388_v6 }
  0x24   : > { %391 = vst [vmem:[%s358_s24 + $0x38] sm:$0xff] %v390_v7 }
  0x25   : > { %393 = vst [vmem:[%s358_s24 + $0x40] sm:$0xff] %v392_v8 }
  0x26   : > { %395 = vst [vmem:[%s358_s24 + $0x48] sm:$0xff] %v394_v9 }
  0x27   : > { %397 = vst [vmem:[%s358_s24 + $0x50] sm:$0xff] %v396_v10 }
  0x28   : > { %399 = vst [vmem:[%s358_s24 + $0x58] sm:$0xff] %v398_v11 }
  0x29   : > { %401 = vst [vmem:[%s358_s24 + $0x60] sm:$0xff] %v400_v12 }
  0x2a   : > { %403 = vst [vmem:[%s358_s24 + $0x68] sm:$0xff] %v402_v13 }
  0x2b   : > { %405 = vst [vmem:[%s358_s24 + $0x70] sm:$0xff] %v404_v14 }
  0x2c   : > { %407 = vst [vmem:[%s358_s24 + $0x78] sm:$0xff] %v406_v15 }
  0x2d PF: > { %413 = sbr.rel (!%p3759_p5) target bundleno = 77 (0x4d), region = 75  ;;  %s415_s11 = sand.u32 (%p3759_p5), 1, %s3629_s18  }
  0x2e   : > { %s3341_s25 = smul.u32 (%p3759_p5), 192, %s415_s11  ;;  %s3257_s13 = sshll.u32 (%p3759_p5), %s3641_s21, 2 }
  0x2f   : > { %s3342_s15 = smul.u32 (%p3759_p5), 96, %s3645_s22 }
  0x30   : > { %s3815_s28 = scalar_lea.vmem (%p3759_p5), [#allocation3], %s3341_s25 }
  0x31   : > { %s420_s16 = sadd.s32 (%p3759_p5), %s3342_s15, %s3257_s13 }
  0x32   : > { %s3258_s26 = sshll.u32 %s420_s16, 2 }
  0x33   : > { %s3810_s12 = scalar_lea.vmem %s5959_s1, %s3258_s26 }
  0x34   : > { %v435_v16 = vld [vmem:[%s3810_s12] sm:$0xff]  ;;  %v437_v17 = vld [vmem:[%s3810_s12 + $0x8] sm:$0xff] }
  0x35   : > { %v439_v18 = vld [vmem:[%s3810_s12 + $0x20] sm:$0xff]  ;;  %436 = vst [vmem:[%s3815_s28] sm:$0xff] %v435_v16  ;;  %v441_v19 = vld [vmem:[%s3810_s12 + $0x28] sm:$0xff] }
  0x36   : > { %438 = vst [vmem:[%s3815_s28 + $0x8] sm:$0xff] %v437_v17  ;;  %v443_v20 = vld [vmem:[%s3810_s12 + $0x40] sm:$0xff]  ;;  %v445_v21 = vld [vmem:[%s3810_s12 + $0x48] sm:$0xff] }
  0x37   : > { %440 = vst [vmem:[%s3815_s28 + $0x10] sm:$0xff] %v439_v18  ;;  %v447_v22 = vld [vmem:[%s3810_s12 + $0x60] sm:$0xff]  ;;  %v449_v23 = vld [vmem:[%s3810_s12 + $0x68] sm:$0xff] }
  0x38   : > { %442 = vst [vmem:[%s3815_s28 + $0x18] sm:$0xff] %v441_v19  ;;  %v451_v24 = vld [vmem:[%s3810_s12 + $0x80] sm:$0xff]  ;;  %v453_v25 = vld [vmem:[%s3810_s12 + $0x88] sm:$0xff] }
  0x39   : > { %444 = vst [vmem:[%s3815_s28 + $0x20] sm:$0xff] %v443_v20  ;;  %v455_v26 = vld [vmem:[%s3810_s12 + $0xa0] sm:$0xff]  ;;  %v457_v27 = vld [vmem:[%s3810_s12 + $0xa8] sm:$0xff] }
  0x3a   : > { %446 = vst [vmem:[%s3815_s28 + $0x28] sm:$0xff] %v445_v21  ;;  %v459_v28 = vld [vmem:[%s3810_s12 + $0xc0] sm:$0xff]  ;;  %v461_v29 = vld [vmem:[%s3810_s12 + $0xc8] sm:$0xff] }
  0x3b   : > { %448 = vst [vmem:[%s3815_s28 + $0x30] sm:$0xff] %v447_v22  ;;  %v463_v30 = vld [vmem:[%s3810_s12 + $0xe0] sm:$0xff]  ;;  %v465_v31 = vld [vmem:[%s3810_s12 + $0xe8] sm:$0xff] }
  0x3c   : > { %450 = vst [vmem:[%s3815_s28 + $0x38] sm:$0xff] %v449_v23  ;;  %v467_v32 = vld [vmem:[%s3810_s12 + $0x100] sm:$0xff]  ;;  %v469_v33 = vld [vmem:[%s3810_s12 + $0x108] sm:$0xff] }
  0x3d   : > { %452 = vst [vmem:[%s3815_s28 + $0x40] sm:$0xff] %v451_v24  ;;  %v471_v34 = vld [vmem:[%s3810_s12 + $0x120] sm:$0xff]  ;;  %v473_v35 = vld [vmem:[%s3810_s12 + $0x128] sm:$0xff] }
  0x3e   : > { %454 = vst [vmem:[%s3815_s28 + $0x48] sm:$0xff] %v453_v25  ;;  %v475_v36 = vld [vmem:[%s3810_s12 + $0x140] sm:$0xff]  ;;  %v477_v37 = vld [vmem:[%s3810_s12 + $0x148] sm:$0xff] }
  0x3f   : > { %456 = vst [vmem:[%s3815_s28 + $0x50] sm:$0xff] %v455_v26  ;;  %v479_v38 = vld [vmem:[%s3810_s12 + $0x160] sm:$0xff]  ;;  %v481_v39 = vld [vmem:[%s3810_s12 + $0x168] sm:$0xff] }
  0x40   : > { %458 = vst [vmem:[%s3815_s28 + $0x58] sm:$0xff] %v457_v27 }
  0x41   : > { %460 = vst [vmem:[%s3815_s28 + $0x60] sm:$0xff] %v459_v28 }
  0x42   : > { %462 = vst [vmem:[%s3815_s28 + $0x68] sm:$0xff] %v461_v29 }
  0x43   : > { %464 = vst [vmem:[%s3815_s28 + $0x70] sm:$0xff] %v463_v30 }
  0x44   : > { %466 = vst [vmem:[%s3815_s28 + $0x78] sm:$0xff] %v465_v31 }
  0x45   : > { %468 = vst [vmem:[%s3815_s28 + $0x80] sm:$0xff] %v467_v32 }
  0x46   : > { %470 = vst [vmem:[%s3815_s28 + $0x88] sm:$0xff] %v469_v33 }
  0x47   : > { %472 = vst [vmem:[%s3815_s28 + $0x90] sm:$0xff] %v471_v34 }
  0x48   : > { %474 = vst [vmem:[%s3815_s28 + $0x98] sm:$0xff] %v473_v35 }
  0x49   : > { %476 = vst [vmem:[%s3815_s28 + $0xa0] sm:$0xff] %v475_v36 }
  0x4a   : > { %478 = vst [vmem:[%s3815_s28 + $0xa8] sm:$0xff] %v477_v37 }
  0x4b   : > { %480 = vst [vmem:[%s3815_s28 + $0xb0] sm:$0xff] %v479_v38 }
  0x4c   : > { %482 = vst [vmem:[%s3815_s28 + $0xb8] sm:$0xff] %v481_v39 }
  0x4d PF: > { %p3259_p9 = scmp.ge.s32.totalorder %s3649_s23, 1  ;;  %p500_p10 = scmp.lt.s32.totalorder %s3649_s23, 5 }
  0x4f   : > { %p501_p11 = pnand %p3259_p9, %p500_p10 }
  0x51   : > { %504 = sbr.rel (%p501_p11) target bundleno = 1027 (0x403), region = 102 }
  0x56   : > { %v1358_v40 = vld [vmem:[%s5962_s4 + $0x10] sm:$0xff]  ;;  %s507_s15 = sand.u32 1, %s3625_s17   ;;  %s3872_s16 = sshll.u32 %s3633_s19, 2  ;;  %v3651_v42 = vmov 0   ;;  %v1352_v43 = vld [vmem:[%s5961_s3] sm:$0xff]  ;;  %v1359_v44 = vld [vmem:[%s5962_s4 + $0x18] sm:$0xff] }
  0x57   : > { %v1354_v41 = vld [vmem:[%s5961_s3 + $0x10] sm:$0xff]  ;;  %3403 = vset.pattern.permute.xlu1 %v3651_v42  ;;  %3402 = vset.pattern.permute.xlu0 %v3651_v42  ;;  %s3877_s30 = sshll.u32 %s507_s15, 7  ;;  %s3343_s12 = smul.u32 192, %s507_s15  ;;  %v1355_v45 = vld [vmem:[%s5961_s3 + $0x18] sm:$0xff]  ;;  %v1353_v2 = vld [vmem:[%s5961_s3 + $0x8] sm:$0xff]  ;;  %vm1080_vm0 = vcmask 1040384  }
  0x58   : > { %1587 = vperm.xlu1 %3403, %v1358_v40   ;;  %1551 = vperm.xlu0 %3402, %v1354_v41   ;;  %p568_p12 = scmp.lt.s32.totalorder %s3637_s20, 1  ;;  %p570_p13 = scmp.lt.s32.totalorder %s3872_s16, 7  ;;  %v1357_v27 = vld [vmem:[%s5962_s4 + $0x8] sm:$0xff]  ;;  %v1356_v33 = vld [vmem:[%s5962_s4] sm:$0xff]  ;;  %vm1085_vm1 = vcmask 1041408   ;;  %vm1167_vm8 = vcmask 1042432  }
  0x59   : > { %3404 = vset.pattern.permute.xlu2 %v3651_v42  ;;  %s3890_s13 = scalar_lea.vmem [#allocation2], %s3877_s30  ;;  %s3910_s26 = scalar_lea.vmem [#allocation3], %s3343_s12 }
  0x5a   : > { %1541 = vperm.xlu2 %3404, %v1352_v43   ;;  %s569_s17 = scalar_select %p568_p12, %s3637_s20, 1  ;;  %v3893_v46 = vld [vmem:[%s3890_s13] sm:$0xff]  ;;  %v3916_v54 = vld [vmem:[%s3910_s26 + $0x10] sm:$0xff] }
  0x5b   : > { %s571_s25 = scalar_select %p570_p13, %s3872_s16, 7  ;;  %v3896_v47 = vld [vmem:[%s3890_s13 + $0x20] sm:$0xff]  ;;  %v598_v50 = vmul.f32 %v3893_v46, %v3893_v46  ;;  %v3924_v57 = vld [vmem:[%s3910_s26 + $0x30] sm:$0xff]  ;;  %v3930_v59 = vunpack.c.l.bf16 %v3916_v54 }
  0x5c   : > { %v3899_v48 = vld [vmem:[%s3890_s13 + $0x40] sm:$0xff]  ;;  %s3263_s15 = sshll.u32 %s569_s17, 3  ;;  %v602_v51 = vmul.f32 %v3896_v47, %v3896_v47  ;;  %v3939_v63 = vunpack.c.l.bf16 %v3924_v57  ;;  %v3942_v0 = vld [vmem:[%s3910_s26 + $0x50] sm:$0xff]  ;;  %s6351_s29 = sld [smem:[#allocation106_spill]] (%p3765_p6) }
  0x5d   : > { %v3902_v49 = vld [vmem:[%s3890_s13 + $0x60] sm:$0xff]  ;;  %v606_v52 = vmul.f32 %v3899_v48, %v3899_v48  ;;  %s573_s27 = sadd.s32 %s3263_s15, %s571_s25  ;;  %v722_v4 = vmul.f32 %v3930_v59, %v3896_v47  ;;  %v774_v6 = vmul.f32 %v3930_v59, %v3930_v59  ;;  %v3965_v8 = vld [vmem:[%s3910_s26 + $0x70] sm:$0xff]  ;;  %v3974_v13 = vunpack.c.l.bf16 %v3942_v0 }
  0x5e   : > { %v3913_v53 = vld [vmem:[%s3910_s26] sm:$0xff]  ;;  %v610_v55 = vmul.f32 %v3902_v49, %v3902_v49  ;;  %s3264_s12 = sshll.u32 %s573_s27, 1  ;;  %v614_v61 = vadd.f32 %v602_v51, %v598_v50  ;;  %v730_v12 = vmul.f32 %v3939_v63, %v3902_v49  ;;  %v782_v17 = vmul.f32 %v3939_v63, %v3939_v63  ;;  %v4004_v32 = vld [vmem:[%s3910_s26 + $0x90] sm:$0xff] }
  0x5f   : > { %v3921_v56 = vld [vmem:[%s3910_s26 + $0x20] sm:$0xff]  ;;  %v3927_v58 = vunpack.c.l.bf16 %v3913_v53  ;;  %s575_s11 = scalar_lea.vmem %s5960_s2, %s3264_s12  ;;  %v3985_v21 = vunpack.c.l.bf16 %v3965_v8  ;;  %v851_v24 = vmul.f32 %v3974_v13, %v3896_v47  ;;  %v903_v36 = vmul.f32 %v3974_v13, %v3974_v13  ;;  %v4017_v39 = vld [vmem:[%s3910_s26 + $0xb0] sm:$0xff] }
  0x60   : > { %v3933_v60 = vld [vmem:[%s3910_s26 + $0x40] sm:$0xff]  ;;  %v3936_v62 = vunpack.c.l.bf16 %v3921_v56  ;;  %1592 = vperm.xlu1 %3403, %v1359_v44   ;;  %1556 = vperm.xlu0 %3402, %v1355_v45   ;;  %v3967_v9 = vld [vmem:[%s575_s11] sm:$0xff]  ;;  %v615_v10 = vadd.f32 %v614_v61, %v606_v52  ;;  %v1633_v44 = vld [vmem:[%s5964_s6 + $0x30] sm:$0xff]  ;;  %v4028_v52 = vunpack.c.l.bf16 %v4004_v32 }
  0x61   : > { %v3945_v1 = vunpack.c.l.bf16 %v3933_v60  ;;  %v718_v3 = vmul.f32 %v3927_v58, %v3893_v46  ;;  %v770_v5 = vmul.f32 %v3927_v58, %v3927_v58  ;;  %v3962_v7 = vld [vmem:[%s3910_s26 + $0x60] sm:$0xff]  ;;  %v596_v14 = vunpack.c.l.bf16 %v3967_v9 }
  0x62   : > { %v726_v11 = vmul.f32 %v3936_v62, %v3899_v48  ;;  %v778_v16 = vmul.f32 %v3936_v62, %v3936_v62  ;;  %1546 = vperm.xlu2 %3404, %v1353_v2   ;;  %v616_v18 = vadd.f32 %v615_v10, %v610_v55  ;;  %v3982_v20 = vunpack.c.l.bf16 %v3962_v7  ;;  %v3994_v26 = vld [vmem:[%s3910_s26 + $0x80] sm:$0xff] }
  0x63   : > { %v734_v15 = vadd.f32 %v722_v4, %v718_v3  ;;  %v786_v19 = vadd.f32 %v774_v6, %v770_v5  ;;  %v847_v23 = vmul.f32 %v3945_v1, %v3893_v46  ;;  %v899_v25 = vmul.f32 %v3945_v1, %v3945_v1  ;;  %1152 = vst [vmem:[#allocation1] ss:$2 sm:$0xff] %v596_v14  ;;  %v4014_v38 = vld [vmem:[%s3910_s26 + $0xa0] sm:$0xff] }
  0x64   : > { %v617_v28 = vrot.slane %v616_v18, 4  ;;  %v855_v30 = vmul.f32 %v3982_v20, %v3899_v48  ;;  %v859_v31 = vmul.f32 %v3985_v21, %v3902_v49  ;;  %v907_v37 = vmul.f32 %v3982_v20, %v3982_v20 }
  0x65   : > { %v735_v22 = vadd.f32 %v734_v15, %v726_v11  ;;  %v787_v29 = vadd.f32 %v786_v19, %v778_v16  ;;  %v863_v35 = vadd.f32 %v851_v24, %v847_v23  ;;  %v911_v42 = vmul.f32 %v3985_v21, %v3985_v21  ;;  %v1631_v24 = vld [vmem:[%s5964_s6 + $0x20] sm:$0xff] }
  0x66   : > { %v618_v40 = vadd.f32 %v617_v28, %v616_v18  ;;  %v4022_v43 = vunpack.c.l.bf16 %v3994_v26  ;;  %v915_v51 = vadd.f32 %v903_v36, %v899_v25  ;;  %v4031_v2 = vunpack.c.l.bf16 %v4014_v38 }
  0x67   : > { %v736_v34 = vadd.f32 %v735_v22, %v730_v12  ;;  %v788_v41 = vadd.f32 %v787_v29, %v782_v17  ;;  %v864_v50 = vadd.f32 %v863_v35, %v855_v30  ;;  %v4034_v3 = vunpack.c.l.bf16 %v4017_v39  ;;  %v1632_v29 = vld [vmem:[%s5964_s6 + $0x28] sm:$0xff] }
  0x68   : > { %1582 = vperm.xlu1 %3403, %v1357_v27   ;;  %1577 = vperm.xlu0 %3402, %v1356_v33   ;;  %v619_v55 = vrot.slane %v618_v40, 2  ;;  %v916_v6 = vadd.f32 %v915_v51, %v907_v37  ;;  %v976_v10 = vmul.f32 %v4022_v43, %v3893_v46  ;;  %v980_v14 = vmul.f32 %v4028_v52, %v3896_v47  ;;  %v1634_v47 = vld [vmem:[%s5964_s6 + $0x38] sm:$0xff] }
  0x69   : > { %v737_v45 = vrot.slane %v736_v34, 4  ;;  %v789_v61 = vrot.slane %v788_v41, 4  ;;  %v865_v5 = vadd.f32 %v864_v50, %v859_v31  ;;  %v984_v15 = vmul.f32 %v4031_v2, %v3899_v48  ;;  %v4070_v50 = vld [vmem:[%s3890_s13 + $0x48] sm:$0xff] }
  0x6a   : > { %1667 = vperm.xlu2 %3404, %v1633_v44   ;;  %v620_v11 = vadd.f32 %v619_v55, %v618_v40  ;;  %v917_v18 = vadd.f32 %v916_v6, %v911_v42  ;;  %v988_v22 = vmul.f32 %v4034_v3, %v3902_v49  ;;  %v992_v23 = vadd.f32 %v980_v14, %v976_v10  ;;  %v4064_v44 = vld [vmem:[%s3890_s13 + $0x8] sm:$0xff]  ;;  %v1630_v14 = vld [vmem:[%s5964_s6 + $0x18] sm:$0xff] }
  0x6b   : > { %v738_v4 = vadd.f32 %v737_v45, %v736_v34  ;;  %v790_v12 = vadd.f32 %v789_v61, %v788_v41  ;;  %v866_v17 = vrot.slane %v865_v5, 4  ;;  %v1028_v46 = vmul.f32 %v4022_v43, %v4022_v43  ;;  %v4067_v45 = vld [vmem:[%s3890_s13 + $0x28] sm:$0xff] }
  0x6c   : > { %v621_v19 = vrot.slane %v620_v11, 1  ;;  %v918_v25 = vrot.slane %v917_v18, 4  ;;  %v1032_v27 = vmul.f32 %v4028_v52, %v4028_v52  ;;  %v993_v49 = vadd.f32 %v992_v23, %v984_v15  ;;  %v4074_v6 = vld [vmem:[%s3890_s13 + $0x68] sm:$0xff] }
  0x6d   : > { %v739_v16 = vrot.slane %v738_v4, 2  ;;  %v791_v48 = vrot.slane %v790_v12, 2  ;;  %v867_v31 = vadd.f32 %v866_v17, %v865_v5  ;;  %v1036_v34 = vmul.f32 %v4031_v2, %v4031_v2  ;;  %v1629_v15 = vld [vmem:[%s5964_s6 + $0x10] sm:$0xff] }
  0x6e   : > { %v622_v28 = vadd.f32 %v621_v19, %v620_v11  ;;  %v919_v33 = vadd.f32 %v918_v25, %v917_v18  ;;  %v994_v36 = vadd.f32 %v993_v49, %v988_v22  ;;  %v1044_v37 = vadd.f32 %v1032_v27, %v1028_v46  ;;  %v1627_v46 = vld [vmem:[%s5964_s6] sm:$0xff] }
  0x6f   : > { %v740_v30 = vadd.f32 %v739_v16, %v738_v4  ;;  %v792_v40 = vadd.f32 %v791_v48, %v790_v12  ;;  %v1040_v42 = vmul.f32 %v4034_v3, %v4034_v3  ;;  %v868_v61 = vrot.slane %v867_v31, 2 }
  0x70   : > { %1657 = vperm.xlu1 %3403, %v1631_v24   ;;  %1672 = vperm.xlu0 %3402, %v1634_v47   ;;  %v4059_v35 = vmax.f32 %v622_v28, 1e-24  ;;  %v920_v41 = vrot.slane %v919_v33, 2  ;;  %v995_v51 = vrot.slane %v994_v36, 4  ;;  %v1045_v5 = vadd.f32 %v1044_v37, %v1036_v34 }
  0x71   : > { %v741_v55 = vrot.slane %v740_v30, 1  ;;  %v599_v10 = vmul.f32 %v4064_v44, %v4064_v44  ;;  %v603_v11 = vmul.f32 %v4067_v45, %v4067_v45  ;;  %v607_v12 = vmul.f32 %v4070_v50, %v4070_v50 }
  0x72   : > { %1662 = vperm.xlu2 %3404, %v1632_v29   ;;  %3405 = vrsqrt.f32 %v4059_v35  ;;  %v921_v4 = vadd.f32 %v920_v41, %v919_v33  ;;  %v793_v16 = vrot.slane %v792_v40, 1  ;;  %v1046_v17 = vadd.f32 %v1045_v5, %v1040_v42 }
  0x73   : > { %v996_v18 = vadd.f32 %v995_v51, %v994_v36  ;;  %v611_v19 = vmul.f32 %v4074_v6, %v4074_v6  ;;  %v623_v22 = vadd.f32 %v603_v11, %v599_v10  ;;  %v4091_v23 = vunpack.c.h.bf16 %v3913_v53  ;;  %v2676_v10 = vld [vmem:[%s5966_s8] sm:$0xff]  ;;  %v1628_v11 = vld [vmem:[%s5964_s6 + $0x8] sm:$0xff] }
  0x74   : > { %v4096_v24 = vadd.f32 %v741_v55, %v740_v30  ;;  %v869_v47 = vadd.f32 %v868_v61, %v867_v31  ;;  %v922_v48 = vrot.slane %v921_v4, 1  ;;  %v1047_v25 = vrot.slane %v1046_v17, 4 }
  0x75   : > { %6082 = vst [vmem:[#allocation7_spill] sm:$0xff] %v4091_v23  ;;  %v624_v28 = vadd.f32 %v623_v22, %v607_v12  ;;  %v4101_v49 = vunpack.c.h.bf16 %v3916_v54  ;;  %v4104_v53 = vunpack.c.h.bf16 %v3921_v56  ;;  %v719_v29 = vmul.f32 %v4091_v23, %v4064_v44 }
  0x76   : > { %v794_v31 = vadd.f32 %v793_v16, %v792_v40  ;;  %v1048_v33 = vadd.f32 %v1047_v25, %v1046_v17  ;;  %v997_v34 = vrot.slane %v996_v18, 2  ;;  %v870_v56 = vrot.slane %v869_v47, 1 }
  0x77   : > { %6083 = vst [vmem:[#allocation8_spill] sm:$0xff] %v4101_v49  ;;  %v625_v36 = vadd.f32 %v624_v28, %v611_v19  ;;  %v723_v37 = vmul.f32 %v4101_v49, %v4067_v45  ;;  %v727_v54 = vmul.f32 %v4104_v53, %v4070_v50  ;;  %v923_v41 = vadd.f32 %v922_v48, %v921_v4  ;;  %v2677_v19 = vld [vmem:[%s5966_s8 + $0x8] sm:$0xff] }
  0x78   : > { %v4098_v27 = vpop.eup %3405  ;;  %1652 = vperm.xlu1 %3403, %v1630_v14   ;;  %1647 = vperm.xlu0 %3402, %v1629_v15   ;;  %6084 = vst [vmem:[#allocation9_spill] sm:$0xff] %v4104_v53  ;;  %v1049_v42 = vrot.slane %v1048_v33, 2  ;;  %v4115_v51 = vunpack.c.h.bf16 %v3924_v57  ;;  %v771_v5 = vmul.f32 %v4091_v23, %v4091_v23  ;;  %v775_v57 = vmul.f32 %v4101_v49, %v4101_v49 }
  0x79   : > { %v655_v30 = vmul.f32 %v4098_v27, %v4059_v35  ;;  %v626_v40 = vrot.slane %v625_v36, 4  ;;  %v743_v61 = vadd.f32 %v723_v37, %v719_v29  ;;  %v779_v12 = vmul.f32 %v4104_v53, %v4104_v53 }
  0x7a   : > { %1637 = vperm.xlu2 %3404, %v1627_v46   ;;  %6085 = vst [vmem:[#allocation10_spill] sm:$0xff] %v4115_v51  ;;  %v1050_v4 = vadd.f32 %v1049_v42, %v1048_v33  ;;  %v998_v14 = vadd.f32 %v997_v34, %v996_v18  ;;  %v731_v16 = vmul.f32 %v4115_v51, %v4074_v6  ;;  %v4138_v25 = vunpack.c.h.bf16 %v3933_v60 }
  0x7b   : > { %v656_v55 = vmul.f32 %v4098_v27, %v655_v30  ;;  %v627_v15 = vadd.f32 %v626_v40, %v625_v36  ;;  %v744_v17 = vadd.f32 %v743_v61, %v727_v54  ;;  %v783_v46 = vmul.f32 %v4115_v51, %v4115_v51 }
  0x7c   : > { %v1051_v22 = vrot.slane %v1050_v4, 1  ;;  %v795_v48 = vadd.f32 %v775_v57, %v771_v5  ;;  %6086 = vst [vmem:[#allocation11_spill] sm:$0xff] %v4138_v25  ;;  %v1090_v28 = vsel %vm1080_vm0, %v794_v31, %v923_v41  ;;  %v4142_v30 = vunpack.c.h.bf16 %v3942_v0 }
  0x7d   : > { %v657_v18 = vmul.f32 0.5, %v656_v55  ;;  %v628_v29 = vrot.slane %v627_v15, 2  ;;  %v4145_v36 = vunpack.c.h.bf16 %v3962_v7  ;;  %v848_v37 = vmul.f32 %v4138_v25, %v4064_v44 }
  0x7e   : > { %6087 = vst [vmem:[#allocation12_spill] sm:$0xff] %v4142_v30  ;;  %v1052_v33 = vadd.f32 %v1051_v22, %v1050_v4  ;;  %v796_v34 = vadd.f32 %v795_v48, %v779_v12  ;;  %v871_v60 = vadd.f32 %v870_v56, %v869_v47  ;;  %v745_v42 = vadd.f32 %v744_v17, %v731_v16  ;;  %v2679_v47 = vld [vmem:[%s5966_s8 + $0x18] sm:$0xff]  ;;  %v2678_v56 = vld [vmem:[%s5966_s8 + $0x10] sm:$0xff] }
  0x7f   : > { %6088 = vst [vmem:[#allocation13_spill] sm:$0xff] %v4145_v36  ;;  %v629_v54 = vadd.f32 %v628_v29, %v627_v15  ;;  %v852_v55 = vmul.f32 %v4142_v30, %v4067_v45  ;;  %v4153_v0 = vunpack.c.h.bf16 %v3965_v8  ;;  %v856_v7 = vmul.f32 %v4145_v36, %v4070_v50  ;;  %v2809_v15 = vld [vmem:[%s5967_s9] sm:$0xff] }
  0x80   : > { %2682 = vperm.xlu1 %3403, %v2676_v10   ;;  %1642 = vperm.xlu0 %3402, %v1628_v11   ;;  %v1094_v31 = vsel %vm1085_vm1, %v1090_v28, %v1052_v33  ;;  %v797_v41 = vadd.f32 %v796_v34, %v783_v46  ;;  %v658_v40 = vsub.f32 1.5, %v657_v18  ;;  %v999_v61 = vrot.slane %v998_v14, 1 }
  0x81   : > { %6089 = vst [vmem:[#allocation14_spill] sm:$0xff] %v4153_v0  ;;  %v4157_v5 = vmax.f32 %v1094_v31, 1e-24  ;;  %v630_v10 = vrot.slane %v629_v54, 1  ;;  %v860_v8 = vmul.f32 %v4153_v0, %v4074_v6  ;;  %v872_v11 = vadd.f32 %v852_v55, %v848_v37 }
  0x82   : > { %2687 = vperm.xlu2 %3404, %v2677_v19   ;;  %v900_v4 = vmul.f32 %v4138_v25, %v4138_v25  ;;  %v904_v57 = vmul.f32 %v4142_v30, %v4142_v30  ;;  %vm660_vm2 = vweird.f32 %v4059_v35  ;;  %vm661_vm3 = vweird.f32 %v4098_v27 }
  0x83   : > { %3407 = vrsqrt.f32 %v4157_v5  ;;  %v631_v12 = vadd.f32 %v630_v10, %v629_v54  ;;  %v746_v16 = vrot.slane %v745_v42, 4  ;;  %v798_v17 = vrot.slane %v797_v41, 4  ;;  %vm4193_vm4 = vmor %vm660_vm2, %vm661_vm3 }
  0x84   : > { %v873_v19 = vadd.f32 %v872_v11, %v856_v7  ;;  %v908_v22 = vmul.f32 %v4145_v36, %v4145_v36  ;;  %v1081_v46 = vsel %vm1080_vm0, %v4096_v24, %v871_v60  ;;  %v912_v18 = vmul.f32 %v4153_v0, %v4153_v0  ;;  %v2812_v11 = vld [vmem:[%s5967_s9 + $0x18] sm:$0xff] }
  0x85   : > { %v4181_v48 = vmax.f32 %v631_v12, 1e-24  ;;  %v924_v28 = vadd.f32 %v904_v57, %v900_v4  ;;  %v659_v29 = vmul.f32 %v4098_v27, %v658_v40  ;;  %v1000_v33 = vadd.f32 %v999_v61, %v998_v14  ;;  %v4251_v24 = vld [vmem:[%s3890_s13 + $0x30] sm:$0xff] }
  0x86   : > { %v874_v34 = vadd.f32 %v873_v19, %v860_v8  ;;  %v4187_v37 = vunpack.c.h.bf16 %v3994_v26  ;;  %v4199_v54 = vunpack.c.h.bf16 %v4004_v32  ;;  %v4202_v14 = vunpack.c.h.bf16 %v4014_v38  ;;  %v2811_v38 = vld [vmem:[%s5967_s9 + $0x10] sm:$0xff] }
  0x87   : > { %3409 = vrsqrt.f32 %v4181_v48  ;;  %v925_v60 = vadd.f32 %v924_v28, %v908_v22  ;;  %v747_v26 = vadd.f32 %v746_v16, %v745_v42  ;;  %v799_v55 = vadd.f32 %v798_v17, %v797_v41 }
  0x88   : > { %2697 = vperm.xlu1 %3403, %v2679_v47   ;;  %2692 = vperm.xlu0 %3402, %v2678_v56   ;;  %6090 = vst [vmem:[#allocation15_spill] sm:$0xff] %v4187_v37  ;;  %v875_v31 = vrot.slane %v874_v34, 4  ;;  %v977_v7 = vmul.f32 %v4187_v37, %v4064_v44  ;;  %v4209_v61 = vunpack.c.h.bf16 %v4017_v39  ;;  %v981_v10 = vmul.f32 %v4199_v54, %v4067_v45  ;;  %v2810_v44 = vld [vmem:[%s5967_s9 + $0x8] sm:$0xff] }
  0x89   : > { %6093 = vst [vmem:[#allocation16_spill] sm:$0xff] %v4199_v54  ;;  %v4206_v35 = vpop.eup %3407  ;;  %v926_v40 = vadd.f32 %v925_v60, %v912_v18  ;;  %v985_v32 = vmul.f32 %v4202_v14, %v4070_v50  ;;  %v663_v42 = vsel %vm4193_vm4, %v4098_v27, %v659_v29  ;;  %v1086_v39 = vsel %vm1085_vm1, %v1081_v46, %v1000_v33 }
  0x8a   : > { %2991 = vperm.xlu2 %3404, %v2809_v15   ;;  %6094 = vst [vmem:[#allocation17_spill] sm:$0xff] %v4202_v14  ;;  %v1103_v45 = vmul.f32 %v4206_v35, %v4157_v5  ;;  %v876_v41 = vadd.f32 %v875_v31, %v874_v34  ;;  %v989_v50 = vmul.f32 %v4209_v61, %v4074_v6  ;;  %vm1108_vm5 = vweird.f32 %v4157_v5  ;;  %v4248_v34 = vld [vmem:[%s3890_s13 + $0x10] sm:$0xff]  ;;  %v2813_v5 = vld [vmem:[%s5968_s10] sm:$0xff] }
  0x8b   : > { %6095 = vst [vmem:[#allocation18_spill] sm:$0xff] %v4209_v61  ;;  %v927_v47 = vrot.slane %v926_v40, 4  ;;  %v1001_v56 = vadd.f32 %v981_v10, %v977_v7  ;;  %v1029_v8 = vmul.f32 %v4187_v37, %v4187_v37  ;;  %v748_v4 = vrot.slane %v747_v26, 2 }
  0x8c   : > { %v1104_v27 = vmul.f32 %v4206_v35, %v1103_v45  ;;  %v1033_v57 = vmul.f32 %v4199_v54, %v4199_v54  ;;  %v800_v6 = vrot.slane %v799_v55, 2  ;;  %v1037_v17 = vmul.f32 %v4202_v14, %v4202_v14  ;;  %v4261_v45 = vld [vmem:[%s3890_s13 + $0x50] sm:$0xff] }
  0x8d   : > { %v4238_v12 = vpop.eup %3409  ;;  %v928_v15 = vadd.f32 %v927_v47, %v926_v40  ;;  %v1002_v16 = vadd.f32 %v1001_v56, %v985_v32  ;;  %vm1109_vm6 = vweird.f32 %v4206_v35  ;;  %v877_v46 = vrot.slane %v876_v41, 2  ;;  %v2814_v47 = vld [vmem:[%s5968_s10 + $0x8] sm:$0xff] }
  0x8e   : > { %v1105_v19 = vmul.f32 0.5, %v1104_v27  ;;  %v665_v22 = vmul.f32 %v4238_v12, %v4181_v48  ;;  %v1041_v29 = vmul.f32 %v4209_v61, %v4209_v61  ;;  %v1053_v33 = vadd.f32 %v1033_v57, %v1029_v8  ;;  %vm4255_vm7 = vmor %vm1108_vm5, %vm1109_vm6  ;;  %v4275_v8 = vld [vmem:[%s3890_s13 + $0x70] sm:$0xff]  ;;  %v2815_v27 = vld [vmem:[%s5968_s10 + $0x10] sm:$0xff] }
  0x8f   : > { %v929_v18 = vrot.slane %v928_v15, 2  ;;  %v1003_v28 = vadd.f32 %v1002_v16, %v989_v50  ;;  %v1142_v31 = vmul.f32 %v1086_v39, %v663_v42  ;;  %v749_v7 = vadd.f32 %v748_v4, %v747_v26  ;;  %v1155_v57 = vld.sshfl [vmem:[#allocation1] sm:$0xff pattern:$0x75316420] }
  0x90   : > { %3001 = vperm.xlu1 %3403, %v2811_v38   ;;  %2996 = vperm.xlu0 %3402, %v2810_v44   ;;  %v1106_v60 = vsub.f32 1.5, %v1105_v19  ;;  %v666_v10 = vmul.f32 %v4238_v12, %v665_v22  ;;  %v801_v32 = vadd.f32 %v800_v6, %v799_v55  ;;  %v1054_v44 = vadd.f32 %v1053_v33, %v1037_v17  ;;  %v4290_v22 = vld [vmem:[%s3910_s26 + $0x18] sm:$0xff] }
  0x91   : > { %v1004_v38 = vrot.slane %v1003_v28, 4  ;;  %v930_v42 = vadd.f32 %v929_v18, %v928_v15  ;;  %v600_v39 = vmul.f32 %v4248_v34, %v4248_v34  ;;  %v604_v55 = vmul.f32 %v4251_v24, %v4251_v24  ;;  %v4287_v15 = vld [vmem:[%s3910_s26 + $0x8] sm:$0xff] }
  0x92   : > { %3006 = vperm.xlu2 %3404, %v2812_v11   ;;  %v1107_v26 = vmul.f32 %v4206_v35, %v1106_v60  ;;  %v878_v50 = vadd.f32 %v877_v46, %v876_v41  ;;  %v1055_v56 = vadd.f32 %v1054_v44, %v1041_v29  ;;  %v597_v11 = vunpack.c.h.bf16 %v3967_v9 }
  0x93   : > { %v1005_v6 = vadd.f32 %v1004_v38, %v1003_v28  ;;  %v608_v41 = vmul.f32 %v4261_v45, %v4261_v45  ;;  %v667_v9 = vmul.f32 0.5, %v666_v10  ;;  %v750_v17 = vrot.slane %v749_v7, 1  ;;  %v4300_v38 = vld [vmem:[%s3910_s26 + $0x28] sm:$0xff] }
  0x94   : > { %v1111_v4 = vsel %vm4255_vm7, %v4206_v35, %v1107_v26  ;;  %v1056_v19 = vrot.slane %v1055_v56, 4  ;;  %1154 = vst [vmem:[#allocation1 + $0x10] ss:$2 sm:$0xff] %v597_v11  ;;  %v802_v46 = vrot.slane %v801_v32, 1  ;;  %v931_v35 = vrot.slane %v930_v42, 1 }
  0x95   : > { %v1146_v16 = vmul.f32 %v1142_v31, %v1111_v4  ;;  %v612_v18 = vmul.f32 %v4275_v8, %v4275_v8  ;;  %v632_v28 = vadd.f32 %v604_v55, %v600_v39  ;;  %v879_v33 = vrot.slane %v878_v50, 1  ;;  %v2816_v55 = vld [vmem:[%s5968_s10 + $0x18] sm:$0xff] }
  0x96   : > { %v1057_v60 = vadd.f32 %v1056_v19, %v1055_v56  ;;  %v4297_v31 = vunpack.c.l.bf16 %v4287_v15  ;;  %v1006_v40 = vrot.slane %v1005_v6, 2  ;;  %v4303_v44 = vunpack.c.l.bf16 %v4290_v22 }
  0x97   : > { %v4294_v29 = vmul.f32 %v1155_v57, %v1146_v16  ;;  %v633_v10 = vadd.f32 %v632_v28, %v608_v41  ;;  %v4307_v26 = vadd.f32 %v750_v17, %v749_v7  ;;  %v803_v11 = vadd.f32 %v802_v46, %v801_v32  ;;  %v4315_v16 = vld [vmem:[%s3910_s26 + $0x38] sm:$0xff]  ;;  %v4327_v17 = vld [vmem:[%s3910_s26 + $0x48] sm:$0xff] }
  0x98   : > { %3032 = vperm.xlu1 %3403, %v2814_v47   ;;  %3027 = vperm.xlu0 %3402, %v2813_v5   ;;  %6098 = vst [vmem:[#allocation19_spill] sm:$0xff] %v4297_v31  ;;  %v668_v5 = vsub.f32 1.5, %v667_v9  ;;  %v1058_v39 = vrot.slane %v1057_v60, 2  ;;  %v4312_v57 = vadd.f32 %v879_v33, %v878_v50  ;;  %v4318_v19 = vunpack.c.l.bf16 %v4300_v38 }
  0x99   : > { %6099 = vst [vmem:[#allocation20_spill] sm:$0xff] %v4303_v44  ;;  %v1168_v47 = vsel %vm1167_vm8, %v4294_v29, -inf  ;;  %v634_v4 = vadd.f32 %v633_v10, %v612_v18  ;;  %v772_v7 = vmul.f32 %v4297_v31, %v4297_v31  ;;  %vm670_vm9 = vweird.f32 %v4181_v48  ;;  %v4341_v10 = vld [vmem:[%s3910_s26 + $0x58] sm:$0xff] }
  0x9a   : > { %3037 = vperm.xlu2 %3404, %v2815_v27   ;;  %v1169_v56 = vrot.slane %v1168_v47, 4  ;;  %v932_v27 = vadd.f32 %v931_v35, %v930_v42  ;;  %v1059_v41 = vadd.f32 %v1058_v39, %v1057_v60  ;;  %6100 = vst [vmem:[#allocation21_spill] sm:$0xff] %v4318_v19  ;;  %vm671_vm10 = vweird.f32 %v4238_v12 }
  0x9b   : > { %v1007_v32 = vadd.f32 %v1006_v40, %v1005_v6  ;;  %v635_v42 = vrot.slane %v634_v4, 4  ;;  %v776_v50 = vmul.f32 %v4303_v44, %v4303_v44  ;;  %v4330_v46 = vmul.f32 %v4238_v12, %v668_v5  ;;  %vm4390_vm11 = vmor %vm670_vm9, %vm671_vm10 }
  0x9c   : > { %v1170_v9 = vmax.f32 %v1168_v47, %v1169_v56  ;;  %v1060_v35 = vrot.slane %v1059_v41, 1  ;;  %v720_v18 = vmul.f32 %v4297_v31, %v4248_v34  ;;  %v724_v28 = vmul.f32 %v4303_v44, %v4251_v24 }
  0x9d   : > { %v1091_v33 = vsel %vm1080_vm0, %v803_v11, %v932_v27  ;;  %v636_v60 = vadd.f32 %v635_v42, %v634_v4  ;;  %v4338_v40 = vunpack.c.l.bf16 %v4315_v16  ;;  %v780_v5 = vmul.f32 %v4318_v19, %v4318_v19  ;;  %v4354_v27 = vld [vmem:[%s3910_s26 + $0x78] sm:$0xff] }
  0x9e   : > { %v1171_v6 = vrot.slane %v1170_v9, 2  ;;  %v1061_v47 = vadd.f32 %v1060_v35, %v1059_v41  ;;  %v804_v39 = vadd.f32 %v776_v50, %v772_v7  ;;  %v4349_v56 = vunpack.c.l.bf16 %v4327_v17 }
  0x9f   : > { %6101 = vst [vmem:[#allocation22_spill] sm:$0xff] %v4338_v40  ;;  %v1008_v31 = vrot.slane %v1007_v32, 1  ;;  %v637_v61 = vrot.slane %v636_v60, 2  ;;  %v728_v11 = vmul.f32 %v4318_v19, %v4261_v45  ;;  %v752_v41 = vadd.f32 %v724_v28, %v720_v18 }
  0xa0   : > { %3042 = vperm.xlu0 %3402, %v2816_v55   ;;  %v4346_v55 = vld [vmem:[%s3910_s26 + $0x68] sm:$0xff]  ;;  %6102 = vst [vmem:[#allocation23_spill] sm:$0xff] %v4349_v56  ;;  %v1172_v44 = vmax.f32 %v1170_v9, %v1171_v6  ;;  %v1095_v4 = vsel %vm1085_vm1, %v1091_v33, %v1061_v47  ;;  %v4358_v42 = vunpack.c.l.bf16 %v4341_v10  ;;  %v849_v7 = vmul.f32 %v4349_v56, %v4248_v34 }
  0xa1   : > { %v4362_v35 = vmax.f32 %v1095_v4, 1e-24  ;;  %v638_v9 = vadd.f32 %v637_v61, %v636_v60  ;;  %v4365_v6 = vunpack.c.l.bf16 %v4346_v55  ;;  %v784_v19 = vmul.f32 %v4338_v40, %v4338_v40 }
  0xa2   : > { %6103 = vst [vmem:[#allocation24_spill] sm:$0xff] %v4358_v42  ;;  %v1173_v50 = vrot.slane %v1172_v44, 1  ;;  %v805_v14 = vadd.f32 %v804_v39, %v780_v5  ;;  %v4370_v33 = vunpack.c.l.bf16 %v4354_v27  ;;  %v853_v18 = vmul.f32 %v4358_v42, %v4251_v24 }
  0xa3   : > { %6104 = vst [vmem:[#allocation25_spill] sm:$0xff] %v4365_v6  ;;  %3411 = vrsqrt.f32 %v4362_v35  ;;  %v639_v47 = vrot.slane %v638_v9, 1  ;;  %v857_v61 = vmul.f32 %v4365_v6, %v4261_v45  ;;  %v732_v60 = vmul.f32 %v4338_v40, %v4275_v8 }
  0xa4   : > { %6105 = vst [vmem:[#allocation26_spill] sm:$0xff] %v4370_v33  ;;  %v1174_v28 = vmax.f32 %v1172_v44, %v1173_v50  ;;  %v753_v4 = vadd.f32 %v752_v41, %v728_v11  ;;  %v881_v5 = vadd.f32 %v853_v18, %v849_v7  ;;  %v901_v39 = vmul.f32 %v4349_v56, %v4349_v56 }
  0xa5   : > { %v640_v44 = vadd.f32 %v639_v47, %v638_v9  ;;  %v905_v50 = vmul.f32 %v4358_v42, %v4358_v42  ;;  %v909_v37 = vmul.f32 %v4365_v6, %v4365_v6  ;;  %v1009_v41 = vadd.f32 %v1008_v31, %v1007_v32  ;;  %v4399_v6 = vld [vmem:[%s3910_s26 + $0x88] sm:$0xff]  ;;  %v4402_v42 = vld [vmem:[%s3910_s26 + $0x98] sm:$0xff] }
  0xa6   : > { %v1196_v54 = vsub.f32 %v4294_v29, %v1174_v28  ;;  %v806_v7 = vadd.f32 %v805_v14, %v784_v19  ;;  %v861_v29 = vmul.f32 %v4370_v33, %v4275_v8  ;;  %v882_v18 = vadd.f32 %v881_v5, %v857_v61  ;;  %v4410_v14 = vld [vmem:[%s3910_s26 + $0xa8] sm:$0xff] }
  0xa7   : > { %v913_v28 = vmul.f32 %v4370_v33, %v4370_v33  ;;  %v933_v47 = vadd.f32 %v905_v50, %v901_v39  ;;  %v1082_v48 = vsel %vm1080_vm0, %v4307_v26, %v4312_v57  ;;  %v4407_v56 = vmax.f32 %v640_v44, 1e-24  ;;  %6108 = vst [vmem:[#allocation27_spill] sm:$0xff] %v4410_v14 }
  0xa8   : > { %v1200_v9 = vmul.f32 1.442695, %v1196_v54  ;;  %v673_v54 = vsel %vm4390_vm11, %v4238_v12, %v4330_v46  ;;  %v754_v19 = vadd.f32 %v753_v4, %v732_v60  ;;  %v807_v5 = vrot.slane %v806_v7, 4 }
  0xa9   : > { %v3412_v31 = vpop.eup %3411  ;;  %v934_v32 = vadd.f32 %v933_v47, %v909_v37  ;;  %v4418_v39 = vunpack.c.l.bf16 %v4399_v6  ;;  %v4421_v26 = vunpack.c.l.bf16 %v4402_v42  ;;  %v1087_v57 = vsel %vm1085_vm1, %v1082_v48, %v1009_v41  ;;  %v4429_v37 = vld [vmem:[%s3910_s26 + $0xb8] sm:$0xff]  ;;  %s5810_s26 = scalar_lea.vmem [#allocation4], %s3877_s30  ;;  %s3331_s30 = sshll.u32 (%p3765_p6), %s3637_s20, 5 }
  0xaa   : > { %3413 = vpow2.f32 %v1200_v9  ;;  %v1113_v61 = vmul.f32 %v3412_v31, %v4362_v35  ;;  %v883_v44 = vadd.f32 %v882_v18, %v861_v29  ;;  %v4425_v9 = vunpack.c.l.bf16 %v4410_v14  ;;  %6112 = vst [vmem:[#allocation31_spill] sm:$0xff] %v4429_v37  ;;  %s3086_s11 = sadd.s32 (%p3765_p6), %s3331_s30, %s3872_s16 }
  0xab   : > { %6109 = vst [vmem:[#allocation28_spill] sm:$0xff] %v4418_v39  ;;  %v935_v50 = vadd.f32 %v934_v32, %v913_v28  ;;  %3415 = vrsqrt.f32 %v4407_v56  ;;  %v978_v12 = vmul.f32 %v4418_v39, %v4248_v34  ;;  %v982_v46 = vmul.f32 %v4421_v26, %v4251_v24  ;;  %s3332_s25 = sshll.u32 (%p3765_p6), %s3086_s11, 3 }
  0xac   : > { %6110 = vst [vmem:[#allocation29_spill] sm:$0xff] %v4421_v26  ;;  %v1114_v11 = vmul.f32 %v3412_v31, %v1113_v61  ;;  %vm1118_vm12 = vweird.f32 %v4362_v35  ;;  %v755_v60 = vrot.slane %v754_v19, 4  ;;  %v986_v41 = vmul.f32 %v4425_v9, %v4261_v45  ;;  %s3088_s12 = scalar_lea.vmem (%p3765_p6), %s6351_s29, %s3332_s25 }
  0xad   : > { %6111 = vst [vmem:[#allocation30_spill] sm:$0xff] %v4425_v9  ;;  %v936_v4 = vrot.slane %v935_v50, 4  ;;  %vm1119_vm13 = vweird.f32 %v3412_v31  ;;  %v808_v18 = vadd.f32 %v807_v5, %v806_v7  ;;  %v1010_v28 = vadd.f32 %v982_v46, %v978_v12  ;;  %v4476_v7 = vld [vmem:[%s3890_s13 + $0x58] sm:$0xff] }
  0xae   : > { %v1115_v29 = vmul.f32 0.5, %v1114_v11  ;;  %v884_v48 = vrot.slane %v883_v44, 4  ;;  %v4441_v32 = vunpack.c.l.bf16 %v4429_v37  ;;  %v1030_v34 = vmul.f32 %v4418_v39, %v4418_v39  ;;  %vm4451_vm14 = vmor %vm1118_vm12, %vm1119_vm13 }
  0xaf   : > { %v1034_v24 = vmul.f32 %v4421_v26, %v4421_v26  ;;  %v937_v11 = vadd.f32 %v936_v4, %v935_v50  ;;  %v1143_v5 = vmul.f32 %v1087_v57, %v673_v54  ;;  %v1011_v46 = vadd.f32 %v1010_v28, %v986_v41  ;;  %v1156_v57 = vld.sshfl [vmem:[#allocation1 + $0x8] sm:$0xff pattern:$0x75316420] }
  0xb0   : > { %v4438_v47 = vpop.eup %3413  ;;  %6113 = vst [vmem:[#allocation32_spill] sm:$0xff] %v4441_v32  ;;  %v1116_v45 = vsub.f32 1.5, %v1115_v29  ;;  %v990_v12 = vmul.f32 %v4441_v32, %v4275_v8  ;;  %v756_v40 = vadd.f32 %v755_v60, %v754_v19  ;;  %v809_v29 = vrot.slane %v808_v18, 2 }
  0xb1   : > { %v1208_v61 = vsel %vm1167_vm8, %v4438_v47, 0.0  ;;  %v4457_v39 = vpop.eup %3415  ;;  %v1038_v50 = vmul.f32 %v4425_v9, %v4425_v9  ;;  %v885_v4 = vadd.f32 %v884_v48, %v883_v44  ;;  %v1062_v0 = vadd.f32 %v1034_v24, %v1030_v34 }
  0xb2   : > { %v1209_v33 = vrot.slane %v1208_v61, 4  ;;  %v1117_v26 = vmul.f32 %v3412_v31, %v1116_v45  ;;  %v938_v36 = vrot.slane %v937_v11, 2  ;;  %v1042_v8 = vmul.f32 %v4441_v32, %v4441_v32  ;;  %v4468_v45 = vld [vmem:[%s3890_s13 + $0x18] sm:$0xff] }
  0xb3   : > { %v675_v19 = vmul.f32 %v4457_v39, %v4407_v56  ;;  %v1012_v60 = vadd.f32 %v1011_v46, %v990_v12  ;;  %v757_v44 = vrot.slane %v756_v40, 2  ;;  %v810_v48 = vadd.f32 %v809_v29, %v808_v18 }
  0xb4   : > { %v1210_v35 = vadd.f32 %v1209_v33, %v1208_v61  ;;  %v1121_v54 = vsel %vm4451_vm14, %v3412_v31, %v1117_v26  ;;  %v4471_v33 = vld [vmem:[%s3890_s13 + $0x38] sm:$0xff]  ;;  %v1063_v34 = vadd.f32 %v1062_v0, %v1038_v50  ;;  %v3652_v26 = vmov 32.0  }
  0xb5   : > { %v1147_v28 = vmul.f32 %v1143_v5, %v1121_v54  ;;  %3417 = vrcp.f32 %v3652_v26  ;;  %v886_v61 = vrot.slane %v885_v4, 2  ;;  %v939_v5 = vadd.f32 %v938_v36, %v937_v11 }
  0xb6   : > { %v1211_v41 = vrot.slane %v1210_v35, 2  ;;  %v1064_v54 = vadd.f32 %v1063_v34, %v1042_v8  ;;  %v601_v12 = vmul.f32 %v4468_v45, %v4468_v45  ;;  %v605_v46 = vmul.f32 %v4471_v33, %v4471_v33 }
  0xb7   : > { %v4473_v24 = vmul.f32 %v1156_v57, %v1147_v28  ;;  %v676_v18 = vmul.f32 %v4457_v39, %v675_v19  ;;  %v1013_v29 = vrot.slane %v1012_v60, 4  ;;  %v4486_v57 = vld [vmem:[%s3890_s13 + $0x78] sm:$0xff]  ;;  %v609_v36 = vmul.f32 %v4476_v7, %v4476_v7 }
  0xb8   : > { %v1212_v31 = vadd.f32 %v1211_v41, %v1210_v35  ;;  %v1065_v35 = vrot.slane %v1064_v54, 4  ;;  %v758_v8 = vadd.f32 %v757_v44, %v756_v40  ;;  %v811_v41 = vrot.slane %v810_v48, 1 }
  0xb9   : > { %v1175_v0 = vsel %vm1167_vm8, %v4473_v24, -inf  ;;  %v887_v28 = vadd.f32 %v886_v61, %v885_v4  ;;  %v940_v26 = vrot.slane %v939_v5, 1  ;;  %v641_v30 = vadd.f32 %v605_v46, %v601_v12 }
  0xba   : > { %v1213_v32 = vrot.slane %v1212_v31, 1  ;;  %v1176_v50 = vrot.slane %v1175_v0, 4  ;;  %v1066_v9 = vadd.f32 %v1065_v35, %v1064_v54  ;;  %v677_v19 = vmul.f32 0.5, %v676_v18 }
  0xbb   : > { %v4490_v25 = vpop.eup %3417  ;;  %v1014_v51 = vadd.f32 %v1013_v29, %v1012_v60  ;;  %v613_v53 = vmul.f32 %v4486_v57, %v4486_v57  ;;  %v642_v37 = vadd.f32 %v641_v30, %v609_v36  ;;  %v759_v14 = vrot.slane %v758_v8, 1 }
  0xbc   : > { %v1214_v11 = vadd.f32 %v1213_v32, %v1212_v31  ;;  %v1177_v34 = vmax.f32 %v1175_v0, %v1176_v50  ;;  %v1067_v23 = vrot.slane %v1066_v9, 2  ;;  %v812_v32 = vadd.f32 %v811_v41, %v810_v48 }
  0xbd   : > { %v888_v44 = vrot.slane %v887_v28, 1  ;;  %v941_v4 = vadd.f32 %v940_v26, %v939_v5  ;;  %v1397_v61 = vmul.f32 32.0, %v4490_v25  ;;  %v678_v54 = vsub.f32 1.5, %v677_v19 }
  0xbe   : > { %3419 = vrcp.f32 %v1214_v11  ;;  %v1178_v49 = vrot.slane %v1177_v34, 2  ;;  %v1068_v31 = vadd.f32 %v1067_v23, %v1066_v9  ;;  %v1015_v12 = vrot.slane %v1014_v51, 2 }
  0xbf   : > { %v643_v46 = vadd.f32 %v642_v37, %v613_v53  ;;  %vm680_vm15 = vweird.f32 %v4407_v56  ;;  %vm681_vm2 = vweird.f32 %v4457_v39  ;;  %v760_v29 = vadd.f32 %v759_v14, %v758_v8 }
  0xc0   : > { %v1179_v40 = vmax.f32 %v1177_v34, %v1178_v49  ;;  %v1069_v18 = vrot.slane %v1068_v31, 1  ;;  %v1092_v23 = vsel %vm1080_vm0, %v812_v32, %v941_v4  ;;  %v1398_v9 = vsub.f32 1.0, %v1397_v61  ;;  %v3584_v4 = vld [vmem:[%s3890_s13 + $0x20] sm:$0xff]  ;;  %vm4543_vm3 = vmor %vm680_vm15, %vm681_vm2 }
  0xc1   : > { %v644_v30 = vrot.slane %v643_v46, 4  ;;  %v4500_v5 = vmul.f32 %v4457_v39, %v678_v54  ;;  %v889_v53 = vadd.f32 %v888_v44, %v887_v28  ;;  %v1016_v37 = vadd.f32 %v1015_v12, %v1014_v51  ;;  %v3585_v61 = vld [vmem:[%s3890_s13 + $0x40] sm:$0xff] }
  0xc2   : > { %v1180_v0 = vrot.slane %v1179_v40, 1  ;;  %v1070_v50 = vadd.f32 %v1069_v18, %v1068_v31  ;;  %v4503_v11 = vunpack.c.h.bf16 %v4287_v15  ;;  %v4506_v14 = vunpack.c.h.bf16 %v4290_v22  ;;  %v3586_v54 = vld [vmem:[%s3890_s13 + $0x60] sm:$0xff] }
  0xc3   : > { %v645_v34 = vadd.f32 %v644_v30, %v643_v46  ;;  %v683_v56 = vsel %vm4543_vm3, %v4457_v39, %v4500_v5  ;;  %vm1401_vm4 = vweird.f32 %v4490_v25 }
  0xc4   : > { %v3420_v60 = vpop.eup %3419  ;;  %v1181_v49 = vmax.f32 %v1179_v40, %v1180_v0  ;;  %v1096_v41 = vsel %vm1085_vm1, %v1092_v23, %v1070_v50  ;;  %v3583_v40 = vld [vmem:[%s3890_s13] sm:$0xff]  ;;  %v773_v30 = vmul.f32 %v4503_v11, %v4503_v11 }
  0xc5   : > { %v1240_v48 = vmul.f32 %v3420_v60, %v4438_v47  ;;  %v4526_v18 = vmax.f32 %v1096_v41, 1e-24  ;;  %v4529_v60 = vunpack.c.h.bf16 %v4300_v38  ;;  %v777_v38 = vmul.f32 %v4506_v14, %v4506_v14 }
  0xc6   : > { %v1197_v8 = vsub.f32 %v4473_v24, %v1181_v49  ;;  %v1017_v49 = vrot.slane %v1016_v37, 1 }
  0xc7   : > { %v1244_v35 = vperm.slane %v1240_v48, 0  ;;  %v1280_v36 = vperm.slane %v1240_v48, 1  ;;  %v1316_v47 = vperm.slane %v1240_v48, 2  ;;  %v1399_v48 = vmul.f32 %v4490_v25, %v1398_v9 }
  0xc8   : > { %v1202_v0 = vmul.f32 1.442695, %v1197_v8  ;;  %v4564_v9 = vunpack.c.h.bf16 %v4327_v17  ;;  %v781_v41 = vmul.f32 %v4529_v60, %v4529_v60  ;;  %v1018_v39 = vadd.f32 %v1017_v49, %v1016_v37 }
  0xc9   : > { %v1248_v51 = vmul.f32 %v1244_v35, %v3927_v58  ;;  %v1252_v28 = vmul.f32 %v1244_v35, %v3930_v59  ;;  %v1256_v26 = vmul.f32 %v1244_v35, %v3936_v62  ;;  %v1260_v15 = vmul.f32 %v1244_v35, %v3939_v63 }
  0xca   : > { %v1284_v19 = vmul.f32 %v1280_v36, %v3945_v1  ;;  %v1288_v22 = vmul.f32 %v1280_v36, %v3974_v13  ;;  %v1292_v32 = vmul.f32 %v1280_v36, %v3982_v20  ;;  %v1296_v24 = vmul.f32 %v1280_v36, %v3985_v21 }
  0xcb   : > { %v1264_v44 = vadd.f32 %v3583_v40, %v1248_v51  ;;  %v1268_v31 = vadd.f32 %v3584_v4, %v1252_v28  ;;  %v1272_v58 = vadd.f32 %v3585_v61, %v1256_v26  ;;  %v1276_v59 = vadd.f32 %v3586_v54, %v1260_v15 }
  0xcc   : > { %v1320_v62 = vmul.f32 %v1316_v47, %v4022_v43  ;;  %v1324_v63 = vmul.f32 %v1316_v47, %v4028_v52  ;;  %v1328_v1 = vmul.f32 %v1316_v47, %v4031_v2  ;;  %v1332_v13 = vmul.f32 %v1316_v47, %v4034_v3 }
  0xcd   : > { %v1300_v12 = vadd.f32 %v1284_v19, %v1264_v44  ;;  %v1304_v20 = vadd.f32 %v1288_v22, %v1268_v31  ;;  %v1308_v46 = vadd.f32 %v1292_v32, %v1272_v58  ;;  %v1312_v21 = vadd.f32 %v1296_v24, %v1276_v59 }
  0xce   : > { %3421 = vpow2.f32 %v1202_v0  ;;  %v646_v35 = vrot.slane %v645_v34, 2  ;;  %v1083_v36 = vsel %vm1080_vm0, %v760_v29, %v889_v53  ;;  %v4561_v47 = vunpack.c.h.bf16 %v4315_v16 }
  0xcf   : > { %v4533_v43 = vadd.f32 %v1320_v62, %v1300_v12  ;;  %v4535_v52 = vadd.f32 %v1324_v63, %v1304_v20  ;;  %v4537_v2 = vadd.f32 %v1328_v1, %v1308_v46  ;;  %v4550_v50 = vadd.f32 %v1332_v13, %v1312_v21 }
  0xd0   : > { %3423 = vrsqrt.f32 %v4526_v18  ;;  %v813_v51 = vadd.f32 %v777_v38, %v773_v30  ;;  %v4570_v28 = vunpack.c.h.bf16 %v4341_v10  ;;  %v1400_v26 = vadd.f32 %v4490_v25, %v1399_v48 }
  0xd1   : > { %v1360_v23 = vadd.f32 %v4535_v52, %v4533_v43  ;;  %v721_v29 = vmul.f32 %v4503_v11, %v4468_v45  ;;  %v725_v16 = vmul.f32 %v4506_v14, %v4471_v33  ;;  %v647_v5 = vadd.f32 %v646_v35, %v645_v34 }
  0xd2   : > { %v4580_v53 = vunpack.c.h.bf16 %v4346_v55  ;;  %v729_v10 = vmul.f32 %v4529_v60, %v4476_v7  ;;  %v785_v37 = vmul.f32 %v4561_v47, %v4561_v47  ;;  %v4589_v19 = vunpack.c.h.bf16 %v4354_v27 }
  0xd3   : > { %v1361_v8 = vadd.f32 %v1360_v23, %v4537_v2  ;;  %v902_v22 = vmul.f32 %v4564_v9, %v4564_v9  ;;  %v814_v34 = vadd.f32 %v813_v51, %v781_v41  ;;  %v906_v40 = vmul.f32 %v4570_v28, %v4570_v28 }
  0xd4   : > { %v4582_v15 = vpop.eup %3421  ;;  %v1088_v4 = vsel %vm1085_vm1, %v1083_v36, %v1018_v39  ;;  %v761_v61 = vadd.f32 %v725_v16, %v721_v29  ;;  %vm1128_vm5 = vweird.f32 %v4526_v18  ;;  %v648_v58 = vrot.slane %v647_v5, 1 }
  0xd5   : > { %v1362_v17 = vadd.f32 %v1361_v8, %v4550_v50  ;;  %v1215_v55 = vsel %vm1167_vm8, %v4582_v15, 0.0  ;;  %v910_v54 = vmul.f32 %v4580_v53, %v4580_v53  ;;  %v914_v63 = vmul.f32 %v4589_v19, %v4589_v19 }
  0xd6   : > { %v3424_v32 = vpop.eup %3423  ;;  %v1216_v44 = vrot.slane %v1215_v55, 4  ;;  %v942_v1 = vadd.f32 %v906_v40, %v902_v22  ;;  %v815_v12 = vadd.f32 %v814_v34, %v785_v37  ;;  %v850_v20 = vmul.f32 %v4564_v9, %v4468_v45 }
  0xd7   : > { %v1363_v24 = vrot.slane %v1362_v17, 4  ;;  %v1123_v31 = vmul.f32 %v3424_v32, %v4526_v18  ;;  %v854_v46 = vmul.f32 %v4570_v28, %v4471_v33  ;;  %vm1129_vm6 = vweird.f32 %v3424_v32 }
  0xd8   : > { %v1217_v59 = vadd.f32 %v1216_v44, %v1215_v55  ;;  %v943_v30 = vadd.f32 %v942_v1, %v910_v54  ;;  %v649_v38 = vadd.f32 %v648_v58, %v647_v5  ;;  %v733_v48 = vmul.f32 %v4561_v47, %v4486_v57  ;;  %vm4612_vm7 = vmor %vm1128_vm5, %vm1129_vm6  ;;  %v6123_v1 = vld [vmem:[#allocation27_spill] sm:$0xff] }
  0xd9   : > { %v1364_v27 = vadd.f32 %v1363_v24, %v1362_v17  ;;  %v1124_v62 = vmul.f32 %v3424_v32, %v1123_v31  ;;  %v762_v49 = vadd.f32 %v761_v61, %v729_v10  ;;  %v1144_v36 = vmul.f32 %v1088_v4, %v683_v56  ;;  %v1157_v4 = vld.sshfl [vmem:[#allocation1 + $0x10] sm:$0xff pattern:$0x75316420] }
  0xda   : > { %v1218_v21 = vrot.slane %v1217_v59, 2  ;;  %v944_v8 = vadd.f32 %v943_v30, %v914_v63  ;;  %v816_v39 = vrot.slane %v815_v12, 4  ;;  %v858_v29 = vmul.f32 %v4580_v53, %v4476_v7 }
  0xdb   : > { %v1365_v13 = vrot.slane %v1364_v27, 2  ;;  %v1125_v0 = vmul.f32 0.5, %v1124_v62  ;;  %v890_v16 = vadd.f32 %v854_v46, %v850_v20  ;;  %v4621_v17 = vsel %vm1401_vm4, %v4490_v25, %v1400_v26 }
  0xdc   : > { %v1219_v23 = vadd.f32 %v1218_v21, %v1217_v59  ;;  %6120 = vst [vmem:[#allocation33_spill] sm:$0xff] %v4621_v17  ;;  %v945_v10 = vrot.slane %v944_v8, 4  ;;  %v4623_v22 = vmax.f32 %v649_v38, 1e-24  ;;  %v4625_v18 = vadd.f32 %v762_v49, %v733_v48  ;;  %v6124_v49 = vld [vmem:[#allocation31_spill] sm:$0xff] }
  0xdd   : > { %v1366_v3 = vadd.f32 %v1365_v13, %v1364_v27  ;;  %v1126_v35 = vsub.f32 1.5, %v1125_v0  ;;  %v862_v24 = vmul.f32 %v4589_v19, %v4486_v57  ;;  %v4632_v40 = vunpack.c.h.bf16 %v4399_v6 }
  0xde   : > { %v1220_v5 = vrot.slane %v1219_v23, 1  ;;  %v4635_v25 = vunpack.c.h.bf16 %v4402_v42  ;;  %v817_v31 = vadd.f32 %v816_v39, %v815_v12  ;;  %v891_v61 = vadd.f32 %v890_v16, %v858_v29 }
  0xdf   : > { %v1367_v41 = vrot.slane %v1366_v3, 1  ;;  %v1127_v56 = vmul.f32 %v3424_v32, %v1126_v35  ;;  %v946_v27 = vadd.f32 %v945_v10, %v944_v8  ;;  %v979_v58 = vmul.f32 %v4632_v40, %v4468_v45 }
  0xe0   : > { %v1221_v55 = vadd.f32 %v1220_v5, %v1219_v23  ;;  %v4659_v13 = vunpack.c.h.bf16 %v6123_v1  ;;  %v4669_v20 = vadd.f32 %v891_v61, %v862_v24  ;;  %v4676_v23 = vunpack.c.h.bf16 %v6124_v49 }
  0xe1   : > { %v1368_v37 = vadd.f32 %v1367_v41, %v1366_v3  ;;  %v1131_v34 = vsel %vm4612_vm7, %v3424_v32, %v1127_v56  ;;  %v983_v32 = vmul.f32 %v4635_v25, %v4471_v33  ;;  %v947_v46 = vrot.slane %v946_v27, 2 }
  0xe2   : > { %v1148_v44 = vmul.f32 %v1144_v36, %v1131_v34  ;;  %3425 = vrcp.f32 %v1221_v55  ;;  %v987_v21 = vmul.f32 %v4659_v13, %v4476_v7  ;;  %v1031_v35 = vmul.f32 %v4632_v40, %v4632_v40 }
  0xe3   : > { %v1403_v26 = vmul.f32 %v4621_v17, %v1368_v37  ;;  %3427 = vrsqrt.f32 %v4623_v22  ;;  %v1019_v38 = vadd.f32 %v983_v32, %v979_v58  ;;  %v1035_v36 = vmul.f32 %v4635_v25, %v4635_v25  ;;  %v6126_v32 = vld [vmem:[#allocation8_spill] sm:$0xff] }
  0xe4   : > { %v4654_v62 = vmul.f32 %v1157_v4, %v1148_v44  ;;  %v1039_v8 = vmul.f32 %v4659_v13, %v4659_v13  ;;  %v893_v5 = vrot.slane %v4669_v20, 4  ;;  %v4690_v56 = vadd.f32 %v947_v46, %v946_v27  ;;  %v6125_v27 = vld [vmem:[#allocation7_spill] sm:$0xff] }
  0xe5   : > { %v4643_v6 = vsub.f32 %v4533_v43, %v1403_v26  ;;  %v4646_v42 = vsub.f32 %v4535_v52, %v1403_v26  ;;  %v4649_v54 = vsub.f32 %v4537_v2, %v1403_v26  ;;  %v4652_v59 = vsub.f32 %v4550_v50, %v1403_v26 }
  0xe6   : > { %v818_v50 = vrot.slane %v817_v31, 2  ;;  %v1182_v12 = vsel %vm1167_vm8, %v4654_v62, -inf  ;;  %v991_v10 = vmul.f32 %v4676_v23, %v4486_v57  ;;  %v1071_v37 = vadd.f32 %v1035_v36, %v1031_v35  ;;  %v3588_v35 = vld [vmem:[%s3890_s13 + $0x28] sm:$0xff] }
  0xe7   : > { %6121 = vst [vmem:[#allocation34_spill] sm:$0xff] %v4643_v6  ;;  %v1423_v43 = vmul.f32 %v4643_v6, %v4643_v6  ;;  %v1427_v52 = vmul.f32 %v4646_v42, %v4646_v42  ;;  %v1431_v2 = vmul.f32 %v4649_v54, %v4649_v54  ;;  %v1435_v0 = vmul.f32 %v4652_v59, %v4652_v59 }
  0xe8   : > { %6122 = vst [vmem:[#allocation35_spill] sm:$0xff] %v4646_v42  ;;  %v1183_v3 = vrot.slane %v1182_v12, 4  ;;  %v3426_v48 = vpop.eup %3425  ;;  %v4685_v29 = vadd.f32 %v818_v50, %v817_v31  ;;  %v1020_v26 = vadd.f32 %v1019_v38, %v987_v21  ;;  %v1043_v4 = vmul.f32 %v4676_v23, %v4676_v23  ;;  %v6130_v21 = vld [vmem:[#allocation12_spill] sm:$0xff] }
  0xe9   : > { %v1439_v30 = vadd.f32 %v1427_v52, %v1423_v43  ;;  %v1241_v51 = vmul.f32 %v3426_v48, %v4582_v15  ;;  %v4687_v16 = vpop.eup %3427  ;;  %v1072_v31 = vadd.f32 %v1071_v37, %v1039_v8  ;;  %v6127_v43 = vld [vmem:[#allocation9_spill] sm:$0xff]  ;;  %v3587_v48 = vld [vmem:[%s3890_s13 + $0x8] sm:$0xff]  ;;  %vm690_vm9 = vweird.f32 %v4623_v22 }
  0xea   : > { %v1184_v39 = vmax.f32 %v1182_v12, %v1183_v3  ;;  %v6129_v12 = vld [vmem:[#allocation11_spill] sm:$0xff]  ;;  %v3589_v8 = vld [vmem:[%s3890_s13 + $0x48] sm:$0xff]  ;;  %vm691_vm10 = vweird.f32 %v4687_v16  ;;  %vm1695_vm7 = vcmask 261120  }
  0xeb   : > { %v1440_v41 = vadd.f32 %v1439_v30, %v1431_v2  ;;  %v1245_v55 = vperm.slane %v1241_v51, 0  ;;  %v1281_v34 = vperm.slane %v1241_v51, 1  ;;  %v1317_v15 = vperm.slane %v1241_v51, 2  ;;  %v6128_v2 = vld [vmem:[#allocation10_spill] sm:$0xff]  ;;  %v6131_v30 = vld [vmem:[#allocation13_spill] sm:$0xff]  ;;  %v3590_v51 = vld [vmem:[%s3890_s13 + $0x68] sm:$0xff] }
  0xec   : > { %v1185_v44 = vrot.slane %v1184_v39, 2  ;;  %vm4767_vm13 = vmor %vm690_vm9, %vm691_vm10 }
  0xed   : > { %v1441_v24 = vadd.f32 %v1440_v41, %v1435_v0  ;;  %v1249_v58 = vmul.f32 %v1245_v55, %v6125_v27  ;;  %v1253_v1 = vmul.f32 %v1245_v55, %v6126_v32  ;;  %v1257_v52 = vmul.f32 %v1245_v55, %v6127_v43  ;;  %v6132_v27 = vld [vmem:[#allocation14_spill] sm:$0xff]  ;;  %v6133_v43 = vld [vmem:[#allocation15_spill] sm:$0xff] }
  0xee   : > { %v1261_v50 = vmul.f32 %v1245_v55, %v6128_v2  ;;  %v1285_v46 = vmul.f32 %v1281_v34, %v6129_v12  ;;  %v1289_v0 = vmul.f32 %v1281_v34, %v6130_v21  ;;  %v1293_v3 = vmul.f32 %v1281_v34, %v6131_v30  ;;  %v6134_v55 = vld [vmem:[#allocation16_spill] sm:$0xff] }
  0xef   : > { %v1442_v61 = vrot.slane %v1441_v24, 4  ;;  %v1265_v49 = vadd.f32 %v3587_v48, %v1249_v58  ;;  %v1269_v36 = vadd.f32 %v3588_v35, %v1253_v1  ;;  %v1273_v41 = vadd.f32 %v3589_v8, %v1257_v52  ;;  %v6136_v58 = vld [vmem:[#allocation18_spill] sm:$0xff] }
  0xf0   : > { %v1277_v37 = vadd.f32 %v3590_v51, %v1261_v50  ;;  %v1297_v32 = vmul.f32 %v1281_v34, %v6132_v27  ;;  %v1321_v63 = vmul.f32 %v1317_v15, %v6133_v43  ;;  %v1325_v2 = vmul.f32 %v1317_v15, %v6134_v55 }
  0xf1   : > { %v1443_v38 = vadd.f32 %v1442_v61, %v1441_v24  ;;  %v1301_v42 = vadd.f32 %v1285_v46, %v1265_v49  ;;  %v1305_v21 = vadd.f32 %v1289_v0, %v1269_v36  ;;  %v1309_v6 = vadd.f32 %v1293_v3, %v1273_v41  ;;  %v6135_v24 = vld [vmem:[#allocation17_spill] sm:$0xff] }
  0xf2   : > { %v1313_v30 = vadd.f32 %v1297_v32, %v1277_v37  ;;  %v1329_v61 = vmul.f32 %v1317_v15, %v6135_v24  ;;  %v1333_v48 = vmul.f32 %v1317_v15, %v6136_v58  ;;  %v1186_v1 = vmax.f32 %v1184_v39, %v1185_v44 }
  0xf3   : > { %v1444_v12 = vrot.slane %v1443_v38, 2  ;;  %v4712_v52 = vadd.f32 %v1321_v63, %v1301_v42  ;;  %v4714_v50 = vadd.f32 %v1325_v2, %v1305_v21  ;;  %v1021_v34 = vadd.f32 %v1020_v26, %v991_v10 }
  0xf4   : > { %v4716_v8 = vadd.f32 %v1329_v61, %v1309_v6  ;;  %v1187_v51 = vrot.slane %v1186_v1, 1  ;;  %v1073_v27 = vadd.f32 %v1072_v31, %v1043_v4  ;;  %v4718_v46 = vadd.f32 %v1333_v48, %v1313_v30 }
  0xf5   : > { %v1445_v35 = vadd.f32 %v1444_v12, %v1443_v38  ;;  %v1369_v0 = vadd.f32 %v4714_v50, %v4712_v52  ;;  %v6137_v15 = vrot.slane %v4625_v18, 4  ;;  %v820_v42 = vrot.slane %v4685_v29, 1 }
  0xf6   : > { %v1188_v44 = vmax.f32 %v1186_v1, %v1187_v51  ;;  %v894_v63 = vadd.f32 %v893_v5, %v4669_v20  ;;  %v1074_v10 = vrot.slane %v1073_v27, 4  ;;  %v949_v4 = vrot.slane %v4690_v56, 1 }
  0xf7   : > { %v1446_v43 = vrot.slane %v1445_v35, 1  ;;  %v765_v39 = vadd.f32 %v6137_v15, %v4625_v18  ;;  %v1370_v26 = vadd.f32 %v1369_v0, %v4716_v8  ;;  %v1022_v31 = vrot.slane %v1021_v34, 4 }
  0xf8   : > { %v1198_v3 = vsub.f32 %v4654_v62, %v1188_v44  ;;  %v1075_v38 = vadd.f32 %v1074_v10, %v1073_v27  ;;  %v685_v18 = vmul.f32 %v4687_v16, %v4623_v22  ;;  %v821_v20 = vadd.f32 %v820_v42, %v4685_v29 }
  0xf9   : > { %v1447_v6 = vadd.f32 %v1446_v43, %v1445_v35  ;;  %v1371_v36 = vadd.f32 %v1370_v26, %v4718_v46  ;;  %v766_v41 = vrot.slane %v765_v39, 2  ;;  %v895_v5 = vrot.slane %v894_v63, 2 }
  0xfa   : > { %v1204_v37 = vmul.f32 1.442695, %v1198_v3  ;;  %v1076_v32 = vrot.slane %v1075_v38, 2  ;;  %v950_v12 = vadd.f32 %v949_v4, %v4690_v56  ;;  %v1023_v21 = vadd.f32 %v1022_v31, %v1021_v34  ;;  %v4744_v31 = vpop.permute.xlu0 %1551 }
  0xfb   : > { %v1475_v49 = vmul.f32 %v1447_v6, %v4621_v17  ;;  %v1372_v2 = vrot.slane %v1371_v36, 4  ;;  %v686_v24 = vmul.f32 %v4687_v16, %v685_v18  ;;  %v767_v61 = vadd.f32 %v766_v41, %v765_v39 }
  0xfc   : > { %3429 = vpow2.f32 %v1204_v37  ;;  %v1077_v62 = vadd.f32 %v1076_v32, %v1075_v38  ;;  %v896_v58 = vadd.f32 %v895_v5, %v894_v63  ;;  %v1024_v35 = vrot.slane %v1023_v21, 2 }
  0xfd   : > { %v1479_v55 = vadd.f32 1e-05, %v1475_v49  ;;  %v1373_v30 = vadd.f32 %v1372_v2, %v1371_v36  ;;  %v1093_v29 = vsel %vm1080_vm0, %v821_v20, %v950_v12  ;;  %v687_v0 = vmul.f32 0.5, %v686_v24  ;;  %v4748_v20 = vpop.permute.xlu1 %1587 }
  0xfe   : > { %v1078_v48 = vrot.slane %v1077_v62, 1  ;;  %v768_v56 = vrot.slane %v767_v61, 1  ;;  %v897_v34 = vrot.slane %v896_v58, 1  ;;  %v1025_v63 = vadd.f32 %v1024_v35, %v1023_v21 }
  0xff   : > { %3431 = vrsqrt.f32 %v1479_v55  ;;  %v1374_v1 = vrot.slane %v1373_v30, 2  ;;  %v688_v49 = vsub.f32 1.5, %v687_v0  ;;  %vm1489_vm11 = vweird.f32 %v1479_v55 }
 0x100   : > { %v1079_v51 = vadd.f32 %v1078_v48, %v1077_v62  ;;  %v769_v36 = vadd.f32 %v768_v56, %v767_v61  ;;  %v898_v41 = vadd.f32 %v897_v34, %v896_v58  ;;  %v1026_v37 = vrot.slane %v1025_v63, 1 }
 0x101   : > { %v1375_v27 = vadd.f32 %v1374_v1, %v1373_v30  ;;  %v689_v61 = vmul.f32 %v4687_v16, %v688_v49 }
 0x102   : > { %v4738_v43 = vpop.eup %3429  ;;  %v1097_v15 = vsel %vm1085_vm1, %v1093_v29, %v1079_v51  ;;  %v1027_v58 = vadd.f32 %v1026_v37, %v1025_v63  ;;  %v1084_v22 = vsel %vm1080_vm0, %v769_v36, %v898_v41 }
 0x103   : > { %v1376_v42 = vrot.slane %v1375_v27, 1  ;;  %v1222_v39 = vsel %vm1167_vm8, %v4738_v43, 0.0  ;;  %v1101_v10 = vmax.f32 %v1097_v15, 1e-24  ;;  %v693_v56 = vsel %vm4767_vm13, %v4687_v16, %v689_v61 }
 0x104   : > { %v1223_v26 = vrot.slane %v1222_v39, 4  ;;  %v1089_v63 = vsel %vm1085_vm1, %v1084_v22, %v1027_v58  ;;  %v1158_v61 = vld.sshfl [vmem:[#allocation1 + $0x18] sm:$0xff pattern:$0x75316420] }
 0x105   : > { %v3432_v44 = vpop.eup %3431  ;;  %v1377_v4 = vadd.f32 %v1376_v42, %v1375_v27  ;;  %3433 = vrsqrt.f32 %v1101_v10  ;;  %vm1138_vm0 = vweird.f32 %v1101_v10  ;;  %v1145_v36 = vmul.f32 %v1089_v63, %v693_v56  ;;  %v6146_v56 = vld [vmem:[#allocation23_spill] sm:$0xff] }
 0x106   : > { %v1484_v6 = vmul.f32 %v3432_v44, %v1479_v55  ;;  %v1224_v38 = vadd.f32 %v1223_v26, %v1222_v39  ;;  %vm1490_vm12 = vweird.f32 %v3432_v44 }
 0x107   : > { %v1404_v18 = vmul.f32 %v4621_v17, %v1377_v4  ;;  %vm1491_vm14 = vmor %vm1489_vm11, %vm1490_vm12 }
 0x108   : > { %v1485_v3 = vmul.f32 %v3432_v44, %v1484_v6  ;;  %v1225_v32 = vrot.slane %v1224_v38, 2  ;;  %v4790_v6 = vpop.permute.xlu0 %1556 }
 0x109   : > { %v4751_v2 = vsub.f32 %v4712_v52, %v1404_v18  ;;  %v4754_v12 = vsub.f32 %v4714_v50, %v1404_v18  ;;  %v4757_v21 = vsub.f32 %v4716_v8, %v1404_v18  ;;  %v4760_v62 = vsub.f32 %v4718_v46, %v1404_v18 }
 0x10a   : > { %v1486_v5 = vmul.f32 0.5, %v1485_v3  ;;  %v1226_v24 = vadd.f32 %v1225_v32, %v1224_v38  ;;  %v4794_v3 = vpop.permute.xlu1 %1592 }
 0x10b   : > { %v3434_v50 = vpop.eup %3433  ;;  %v1424_v8 = vmul.f32 %v4751_v2, %v4751_v2  ;;  %v1428_v46 = vmul.f32 %v4754_v12, %v4754_v12  ;;  %v1432_v55 = vmul.f32 %v4757_v21, %v4757_v21  ;;  %v1436_v29 = vmul.f32 %v4760_v62, %v4760_v62 }
 0x10c   : > { %v1487_v30 = vsub.f32 1.5, %v1486_v5  ;;  %v1227_v1 = vrot.slane %v1226_v24, 1  ;;  %v1133_v35 = vmul.f32 %v3434_v50, %v1101_v10  ;;  %vm1139_vm15 = vweird.f32 %v3434_v50 }
 0x10d   : > { %v1448_v51 = vadd.f32 %v1428_v46, %v1424_v8  ;;  %vm1140_vm1 = vmor %vm1138_vm0, %vm1139_vm15 }
 0x10e   : > { %v1488_v48 = vmul.f32 %v3432_v44, %v1487_v30  ;;  %v1228_v0 = vadd.f32 %v1227_v1, %v1226_v24  ;;  %v1134_v34 = vmul.f32 %v3434_v50, %v1133_v35  ;;  %v6142_v1 = vld [vmem:[#allocation19_spill] sm:$0xff]  ;;  %v6143_v35 = vld [vmem:[#allocation20_spill] sm:$0xff] }
 0x10f   : > { %v1449_v39 = vadd.f32 %v1448_v51, %v1432_v55 }
 0x110   : > { %v4780_v27 = vsel %vm1491_vm14, %v3432_v44, %v1488_v48  ;;  %3435 = vrcp.f32 %v1228_v0  ;;  %v1135_v44 = vmul.f32 0.5, %v1134_v34  ;;  %v6145_v0 = vld [vmem:[#allocation22_spill] sm:$0xff] }
 0x111   : > { %v1531_v15 = vmul.f32 %v4780_v27, %v4649_v54  ;;  %v1535_v42 = vmul.f32 %v4780_v27, %v4652_v59  ;;  %v1450_v4 = vadd.f32 %v1449_v39, %v1436_v29  ;;  %v6144_v29 = vld [vmem:[#allocation21_spill] sm:$0xff] }
 0x112   : > { %v1136_v54 = vsub.f32 1.5, %v1135_v44  ;;  %v6148_v39 = vld [vmem:[#allocation25_spill] sm:$0xff] }
 0x113   : > { %v1567_v26 = vmul.f32 %v4744_v31, %v1531_v15  ;;  %v1571_v16 = vmul.f32 %v4790_v6, %v1535_v42  ;;  %v1451_v49 = vrot.slane %v1450_v4, 4  ;;  %v6147_v15 = vld [vmem:[#allocation24_spill] sm:$0xff] }
 0x114   : > { %v1137_v18 = vmul.f32 %v3434_v50, %v1136_v54 }
 0x115   : > { %v4797_v38 = vadd.f32 %v4748_v20, %v1567_v26  ;;  %v4800_v59 = vadd.f32 %v4794_v3, %v1571_v16  ;;  %v1452_v41 = vadd.f32 %v1451_v49, %v1450_v4  ;;  %v3591_v26 = vld [vmem:[%s3890_s13 + $0x10] sm:$0xff] }
 0x116   : > { %v3436_v37 = vpop.eup %3435  ;;  %v1141_v5 = vsel %vm1140_vm1, %v3434_v50, %v1137_v18  ;;  %v3592_v4 = vld [vmem:[%s3890_s13 + $0x30] sm:$0xff] }
 0x117   : > { %6140 = vst [vmem:[#allocation27_spill] sm:$0xff] %v4797_v38  ;;  %v1623_v10 = vpack.c.bf16 %v4800_v59, %v4797_v38  ;;  %v1453_v32 = vrot.slane %v1452_v41, 2  ;;  %v1242_v30 = vmul.f32 %v3436_v37, %v4738_v43  ;;  %v1149_v24 = vmul.f32 %v1145_v36, %v1141_v5  ;;  %v3593_v49 = vld [vmem:[%s3890_s13 + $0x50] sm:$0xff]  ;;  %v6150_v5 = vld [vmem:[#allocation28_spill] sm:$0xff] }
 0x118   : > { %6141 = vst [vmem:[#allocation31_spill] sm:$0xff] %v4800_v59  ;;  %v3594_v18 = vld [vmem:[%s3890_s13 + $0x70] sm:$0xff] }
 0x119   : > { %1714 = vmatpush.bf16.msra.mxu0 %v1623_v10  ;;  %v1454_v52 = vadd.f32 %v1453_v32, %v1452_v41  ;;  %v1246_v8 = vperm.slane %v1242_v30, 0  ;;  %v1282_v46 = vperm.slane %v1242_v30, 1  ;;  %v1318_v55 = vperm.slane %v1242_v30, 2  ;;  %v6149_v41 = vld [vmem:[#allocation26_spill] sm:$0xff]  ;;  %v6151_v30 = vld [vmem:[#allocation29_spill] sm:$0xff] }
 0x11a   : > { %v1166_v58 = vmul.f32 %v1158_v61, %v1149_v24 }
 0x11b   : > { %v1455_v48 = vrot.slane %v1454_v52, 1  ;;  %v1250_v22 = vmul.f32 %v1246_v8, %v6142_v1  ;;  %v1254_v50 = vmul.f32 %v1246_v8, %v6143_v35  ;;  %v1258_v51 = vmul.f32 %v1246_v8, %v6144_v29  ;;  %v6153_v29 = vld [vmem:[#allocation32_spill] sm:$0xff] }
 0x11c   : > { %v1262_v43 = vmul.f32 %v1246_v8, %v6145_v0  ;;  %v1286_v34 = vmul.f32 %v1282_v46, %v6146_v56  ;;  %v1290_v42 = vmul.f32 %v1282_v46, %v6147_v15  ;;  %v1294_v63 = vmul.f32 %v1282_v46, %v6148_v39 }
 0x11d   : > { %v1456_v44 = vadd.f32 %v1455_v48, %v1454_v52  ;;  %v1266_v16 = vadd.f32 %v3591_v26, %v1250_v22  ;;  %v1270_v54 = vadd.f32 %v3592_v4, %v1254_v50  ;;  %v1274_v36 = vadd.f32 %v3593_v49, %v1258_v51  ;;  %v6152_v48 = vld [vmem:[#allocation30_spill] sm:$0xff] }
 0x11e   : > { %v1278_v10 = vadd.f32 %v3594_v18, %v1262_v43  ;;  %v1298_v37 = vmul.f32 %v1282_v46, %v6149_v41  ;;  %v1322_v32 = vmul.f32 %v1318_v55, %v6150_v5  ;;  %v1326_v24 = vmul.f32 %v1318_v55, %v6151_v30 }
 0x11f   : > { %v1476_v61 = vmul.f32 %v1456_v44, %v4621_v17  ;;  %v1302_v8 = vadd.f32 %v1286_v34, %v1266_v16  ;;  %v1306_v1 = vadd.f32 %v1290_v42, %v1270_v54  ;;  %v1310_v35 = vadd.f32 %v1294_v63, %v1274_v36 }
 0x120   : > { %v1314_v52 = vadd.f32 %v1298_v37, %v1278_v10  ;;  %v1330_v22 = vmul.f32 %v1318_v55, %v6152_v48  ;;  %v1334_v50 = vmul.f32 %v1318_v55, %v6153_v29  ;;  %v1189_v51 = vsel %vm1167_vm8, %v1166_v58, -inf }
 0x121   : > { %v1480_v0 = vadd.f32 1e-05, %v1476_v61  ;;  %v1338_v43 = vadd.f32 %v1322_v32, %v1302_v8  ;;  %v1342_v56 = vadd.f32 %v1326_v24, %v1306_v1  ;;  %v1190_v46 = vrot.slane %v1189_v51, 4 }
 0x122   : > { %v1346_v15 = vadd.f32 %v1330_v22, %v1310_v35  ;;  %v1350_v39 = vadd.f32 %v1334_v50, %v1314_v52 }
 0x123   : > { %3437 = vrsqrt.f32 %v1480_v0  ;;  %v1378_v26 = vadd.f32 %v1342_v56, %v1338_v43  ;;  %v1191_v4 = vmax.f32 %v1189_v51, %v1190_v46  ;;  %vm1499_vm2 = vweird.f32 %v1480_v0 }
 0x125   : > { %v1379_v44 = vadd.f32 %v1378_v26, %v1346_v15  ;;  %v1192_v34 = vrot.slane %v1191_v4, 2 }
 0x127   : > { %v1380_v42 = vadd.f32 %v1379_v44, %v1350_v39  ;;  %v1193_v63 = vmax.f32 %v1191_v4, %v1192_v34 }
 0x129   : > { %v3438_v16 = vpop.eup %3437  ;;  %v1381_v54 = vrot.slane %v1380_v42, 4  ;;  %v1194_v49 = vrot.slane %v1193_v63, 1 }
 0x12a   : > { %v1494_v36 = vmul.f32 %v3438_v16, %v1480_v0  ;;  %vm1500_vm3 = vweird.f32 %v3438_v16 }
 0x12b   : > { %v1382_v55 = vadd.f32 %v1381_v54, %v1380_v42  ;;  %v1195_v18 = vmax.f32 %v1193_v63, %v1194_v49  ;;  %vm1501_vm4 = vmor %vm1499_vm2, %vm1500_vm3 }
 0x12c   : > { %v1495_v10 = vmul.f32 %v3438_v16, %v1494_v36 }
 0x12d   : > { %v1383_v41 = vrot.slane %v1382_v55, 2  ;;  %v1199_v37 = vsub.f32 %v1166_v58, %v1195_v18 }
 0x12e   : > { %v1496_v5 = vmul.f32 0.5, %v1495_v10 }
 0x12f   : > { %v1384_v32 = vadd.f32 %v1383_v41, %v1382_v55  ;;  %v1206_v30 = vmul.f32 1.442695, %v1199_v37 }
 0x130   : > { %v1497_v24 = vsub.f32 1.5, %v1496_v5 }
 0x131   : > { %v1385_v61 = vrot.slane %v1384_v32, 1  ;;  %3439 = vpow2.f32 %v1206_v30 }
 0x132   : > { %v1498_v8 = vmul.f32 %v3438_v16, %v1497_v24 }
 0x133   : > { %v1386_v1 = vadd.f32 %v1385_v61, %v1384_v32 }
 0x134   : > { %v4823_v35 = vsel %vm1501_vm4, %v3438_v16, %v1498_v8 }
 0x135   : > { %v1532_v52 = vmul.f32 %v4823_v35, %v4757_v21  ;;  %v1536_v48 = vmul.f32 %v4823_v35, %v4760_v62  ;;  %v1405_v58 = vmul.f32 %v4621_v17, %v1386_v1 }
 0x137   : > { %v3440_v22 = vpop.eup %3439  ;;  %v1568_v29 = vmul.f32 %v4744_v31, %v1532_v52  ;;  %v1572_v50 = vmul.f32 %v4790_v6, %v1536_v48  ;;  %v4832_v51 = vsub.f32 %v1338_v43, %v1405_v58  ;;  %v4834_v0 = vsub.f32 %v1342_v56, %v1405_v58 }
 0x138   : > { %v4836_v46 = vsub.f32 %v1346_v15, %v1405_v58  ;;  %v4838_v26 = vsub.f32 %v1350_v39, %v1405_v58  ;;  %v1229_v21 = vsel %vm1167_vm8, %v3440_v22, 0.0 }
 0x139   : > { %v4842_v4 = vadd.f32 %v4748_v20, %v1568_v29  ;;  %v4845_v62 = vadd.f32 %v4794_v3, %v1572_v50  ;;  %v1425_v44 = vmul.f32 %v4832_v51, %v4832_v51  ;;  %v1429_v43 = vmul.f32 %v4834_v0, %v4834_v0 }
 0x13a   : > { %v1433_v56 = vmul.f32 %v4836_v46, %v4836_v46  ;;  %v1230_v15 = vrot.slane %v1229_v21, 4  ;;  %v1437_v34 = vmul.f32 %v4838_v26, %v4838_v26 }
 0x13b   : > { %6154 = vst [vmem:[#allocation7_spill] sm:$0xff] %v4842_v4  ;;  %v1624_v39 = vpack.c.bf16 %v4845_v62, %v4842_v4  ;;  %v1457_v42 = vadd.f32 %v1429_v43, %v1425_v44 }
 0x13c   : > { %6155 = vst [vmem:[#allocation8_spill] sm:$0xff] %v4845_v62  ;;  %v1231_v63 = vadd.f32 %v1230_v15, %v1229_v21 }
 0x13d   : > { %1743 = vmatpush.bf16.msra.mxu1 %v1624_v39  ;;  %v1458_v16 = vadd.f32 %v1457_v42, %v1433_v56 }
 0x13e   : > { %v1232_v54 = vrot.slane %v1231_v63, 2 }
 0x13f   : > { %v1459_v49 = vadd.f32 %v1458_v16, %v1437_v34 }
 0x140   : > { %v1233_v36 = vadd.f32 %v1232_v54, %v1231_v63 }
 0x141   : > { %v1460_v55 = vrot.slane %v1459_v49, 4 }
 0x142   : > { %v1234_v18 = vrot.slane %v1233_v36, 1 }
 0x143   : > { %v1461_v10 = vadd.f32 %v1460_v55, %v1459_v49 }
 0x144   : > { %v1235_v41 = vadd.f32 %v1234_v18, %v1233_v36 }
 0x145   : > { %v1462_v37 = vrot.slane %v1461_v10, 2 }
 0x146   : > { %3441 = vrcp.f32 %v1235_v41 }
 0x147   : > { %v1463_v5 = vadd.f32 %v1462_v37, %v1461_v10 }
 0x149   : > { %v1464_v32 = vrot.slane %v1463_v5, 1 }
 0x14b   : > { %v1465_v30 = vadd.f32 %v1464_v32, %v1463_v5 }
 0x14c   : > { %v3442_v24 = vpop.eup %3441 }
 0x14d   : > { %v1477_v61 = vmul.f32 %v1465_v30, %v4621_v17  ;;  %v1243_v8 = vmul.f32 %v3442_v24, %v3440_v22 }
 0x14f   : > { %v1481_v1 = vadd.f32 1e-05, %v1477_v61  ;;  %v1247_v52 = vperm.slane %v1243_v8, 0  ;;  %v1283_v48 = vperm.slane %v1243_v8, 1  ;;  %v1319_v58 = vperm.slane %v1243_v8, 2 }
 0x151   : > { %3443 = vrsqrt.f32 %v1481_v1  ;;  %v1251_v29 = vmul.f32 %v1247_v52, %v4503_v11  ;;  %v1255_v50 = vmul.f32 %v1247_v52, %v4506_v14  ;;  %v1259_v21 = vmul.f32 %v1247_v52, %v4529_v60 }
 0x152   : > { %v1263_v44 = vmul.f32 %v1247_v52, %v4561_v47  ;;  %v1287_v43 = vmul.f32 %v1283_v48, %v4564_v9  ;;  %v1291_v56 = vmul.f32 %v1283_v48, %v4570_v28  ;;  %v1295_v39 = vmul.f32 %v1283_v48, %v4580_v53 }
 0x153   : > { %v1267_v15 = vadd.f32 %v1251_v29, %v4468_v45  ;;  %v1271_v22 = vadd.f32 %v1255_v50, %v4471_v33  ;;  %v1299_v34 = vmul.f32 %v1283_v48, %v4589_v19  ;;  %v1275_v11 = vadd.f32 %v1259_v21, %v4476_v7 }
 0x154   : > { %v1279_v14 = vadd.f32 %v1263_v44, %v4486_v57  ;;  %v1323_v60 = vmul.f32 %v1319_v58, %v4632_v40  ;;  %v1327_v47 = vmul.f32 %v1319_v58, %v4635_v25  ;;  %v1331_v28 = vmul.f32 %v1319_v58, %v4659_v13 }
 0x155   : > { %v1303_v42 = vadd.f32 %v1287_v43, %v1267_v15  ;;  %v1307_v9 = vadd.f32 %v1291_v56, %v1271_v22  ;;  %v1335_v45 = vmul.f32 %v1319_v58, %v4676_v23  ;;  %v1311_v63 = vadd.f32 %v1295_v39, %v1275_v11  ;;  %v4901_v15 = vpop.permute.xlu2 %1541 }
 0x156   : > { %v1315_v33 = vadd.f32 %v1299_v34, %v1279_v14  ;;  %vm1509_vm8 = vweird.f32 %v1481_v1 }
 0x157   : > { %v3444_v16 = vpop.eup %3443  ;;  %v1339_v53 = vadd.f32 %v1323_v60, %v1303_v42  ;;  %v1343_v54 = vadd.f32 %v1327_v47, %v1307_v9  ;;  %v1347_v49 = vadd.f32 %v1331_v28, %v1311_v63  ;;  %v6158_v47 = vld [vmem:[#allocation34_spill] sm:$0xff]  ;;  %v6159_v9 = vld [vmem:[#allocation35_spill] sm:$0xff] }
 0x158   : > { %v1504_v19 = vmul.f32 %v3444_v16, %v1481_v1  ;;  %v1351_v7 = vadd.f32 %v1335_v45, %v1315_v33  ;;  %vm1510_vm5 = vweird.f32 %v3444_v16  ;;  %v1523_v42 = vmul.f32 %v4780_v27, %v6158_v47 }
 0x159   : > { %v1387_v36 = vadd.f32 %v1343_v54, %v1339_v53  ;;  %vm1511_vm6 = vmor %vm1509_vm8, %vm1510_vm5  ;;  %v1527_v28 = vmul.f32 %v4780_v27, %v6159_v9  ;;  %v1524_v45 = vmul.f32 %v4823_v35, %v4751_v2  ;;  %v1528_v33 = vmul.f32 %v4823_v35, %v4754_v12 }
 0x15a   : > { %v1505_v57 = vmul.f32 %v3444_v16, %v1504_v19  ;;  %v1559_v19 = vmul.f32 %v4901_v15, %v1523_v42 }
 0x15b   : > { %v1388_v55 = vadd.f32 %v1387_v36, %v1347_v49  ;;  %v1583_v36 = vpop.permute.xlu1 %1582 }
 0x15c   : > { %v1506_v40 = vmul.f32 0.5, %v1505_v57  ;;  %v1578_v57 = vpop.permute.xlu0 %1577 }
 0x15d   : > { %v1389_v25 = vadd.f32 %v1388_v55, %v1351_v7  ;;  %v1547_v63 = vpop.permute.xlu2 %1546 }
 0x15e   : > { %v1507_v18 = vsub.f32 1.5, %v1506_v40  ;;  %v1564_v27 = vmul.f32 %v1547_v63, %v1528_v33 }
 0x15f   : > { %v1390_v13 = vrot.slane %v1389_v25, 4 }
 0x160   : > { %v1508_v10 = vmul.f32 %v3444_v16, %v1507_v18 }
 0x161   : > { %v1391_v23 = vadd.f32 %v1390_v13, %v1389_v25  ;;  %v4918_v25 = vadd.f32 %v1578_v57, %v1559_v19 }
 0x162   : > { %v1512_v41 = vsel %vm1511_vm6, %v3444_v16, %v1508_v10 }
 0x163   : > { %v1533_v37 = vmul.f32 %v1512_v41, %v4836_v46  ;;  %v1537_v5 = vmul.f32 %v1512_v41, %v4838_v26  ;;  %v1392_v32 = vrot.slane %v1391_v23, 2  ;;  %v1525_v16 = vmul.f32 %v1512_v41, %v4832_v51  ;;  %6160 = vst [vmem:[#allocation11_spill] sm:$0xff] %v4918_v25 }
 0x164   : > { %v4924_v51 = vadd.f32 %v1583_v36, %v1564_v27 }
 0x165   : > { %v1569_v30 = vmul.f32 %v4744_v31, %v1533_v37  ;;  %v1573_v24 = vmul.f32 %v4790_v6, %v1537_v5  ;;  %v1393_v61 = vadd.f32 %v1392_v32, %v1391_v23  ;;  %v1561_v55 = vmul.f32 %v4901_v15, %v1525_v16 }
 0x166   : > { %6163 = vst [vmem:[#allocation14_spill] sm:$0xff] %v4924_v51 }
 0x167   : > { %v4879_v8 = vadd.f32 %v4748_v20, %v1569_v30  ;;  %v4882_v1 = vadd.f32 %v4794_v3, %v1573_v24  ;;  %v1394_v52 = vrot.slane %v1393_v61, 1  ;;  %v3335_v30 = vld [vmem:[%s5963_s5] sm:$0xff] }
 0x169   : > { %6156 = vst [vmem:[#allocation9_spill] sm:$0xff] %v4879_v8  ;;  %v1625_v48 = vpack.c.bf16 %v4882_v1, %v4879_v8  ;;  %v1395_v58 = vadd.f32 %v1394_v52, %v1393_v61 }
 0x16a   : > { %6157 = vst [vmem:[#allocation10_spill] sm:$0xff] %v4882_v1 }
 0x16b   : > { %1772 = vmatpush.bf16.msra.mxu2 %v1625_v48  ;;  %v1406_v46 = vmul.f32 %v4621_v17, %v1395_v58  ;;  %v3336_v58 = vld [vmem:[%s5963_s5 + $0x8] sm:$0xff] }
 0x16d   : > { %v4887_v26 = vsub.f32 %v1339_v53, %v1406_v46  ;;  %v4889_v29 = vsub.f32 %v1343_v54, %v1406_v46  ;;  %v4891_v50 = vsub.f32 %v1347_v49, %v1406_v46  ;;  %v4893_v21 = vsub.f32 %v1351_v7, %v1406_v46 }
 0x16e   : > { %v1529_v53 = vmul.f32 %v1512_v41, %v4834_v0  ;;  %v1563_v49 = vmul.f32 %v1547_v63, %v1527_v28  ;;  %v1560_v7 = vmul.f32 %v4901_v15, %v1524_v45  ;;  %v4926_v0 = vadd.f32 %v1578_v57, %v1561_v55 }
 0x16f   : > { %v1426_v44 = vmul.f32 %v4887_v26, %v4887_v26  ;;  %v1430_v43 = vmul.f32 %v4889_v29, %v4889_v29  ;;  %v1434_v56 = vmul.f32 %v4891_v50, %v4891_v50  ;;  %v1438_v22 = vmul.f32 %v4893_v21, %v4893_v21 }
 0x170   : > { %v1565_v2 = vmul.f32 %v1547_v63, %v1529_v53  ;;  %v4920_v12 = vadd.f32 %v1583_v36, %v1563_v49  ;;  %v4922_v35 = vadd.f32 %v1578_v57, %v1560_v7  ;;  %6164 = vst [vmem:[#allocation15_spill] sm:$0xff] %v4926_v0 }
 0x171   : > { %v1466_v39 = vadd.f32 %v1430_v43, %v1426_v44 }
 0x172   : > { %6161 = vst [vmem:[#allocation12_spill] sm:$0xff] %v4920_v12  ;;  %v4928_v18 = vadd.f32 %v1583_v36, %v1565_v2  ;;  %v1619_v10 = vpack.c.bf16 %v4920_v12, %v4918_v25  ;;  %v1620_v23 = vpack.c.bf16 %v4924_v51, %v4922_v35 }
 0x173   : > { %v1467_v34 = vadd.f32 %v1466_v39, %v1434_v56  ;;  %6162 = vst [vmem:[#allocation13_spill] sm:$0xff] %v4922_v35 }
 0x174   : > { %6165 = vst [vmem:[#allocation16_spill] sm:$0xff] %v4928_v18  ;;  %v1621_v41 = vpack.c.bf16 %v4928_v18, %v4926_v0  ;;  %1715 = vmatpush.bf16.msra.mxu0 %v1619_v10  ;;  %1744 = vmatpush.bf16.msra.mxu1 %v1620_v23 }
 0x175   : > { %v1468_v11 = vadd.f32 %v1467_v34, %v1438_v22 }
 0x176   : > { %1773 = vmatpush.bf16.msra.mxu2 %v1621_v41 }
 0x177   : > { %v1469_v14 = vrot.slane %v1468_v11, 4  ;;  %3297 = vmatmul.msk.bf16.vlgmr.msra.gmra.mxu0 %vm1695_vm7, %v3335_v30  ;;  %3301 = vmatmul.msk.bf16.vlgmr.msra.gmra.mxu1 %vm1695_vm7, %v3335_v30 }
 0x179   : > { %v1470_v60 = vadd.f32 %v1469_v14, %v1468_v11  ;;  %3305 = vmatmul.msk.bf16.vlgmr.msra.gmra.mxu2 %vm1695_vm7, %v3335_v30 }
 0x17b   : > { %v1471_v54 = vrot.slane %v1470_v60, 2 }
 0x17d   : > { %v1472_v40 = vadd.f32 %v1471_v54, %v1470_v60 }
 0x17f   : > { %v1473_v13 = vrot.slane %v1472_v40, 1 }
 0x181   : > { %v1474_v37 = vadd.f32 %v1473_v13, %v1472_v40 }
 0x183   : > { %v1478_v5 = vmul.f32 %v1474_v37, %v4621_v17 }
 0x185   : > { %v1482_v32 = vadd.f32 1e-05, %v1478_v5 }
 0x187   : > { %3445 = vrsqrt.f32 %v1482_v32  ;;  %vm1519_vm9 = vweird.f32 %v1482_v32  ;;  %3298 = vmatmul.msk.bf16.gmra.mxu0 %vm1695_vm7, %v3336_v58  ;;  %3302 = vmatmul.msk.bf16.gmra.mxu1 %vm1695_vm7, %v3336_v58 }
 0x189   : > { %3306 = vmatmul.msk.bf16.gmra.mxu2 %vm1695_vm7, %v3336_v58 }
 0x18d   : > { %v3446_v24 = vpop.eup %3445 }
 0x18e   : > { %v1514_v61 = vmul.f32 %v3446_v24, %v1482_v32  ;;  %vm1520_vm10 = vweird.f32 %v3446_v24 }
 0x18f   : > { %vm1521_vm11 = vmor %vm1519_vm9, %vm1520_vm10 }
 0x190   : > { %v1515_v52 = vmul.f32 %v3446_v24, %v1514_v61 }
 0x192   : > { %v1516_v48 = vmul.f32 0.5, %v1515_v52 }
 0x194   : > { %v1517_v46 = vsub.f32 1.5, %v1516_v48 }
 0x196   : > { %v1518_v44 = vmul.f32 %v3446_v24, %v1517_v46 }
 0x198   : > { %v1522_v43 = vsel %vm1521_vm11, %v3446_v24, %v1518_v44  ;;  %v5034_v24 = vpop.permute.xlu1 %1657 }
 0x199   : > { %v1534_v56 = vmul.f32 %v1522_v43, %v4891_v50  ;;  %v1538_v22 = vmul.f32 %v1522_v43, %v4893_v21  ;;  %v1526_v39 = vmul.f32 %v1522_v43, %v4887_v26  ;;  %v1530_v34 = vmul.f32 %v1522_v43, %v4889_v29  ;;  %v4988_v29 = vpop.permute.xlu0 %1672 }
 0x19b   : > { %v1570_v11 = vmul.f32 %v4744_v31, %v1534_v56  ;;  %v1574_v14 = vmul.f32 %v4790_v6, %v1538_v22  ;;  %v1562_v60 = vmul.f32 %v4901_v15, %v1526_v39  ;;  %v1566_v47 = vmul.f32 %v1547_v63, %v1530_v34  ;;  %v3337_v6 = vld [vmem:[%s5963_s5 + $0x10] sm:$0xff] }
 0x19c   : > { %3299 = vmatmul.msk.bf16.gmra.mxu0 %vm1695_vm7, %v3337_v6  ;;  %3303 = vmatmul.msk.bf16.gmra.mxu1 %vm1695_vm7, %v3337_v6 }
 0x19d   : > { %v4957_v42 = vadd.f32 %v4748_v20, %v1570_v11  ;;  %v4960_v9 = vadd.f32 %v4794_v3, %v1574_v14  ;;  %v4964_v21 = vadd.f32 %v1578_v57, %v1562_v60  ;;  %v4966_v26 = vadd.f32 %v1583_v36, %v1566_v47  ;;  %3307 = vmatmul.msk.bf16.gmra.mxu2 %vm1695_vm7, %v3337_v6  ;;  %v3338_v20 = vld [vmem:[%s5963_s5 + $0x18] sm:$0xff]  ;;  %v4986_v3 = vpop.permute.xlu2 %1667 }
 0x19f   : > { %6166 = vst [vmem:[#allocation17_spill] sm:$0xff] %v4957_v42  ;;  %v1626_v50 = vpack.c.bf16 %v4960_v9, %v4957_v42  ;;  %v1622_v31 = vpack.c.bf16 %v4966_v26, %v4964_v21 }
 0x1a0   : > { %6167 = vst [vmem:[#allocation18_spill] sm:$0xff] %v4960_v9 }
 0x1a1   : > { %6168 = vst [vmem:[#allocation19_spill] sm:$0xff] %v4964_v21  ;;  %1801 = vmatpush.bf16.msra.mxu3 %v1626_v50  ;;  %v4992_v63 = vpop.permute.xlu0 %1647 }
 0x1a2   : > { %6169 = vst [vmem:[#allocation20_spill] sm:$0xff] %v4966_v26 }
 0x1a5   : > { %1802 = vmatpush.bf16.msra.mxu3 %v1622_v31  ;;  %v4990_v15 = vpop.permute.xlu2 %1662 }
 0x1a8   : > { %3309 = vmatmul.msk.bf16.vlgmr.msra.gmra.mxu3 %vm1695_vm7, %v3335_v30 }
 0x1a9   : > { %v5011_v27 = vpop.permute.xlu0 %1642 }
 0x1ac   : > { %3300 = vmatmul.msk.bf16.gmra.mxu0 %vm1695_vm7, %v3338_v20  ;;  %3304 = vmatmul.msk.bf16.gmra.mxu1 %vm1695_vm7, %v3338_v20 }
 0x1ad   : > { %3308 = vmatmul.msk.bf16.gmra.mxu2 %vm1695_vm7, %v3338_v20  ;;  %v4994_v33 = vpop.permute.xlu2 %1637 }
 0x1b8   : > { %3310 = vmatmul.msk.bf16.gmra.mxu3 %vm1695_vm7, %v3336_v58 }
 0x1c8   : > { %3311 = vmatmul.msk.bf16.gmra.mxu3 %vm1695_vm7, %v3337_v6 }
 0x1d8   : > { %3312 = vmatmul.msk.bf16.gmra.mxu3 %vm1695_vm7, %v3338_v20 }
 0x1f4   : > { %v1717_v28 = vpop.f32.mrf.mxu0  ;;  %v1746_v45 = vpop.f32.mrf.mxu1 }
 0x1f5   : > { %v4997_v16 = vadd.f32 %v1717_v28, %v4994_v33  ;;  %v5000_v53 = vadd.f32 %v1746_v45, %v4994_v33 }
 0x1f7   : > { %v5003_v54 = vmul.f32 0.70710677, %v4997_v16  ;;  %v5009_v7 = vmul.f32 0.70710677, %v5000_v53 }
 0x1f9   : > { %6170 = vst [vmem:[#allocation21_spill] sm:$0xff] %v5003_v54  ;;  %v1888_v55 = vand.u32 2147483647, %v5003_v54  ;;  %v1889_v10 = vand.u32 2147483647, %v5009_v7 }
 0x1fa   : > { %6172 = vst [vmem:[#allocation23_spill] sm:$0xff] %v5009_v7 }
 0x1fb   : > { %v2304_v23 = vsub.f32 0.0, %v1888_v55  ;;  %v1920_v61 = vmul.f32 0.3275911, %v1888_v55  ;;  %v2305_v52 = vsub.f32 0.0, %v1889_v10  ;;  %v1921_v58 = vmul.f32 0.3275911, %v1889_v10 }
 0x1fc   : > { %v1775_v19 = vpop.f32.mrf.mxu2  ;;  %v1719_v36 = vpop.f32.mrf.mxu0 }
 0x1fd   : > { %v5006_v49 = vadd.f32 %v1775_v19, %v4994_v33  ;;  %v1748_v57 = vpop.f32.mrf.mxu1  ;;  %v5018_v40 = vadd.f32 %v1719_v36, %v5011_v27  ;;  %v2336_v43 = vmul.f32 %v2304_v23, %v1888_v55  ;;  %v1952_v11 = vadd.f32 1.0, %v1920_v61 }
 0x1fe   : > { %v5021_v13 = vadd.f32 %v1748_v57, %v5011_v27  ;;  %v2337_v14 = vmul.f32 %v2305_v52, %v1889_v10  ;;  %v1953_v47 = vadd.f32 1.0, %v1921_v58 }
 0x1ff   : > { %6171 = vst [vmem:[#allocation22_spill] sm:$0xff] %v5006_v49  ;;  %v5015_v2 = vmul.f32 0.70710677, %v5006_v49  ;;  %v5026_v5 = vmul.f32 0.70710677, %v5018_v40  ;;  %3447 = vrcp.f32 %v1952_v11  ;;  %v5118_v25 = vmul.f32 0.5, %v5018_v40 }
 0x200   : > { %v5029_v32 = vmul.f32 0.70710677, %v5021_v13  ;;  %v2368_v31 = vmul.f32 1.442695, %v2336_v43  ;;  %v2370_v55 = vmul.f32 1.442695, %v2337_v14  ;;  %3449 = vrcp.f32 %v1953_v47 }
 0x201   : > { %6173 = vst [vmem:[#allocation24_spill] sm:$0xff] %v5015_v2  ;;  %v1890_v37 = vand.u32 2147483647, %v5015_v2  ;;  %v1892_v22 = vand.u32 2147483647, %v5026_v5  ;;  %v5121_v12 = vmul.f32 0.5, %v5021_v13 }
 0x202   : > { %6174 = vst [vmem:[#allocation25_spill] sm:$0xff] %v5026_v5  ;;  %v1893_v39 = vand.u32 2147483647, %v5029_v32  ;;  %3451 = vpow2.f32 %v2368_v31 }
 0x203   : > { %6175 = vst [vmem:[#allocation26_spill] sm:$0xff] %v5029_v32  ;;  %v2306_v56 = vsub.f32 0.0, %v1890_v37  ;;  %v1922_v6 = vmul.f32 0.3275911, %v1890_v37  ;;  %v2308_v19 = vsub.f32 0.0, %v1892_v22  ;;  %3453 = vpow2.f32 %v2370_v55 }
 0x204   : > { %v1777_v41 = vpop.f32.mrf.mxu2  ;;  %v1722_v48 = vpop.f32.mrf.mxu0  ;;  %v2309_v36 = vsub.f32 0.0, %v1893_v39  ;;  %v1924_v10 = vmul.f32 0.3275911, %v1892_v22  ;;  %v1925_v61 = vmul.f32 0.3275911, %v1893_v39  ;;  %6195 = vst [vmem:[#allocation49_spill] sm:$0xff] %v5118_v25 }
 0x205   : > { %v5032_v30 = vadd.f32 %v1777_v41, %v5011_v27  ;;  %v1751_v44 = vpop.f32.mrf.mxu1  ;;  %v5042_v34 = vadd.f32 %v1722_v48, %v4992_v63  ;;  %v2338_v45 = vmul.f32 %v2306_v56, %v1890_v37  ;;  %v5057_v48 = vpop.permute.xlu1 %1652  ;;  %v1954_v58 = vadd.f32 1.0, %v1922_v6  ;;  %6196 = vst [vmem:[#allocation50_spill] sm:$0xff] %v5121_v12 }
 0x206   : > { %v5045_v60 = vadd.f32 %v1751_v44, %v4992_v63  ;;  %v2340_v56 = vmul.f32 %v2308_v19, %v1892_v22  ;;  %v2341_v11 = vmul.f32 %v2309_v36, %v1893_v39  ;;  %v1956_v47 = vadd.f32 1.0, %v1924_v10  ;;  %v5070_v21 = vpop.eup %3447 }
 0x207   : > { %6176 = vst [vmem:[#allocation28_spill] sm:$0xff] %v5032_v30  ;;  %v5037_v46 = vmul.f32 0.70710677, %v5032_v30  ;;  %v5049_v20 = vmul.f32 0.70710677, %v5042_v34  ;;  %v1957_v1 = vadd.f32 1.0, %v1925_v61  ;;  %3455 = vrcp.f32 %v1954_v58  ;;  %v5076_v19 = vpop.eup %3449 }
 0x208   : > { %v5055_v23 = vmul.f32 0.70710677, %v5045_v60  ;;  %v2372_v43 = vmul.f32 1.442695, %v2338_v45  ;;  %6182 = vst [vmem:[#allocation36_spill] sm:$0xff] %v5070_v21  ;;  %v5079_v36 = vmul.f32 0.5, %v4997_v16 }
 0x209   : > { %6177 = vst [vmem:[#allocation29_spill] sm:$0xff] %v5037_v46  ;;  %v1894_v50 = vand.u32 2147483647, %v5037_v46  ;;  %v1896_v37 = vand.u32 2147483647, %v5049_v20 }
 0x20a   : > { %6178 = vst [vmem:[#allocation30_spill] sm:$0xff] %v5049_v20  ;;  %v1897_v9 = vand.u32 2147483647, %v5055_v23  ;;  %3457 = vpow2.f32 %v2372_v43  ;;  %v2376_v55 = vmul.f32 1.442695, %v2340_v56 }
 0x20b   : > { %6179 = vst [vmem:[#allocation32_spill] sm:$0xff] %v5055_v23  ;;  %v2310_v52 = vsub.f32 0.0, %v1894_v50  ;;  %v1926_v42 = vmul.f32 0.3275911, %v1894_v50  ;;  %v2312_v45 = vsub.f32 0.0, %v1896_v37  ;;  %3459 = vrcp.f32 %v1956_v47 }
 0x20c   : > { %v1780_v28 = vpop.f32.mrf.mxu2  ;;  %v1724_v41 = vpop.f32.mrf.mxu0  ;;  %6183 = vst [vmem:[#allocation37_spill] sm:$0xff] %v5076_v19  ;;  %v1928_v61 = vmul.f32 0.3275911, %v1896_v37  ;;  %3461 = vrcp.f32 %v1957_v1  ;;  %v1929_v56 = vmul.f32 0.3275911, %v1897_v9  ;;  %v5093_v47 = vmul.f32 0.5, %v5000_v53 }
 0x20d   : > { %v5052_v57 = vadd.f32 %v1780_v28, %v4992_v63  ;;  %v5064_v14 = vadd.f32 %v1724_v41, %v5057_v48  ;;  %v1753_v28 = vpop.f32.mrf.mxu1  ;;  %v2342_v31 = vmul.f32 %v2310_v52, %v1894_v50  ;;  %6184 = vst [vmem:[#allocation38_spill] sm:$0xff] %v5079_v36  ;;  %v2378_v50 = vmul.f32 1.442695, %v2341_v11  ;;  %v5081_v41 = vpop.eup %3451 }
 0x20e   : > { %v5074_v39 = vadd.f32 %v1753_v28, %v5057_v48  ;;  %6185 = vst [vmem:[#allocation39_spill] sm:$0xff] %v5081_v41  ;;  %v2313_v52 = vsub.f32 0.0, %v1897_v9  ;;  %v1958_v28 = vadd.f32 1.0, %v1926_v42  ;;  %v5087_v16 = vpop.eup %3453  ;;  %v2344_v43 = vmul.f32 %v2312_v45, %v1896_v37 }
 0x20f   : > { %v5061_v44 = vmul.f32 0.70710677, %v5052_v57  ;;  %v5068_v6 = vmul.f32 0.70710677, %v5064_v14  ;;  %v2380_v0 = vmul.f32 1.442695, %v2342_v31  ;;  %3463 = vpow2.f32 %v2376_v55  ;;  %v5099_v42 = vpop.eup %3455 }
 0x210   : > { %v5084_v58 = vmul.f32 0.70710677, %v5074_v39  ;;  %6187 = vst [vmem:[#allocation41_spill] sm:$0xff] %v5087_v16  ;;  %3465 = vpow2.f32 %v2378_v50  ;;  %v1960_v31 = vadd.f32 1.0, %v1928_v61  ;;  %v2345_v4 = vmul.f32 %v2313_v52, %v1897_v9  ;;  %v5104_v45 = vpop.eup %3457 }
 0x211   : > { %6180 = vst [vmem:[#allocation34_spill] sm:$0xff] %v5061_v44  ;;  %v1898_v22 = vand.u32 2147483647, %v5061_v44  ;;  %v1900_v26 = vand.u32 2147483647, %v5068_v6  ;;  %3467 = vrcp.f32 %v1958_v28  ;;  %v5109_v35 = vpop.eup %3459  ;;  %v1961_v17 = vadd.f32 1.0, %v1929_v56 }
 0x212   : > { %6181 = vst [vmem:[#allocation35_spill] sm:$0xff] %v5068_v6  ;;  %v1901_v62 = vand.u32 2147483647, %v5084_v58  ;;  %3469 = vpow2.f32 %v2380_v0  ;;  %v2384_v51 = vmul.f32 1.442695, %v2344_v43  ;;  %v5111_v61 = vpop.eup %3461 }
 0x213   : > { %6186 = vst [vmem:[#allocation40_spill] sm:$0xff] %v5084_v58  ;;  %v2314_v11 = vsub.f32 0.0, %v1898_v22  ;;  %v2316_v53 = vsub.f32 0.0, %v1900_v26  ;;  %v1932_v52 = vmul.f32 0.3275911, %v1900_v26  ;;  %3471 = vrcp.f32 %v1960_v31 }
 0x214   : > { %v1782_v10 = vpop.f32.mrf.mxu2  ;;  %6188 = vst [vmem:[#allocation42_spill] sm:$0xff] %v5093_v47  ;;  %v2317_v59 = vsub.f32 0.0, %v1901_v62  ;;  %v2386_v0 = vmul.f32 1.442695, %v2345_v4  ;;  %3473 = vrcp.f32 %v1961_v17  ;;  %v1933_v40 = vmul.f32 0.3275911, %v1901_v62 }
 0x215   : > { %v5090_v18 = vadd.f32 %v1782_v10, %v5057_v48  ;;  %6189 = vst [vmem:[#allocation43_spill] sm:$0xff] %v5099_v42  ;;  %v1930_v10 = vmul.f32 0.3275911, %v1898_v22  ;;  %v2346_v50 = vmul.f32 %v2314_v11, %v1898_v22  ;;  %v5123_v43 = vpop.eup %3463  ;;  %v2348_v56 = vmul.f32 %v2316_v53, %v1900_v26 }
 0x216   : > { %6191 = vst [vmem:[#allocation45_spill] sm:$0xff] %v5104_v45  ;;  %3475 = vpow2.f32 %v2384_v51  ;;  %v1964_v4 = vadd.f32 1.0, %v1932_v52  ;;  %v2349_v31 = vmul.f32 %v2317_v59, %v1901_v62  ;;  %v1965_v59 = vadd.f32 1.0, %v1933_v40 }
 0x217   : > { %v5102_v37 = vmul.f32 0.70710677, %v5090_v18  ;;  %6192 = vst [vmem:[#allocation46_spill] sm:$0xff] %v5109_v35  ;;  %v2388_v30 = vmul.f32 1.442695, %v2346_v50  ;;  %3477 = vpow2.f32 %v2386_v0  ;;  %v5171_v47 = vmul.f32 0.5, %v5045_v60 }
 0x218   : > { %6193 = vst [vmem:[#allocation47_spill] sm:$0xff] %v5111_v61  ;;  %v2392_v53 = vmul.f32 1.442695, %v2348_v56 }
 0x219   : > { %v1727_v8 = vpop.f32.mrf.mxu0  ;;  %6190 = vst [vmem:[#allocation44_spill] sm:$0xff] %v5102_v37  ;;  %v1902_v28 = vand.u32 2147483647, %v5102_v37  ;;  %v1756_v38 = vpop.f32.mrf.mxu1 }
 0x21a   : > { %v5097_v1 = vadd.f32 %v1727_v8, %v5034_v24  ;;  %6197 = vst [vmem:[#allocation51_spill] sm:$0xff] %v5123_v43  ;;  %v5132_v46 = vadd.f32 %v1756_v38, %v5034_v24 }
 0x21b   : > { %v1934_v2 = vmul.f32 0.3275911, %v1902_v28  ;;  %6209 = vst [vmem:[#allocation63_spill] sm:$0xff] %v5171_v47 }
 0x21c   : > { %v5107_v55 = vmul.f32 0.70710677, %v5097_v1  ;;  %v5140_v17 = vmul.f32 0.70710677, %v5132_v46 }
 0x21d   : > { %v1966_v37 = vadd.f32 1.0, %v1934_v2 }
 0x21e   : > { %v1904_v11 = vand.u32 2147483647, %v5107_v55  ;;  %v1905_v62 = vand.u32 2147483647, %v5140_v17  ;;  %vm2512_vm15 = vcmp.ge.f32.partialorder %v5107_v55, 0.0  ;;  %vm2513_vm2 = vcmp.ge.f32.partialorder %v5140_v17, 0.0 }
 0x220   : > { %v1936_v38 = vmul.f32 0.3275911, %v1904_v11  ;;  %v2320_v50 = vsub.f32 0.0, %v1904_v11  ;;  %v1937_v42 = vmul.f32 0.3275911, %v1905_v62 }
 0x221   : > { %v1729_v40 = vpop.f32.mrf.mxu0 }
 0x22b   : > { %v1804_v8 = vpop.f32.mrf.mxu3 }
 0x22c   : > { %v5114_v9 = vadd.f32 %v1804_v8, %v4994_v33  ;;  %v1962_v33 = vadd.f32 1.0, %v1930_v10  ;;  %v5129_v8 = vpop.eup %3465  ;;  %v2318_v10 = vsub.f32 0.0, %v1902_v28 }
 0x22d   : > { %6199 = vst [vmem:[#allocation53_spill] sm:$0xff] %v5129_v8  ;;  %v5134_v13 = vpop.eup %3467 }
 0x22e   : > { %6194 = vst [vmem:[#allocation48_spill] sm:$0xff] %v5114_v9  ;;  %v5126_v22 = vmul.f32 0.70710677, %v5114_v9  ;;  %v1785_v9 = vpop.f32.mrf.mxu2  ;;  %v5136_v49 = vpop.eup %3469  ;;  %3479 = vrcp.f32 %v1962_v33  ;;  %v2394_v33 = vmul.f32 1.442695, %v2349_v31  ;;  %v2350_v44 = vmul.f32 %v2318_v10, %v1902_v28 }
 0x22f   : > { %6200 = vst [vmem:[#allocation54_spill] sm:$0xff] %v5134_v13  ;;  %v5142_v45 = vpop.eup %3471  ;;  %3481 = vpow2.f32 %v2388_v30  ;;  %v5146_v52 = vadd.f32 %v1785_v9, %v5034_v24  ;;  %v2321_v31 = vsub.f32 0.0, %v1905_v62 }
 0x230   : > { %6198 = vst [vmem:[#allocation52_spill] sm:$0xff] %v5126_v22  ;;  %v1891_v26 = vand.u32 2147483647, %v5126_v22  ;;  %v5152_v22 = vmul.f32 0.5, %v5042_v34  ;;  %3483 = vrcp.f32 %v1964_v4  ;;  %v5154_v56 = vpop.eup %3473  ;;  %v2352_v34 = vmul.f32 %v2320_v50, %v1904_v11 }
 0x231   : > { %6201 = vst [vmem:[#allocation55_spill] sm:$0xff] %v5136_v49  ;;  %v5157_v30 = vmul.f32 0.70710677, %v5146_v52  ;;  %v5159_v12 = vpop.eup %3475  ;;  %3485 = vpow2.f32 %v2392_v53  ;;  %v1758_v53 = vpop.f32.mrf.mxu1  ;;  %v5179_v50 = vmul.f32 0.5, %v5052_v57  ;;  %v2353_v25 = vmul.f32 %v2321_v31, %v1905_v62 }
 0x232   : > { %6203 = vst [vmem:[#allocation57_spill] sm:$0xff] %v5152_v22  ;;  %v2307_v49 = vsub.f32 0.0, %v1891_v26  ;;  %v1923_v4 = vmul.f32 0.3275911, %v1891_v26  ;;  %3487 = vrcp.f32 %v1965_v59  ;;  %v2396_v59 = vmul.f32 1.442695, %v2350_v44 }
 0x233   : > { %v1806_v51 = vpop.f32.mrf.mxu3  ;;  %6204 = vst [vmem:[#allocation58_spill] sm:$0xff] %v5157_v30  ;;  %v1906_v2 = vand.u32 2147483647, %v5157_v30  ;;  %3489 = vpow2.f32 %v2394_v33  ;;  %v5201_v62 = vmul.f32 0.5, %v5074_v39  ;;  %v2402_v16 = vmul.f32 1.442695, %v2353_v25 }
 0x234   : > { %v5149_v0 = vadd.f32 %v1806_v51, %v5011_v27  ;;  %6205 = vst [vmem:[#allocation59_spill] sm:$0xff] %v5159_v12  ;;  %v1968_v27 = vadd.f32 1.0, %v1936_v38  ;;  %v5164_v51 = vpop.eup %3477  ;;  %v2339_v38 = vmul.f32 %v2307_v49, %v1891_v26  ;;  %3491 = vrcp.f32 %v1966_v37 }
 0x235   : > { %6207 = vst [vmem:[#allocation61_spill] sm:$0xff] %v5164_v51  ;;  %v5167_v28 = vpop.eup %3479  ;;  %v1955_v33 = vadd.f32 1.0, %v1923_v4  ;;  %v2322_v36 = vsub.f32 0.0, %v1906_v2  ;;  %v1938_v37 = vmul.f32 0.3275911, %v1906_v2  ;;  %v5198_v4 = vmul.f32 0.5, %v5064_v14 }
 0x236   : > { %6202 = vst [vmem:[#allocation56_spill] sm:$0xff] %v5149_v0  ;;  %v5162_v9 = vmul.f32 0.70710677, %v5149_v0  ;;  %v5174_v0 = vadd.f32 %v1729_v40, %v4990_v15  ;;  %v5176_v11 = vpop.eup %3481  ;;  %3493 = vrcp.f32 %v1968_v27  ;;  %v1787_v31 = vpop.f32.mrf.mxu2  ;;  %v5219_v25 = vmul.f32 0.5, %v5090_v18 }
 0x237   : > { %6208 = vst [vmem:[#allocation62_spill] sm:$0xff] %v5167_v28  ;;  %v5181_v13 = vpop.eup %3483  ;;  %3495 = vpow2.f32 %v2396_v59  ;;  %v1970_v7 = vadd.f32 1.0, %v1938_v37  ;;  %v1788_v43 = vadd.f32 %v1787_v31, %v4990_v15 }
 0x238   : > { %6206 = vst [vmem:[#allocation60_spill] sm:$0xff] %v5162_v9  ;;  %v1895_v10 = vand.u32 2147483647, %v5162_v9  ;;  %v2400_v9 = vmul.f32 1.442695, %v2352_v34  ;;  %v5189_v49 = vpop.eup %3485 }
 0x239   : > { %6210 = vst [vmem:[#allocation64_spill] sm:$0xff] %v5176_v11  ;;  %v5184_v60 = vmul.f32 0.70710677, %v5174_v0  ;;  %v5187_v11 = vadd.f32 %v1758_v53, %v4990_v15  ;;  %v5195_v27 = vpop.eup %3487  ;;  %v2374_v34 = vmul.f32 1.442695, %v2339_v38  ;;  %v2354_v38 = vmul.f32 %v2322_v36, %v1906_v2 }
 0x23a   : > { %6211 = vst [vmem:[#allocation65_spill] sm:$0xff] %v5179_v50  ;;  %v2311_v57 = vsub.f32 0.0, %v1895_v10  ;;  %v5203_v53 = vpop.eup %3489  ;;  %v1927_v50 = vmul.f32 0.3275911, %v1895_v10  ;;  %3497 = vpow2.f32 %v2400_v9  ;;  %v5221_v36 = vmul.f32 0.70710677, %v1788_v43 }
 0x23b   : > { %v1809_v40 = vpop.f32.mrf.mxu3  ;;  %6212 = vst [vmem:[#allocation66_spill] sm:$0xff] %v5189_v49  ;;  %v1908_v26 = vand.u32 2147483647, %v5184_v60  ;;  %v5208_v8 = vpop.eup %3491  ;;  %v5211_v14 = vmul.f32 0.70710677, %v5187_v11  ;;  %3499 = vrcp.f32 %v1955_v33  ;;  %vm2516_vm1 = vcmp.ge.f32.partialorder %v5184_v60, 0.0 }
 0x23c   : > { %v5192_v44 = vadd.f32 %v1809_v40, %v4992_v63  ;;  %6214 = vst [vmem:[#allocation68_spill] sm:$0xff] %v5198_v4  ;;  %v1969_v40 = vadd.f32 1.0, %v1937_v42  ;;  %v5213_v39 = vpop.eup %3493  ;;  %v2343_v59 = vmul.f32 %v2311_v57, %v1895_v10  ;;  %3501 = vpow2.f32 %v2374_v34 }
 0x23d   : > { %6215 = vst [vmem:[#allocation69_spill] sm:$0xff] %v5201_v62  ;;  %v2324_v32 = vsub.f32 0.0, %v1908_v26  ;;  %v1940_v9 = vmul.f32 0.3275911, %v1908_v26  ;;  %v1909_v42 = vand.u32 2147483647, %v5211_v14  ;;  %v5223_v2 = vpop.eup %3495 }
 0x23e   : > { %6213 = vst [vmem:[#allocation67_spill] sm:$0xff] %v5192_v44  ;;  %v5206_v63 = vmul.f32 0.70710677, %v5192_v44  ;;  %3503 = vrcp.f32 %v1969_v40  ;;  %v5226_v10 = vmul.f32 0.5, %v5097_v1  ;;  %v2404_v57 = vmul.f32 1.442695, %v2354_v38  ;;  %v1732_v1 = vpop.f32.mrf.mxu0  ;;  %v1790_v54 = vpop.f32.mrf.mxu2 }
 0x23f   : > { %6216 = vst [vmem:[#allocation70_spill] sm:$0xff] %v5203_v53  ;;  %3505 = vpow2.f32 %v2402_v16  ;;  %v2356_v37 = vmul.f32 %v2324_v32, %v1908_v26  ;;  %v2382_v31 = vmul.f32 1.442695, %v2343_v59  ;;  %v2325_v18 = vsub.f32 0.0, %v1909_v42 }
 0x240   : > { %6217 = vst [vmem:[#allocation71_spill] sm:$0xff] %v5206_v63  ;;  %v1899_v44 = vand.u32 2147483647, %v5206_v63  ;;  %v5228_v34 = vpop.eup %3497  ;;  %v1910_v40 = vand.u32 2147483647, %v5221_v36  ;;  %v5235_v63 = vmul.f32 0.5, %v5132_v46  ;;  %3507 = vrcp.f32 %v1970_v7 }
 0x241   : > { %6218 = vst [vmem:[#allocation72_spill] sm:$0xff] %v5208_v8  ;;  %v1959_v8 = vadd.f32 1.0, %v1927_v50  ;;  %v5237_v41 = vpop.eup %3499  ;;  %v1941_v26 = vmul.f32 0.3275911, %v1909_v42  ;;  %v5245_v59 = vmul.f32 0.5, %v5146_v52  ;;  %v5248_v46 = vmul.f32 0.5, %v5174_v0 }
 0x242   : > { %6219 = vst [vmem:[#allocation73_spill] sm:$0xff] %v5219_v25  ;;  %v1931_v25 = vmul.f32 0.3275911, %v1899_v44  ;;  %v2315_v32 = vsub.f32 0.0, %v1899_v44  ;;  %v5242_v38 = vpop.eup %3501  ;;  %v2408_v7 = vmul.f32 1.442695, %v2356_v37  ;;  %v1791_v61 = vadd.f32 %v1790_v54, %v4986_v3 }
 0x243   : > { %6220 = vst [vmem:[#allocation74_spill] sm:$0xff] %v5221_v36  ;;  %v1811_v33 = vpop.f32.mrf.mxu3  ;;  %3509 = vrcp.f32 %v1959_v8  ;;  %v2357_v8 = vmul.f32 %v2325_v18, %v1909_v42  ;;  %v1942_v0 = vmul.f32 0.3275911, %v1910_v40  ;;  %v5262_v42 = vmul.f32 0.5, %v5187_v11 }
 0x244   : > { %6221 = vst [vmem:[#allocation75_spill] sm:$0xff] %v5223_v2  ;;  %v5231_v50 = vadd.f32 %v1811_v33, %v5057_v48  ;;  %v1972_v2 = vadd.f32 1.0, %v1940_v9  ;;  %v1761_v48 = vpop.f32.mrf.mxu1  ;;  %3511 = vpow2.f32 %v2404_v57  ;;  %v5250_v9 = vpop.eup %3503  ;;  %v2326_v33 = vsub.f32 0.0, %v1910_v40 }
 0x245   : > { %6223 = vst [vmem:[#allocation77_spill] sm:$0xff] %v5237_v41  ;;  %3513 = vpow2.f32 %v2382_v31  ;;  %v5253_v41 = vpop.eup %3505  ;;  %v1963_v28 = vadd.f32 1.0, %v1931_v25  ;;  %v1762_v52 = vadd.f32 %v1761_v48, %v4986_v3  ;;  %v2347_v57 = vmul.f32 %v2315_v32, %v1899_v44 }
 0x246   : > { %6222 = vst [vmem:[#allocation76_spill] sm:$0xff] %v5231_v50  ;;  %v5240_v16 = vmul.f32 0.70710677, %v5231_v50  ;;  %v1733_v50 = vadd.f32 %v1732_v1, %v4986_v3  ;;  %3515 = vrcp.f32 %v1972_v2  ;;  %v5259_v37 = vpop.eup %3507  ;;  %v5264_v18 = vmul.f32 0.5, %v1788_v43  ;;  %v1734_v30 = vpop.f32.mrf.mxu0 }
 0x247   : > { %6225 = vst [vmem:[#allocation79_spill] sm:$0xff] %v5242_v38  ;;  %3517 = vpow2.f32 %v2408_v7  ;;  %v5266_v25 = vmul.f32 0.70710677, %v1762_v52  ;;  %v2410_v44 = vmul.f32 1.442695, %v2357_v8  ;;  %v2358_v32 = vmul.f32 %v2326_v33, %v1910_v40 }
 0x248   : > { %6224 = vst [vmem:[#allocation78_spill] sm:$0xff] %v5240_v16  ;;  %v1903_v38 = vand.u32 2147483647, %v5240_v16  ;;  %v5257_v5 = vmul.f32 0.70710677, %v1733_v50  ;;  %3519 = vrcp.f32 %v1963_v28  ;;  %v1735_v54 = vadd.f32 %v1734_v30, %v4988_v29 }
 0x249   : > { %6226 = vst [vmem:[#allocation80_spill] sm:$0xff] %v5245_v59  ;;  %v1973_v59 = vadd.f32 1.0, %v1941_v26  ;;  %v5268_v1 = vpop.eup %3509  ;;  %v1913_v11 = vand.u32 2147483647, %v5266_v25  ;;  %v5287_v35 = vmul.f32 0.70710677, %v1791_v61 }
 0x24a   : > { %6227 = vst [vmem:[#allocation81_spill] sm:$0xff] %v5259_v37  ;;  %v1912_v26 = vand.u32 2147483647, %v5257_v5  ;;  %v5272_v48 = vpop.eup %3511  ;;  %v1935_v16 = vmul.f32 0.3275911, %v1903_v38  ;;  %v2319_v7 = vsub.f32 0.0, %v1903_v38 }
 0x24b   : > { %v1814_v31 = vpop.f32.mrf.mxu3  ;;  %6228 = vst [vmem:[#allocation82_spill] sm:$0xff] %v5264_v18  ;;  %v5275_v43 = vpop.eup %3513  ;;  %v5277_v18 = vmul.f32 1.442695, %v2347_v57  ;;  %3521 = vrcp.f32 %v1973_v59  ;;  %vm2520_vm12 = vcmp.ge.f32.partialorder %v5257_v5, 0.0  ;;  %vm2521_vm13 = vcmp.ge.f32.partialorder %v5266_v25, 0.0 }
 0x24c   : > { %6229 = vst [vmem:[#allocation83_spill] sm:$0xff] %v5268_v1  ;;  %v1815_v2 = vadd.f32 %v1814_v31, %v5034_v24  ;;  %v1974_v24 = vadd.f32 1.0, %v1942_v0  ;;  %v5281_v8 = vpop.eup %3515  ;;  %v1944_v40 = vmul.f32 0.3275911, %v1912_v26  ;;  %v2328_v33 = vsub.f32 0.0, %v1912_v26 }
 0x24d   : > { %6230 = vst [vmem:[#allocation84_spill] sm:$0xff] %v5272_v48  ;;  %v1945_v31 = vmul.f32 0.3275911, %v1913_v11  ;;  %v2329_v1 = vsub.f32 0.0, %v1913_v11  ;;  %3523 = vpow2.f32 %v2410_v44  ;;  %v2412_v48 = vmul.f32 1.442695, %v2358_v32 }
 0x24e   : > { %6231 = vst [vmem:[#allocation85_spill] sm:$0xff] %v5275_v43  ;;  %v5279_v36 = vmul.f32 0.70710677, %v1815_v2  ;;  %v5285_v43 = vpop.eup %3517  ;;  %v1967_v57 = vadd.f32 1.0, %v1935_v16  ;;  %v1976_v19 = vadd.f32 1.0, %v1944_v40  ;;  %v2360_v59 = vmul.f32 %v2328_v33, %v1912_v26 }
 0x24f   : > { %6232 = vst [vmem:[#allocation86_spill] sm:$0xff] %v5277_v18  ;;  %v2351_v18 = vmul.f32 %v2319_v7, %v1903_v38  ;;  %v2361_v47 = vmul.f32 %v2329_v1, %v1913_v11  ;;  %v5289_v21 = vpop.eup %3519  ;;  %3525 = vrcp.f32 %v1974_v24  ;;  %v5291_v44 = vmul.f32 0.5, %v1733_v50  ;;  %v1763_v24 = vpop.f32.mrf.mxu1 }
 0x250   : > { %6233 = vst [vmem:[#allocation87_spill] sm:$0xff] %v5279_v36  ;;  %v1907_v28 = vand.u32 2147483647, %v5279_v36  ;;  %v1977_v32 = vadd.f32 1.0, %v1945_v31  ;;  %3527 = vpow2.f32 %v2412_v48  ;;  %v2416_v38 = vmul.f32 1.442695, %v2360_v59 }
 0x251   : > { %6234 = vst [vmem:[#allocation88_spill] sm:$0xff] %v5289_v21  ;;  %v5294_v4 = vpop.eup %3521  ;;  %v5297_v26 = vmul.f32 0.5, %v1762_v52  ;;  %3529 = vrcp.f32 %v1967_v57  ;;  %v1914_v11 = vand.u32 2147483647, %v5287_v35  ;;  %v5302_v50 = vmul.f32 1.442695, %v2351_v18 }
 0x252   : > { %v1939_v0 = vmul.f32 0.3275911, %v1907_v28  ;;  %v2323_v62 = vsub.f32 0.0, %v1907_v28  ;;  %3531 = vrcp.f32 %v1976_v19  ;;  %v2418_v30 = vmul.f32 1.442695, %v2361_v47 }
 0x253   : > { %v1816_v36 = vpop.f32.mrf.mxu3  ;;  %v5300_v40 = vpop.eup %3523  ;;  %6235 = vst [vmem:[#allocation89_spill] sm:$0xff] %v5302_v50  ;;  %3533 = vrcp.f32 %v1977_v32  ;;  %v1946_v48 = vmul.f32 0.3275911, %v1914_v11  ;;  %v5308_v52 = vmul.f32 0.5, %v1815_v2  ;;  %v1764_v31 = vadd.f32 %v1763_v24, %v4988_v29 }
 0x254   : > { %v1817_v16 = vadd.f32 %v1816_v36, %v4990_v15  ;;  %v1971_v1 = vadd.f32 1.0, %v1939_v0  ;;  %v2355_v7 = vmul.f32 %v2323_v62, %v1907_v28  ;;  %v2330_v15 = vsub.f32 0.0, %v1914_v11 }
 0x255   : > { %v5306_v36 = vmul.f32 0.70710677, %v1735_v54  ;;  %6237 = vst [vmem:[#allocation91_spill] sm:$0xff] %v5308_v52  ;;  %3535 = vpow2.f32 %v2416_v38  ;;  %v5312_v28 = vpop.eup %3525  ;;  %v1978_v32 = vadd.f32 1.0, %v1946_v48  ;;  %v5317_v50 = vmul.f32 0.70710677, %v1764_v31 }
 0x256   : > { %v5304_v33 = vmul.f32 0.70710677, %v1817_v16  ;;  %6238 = vst [vmem:[#allocation92_spill] sm:$0xff] %v5312_v28  ;;  %3537 = vrcp.f32 %v1971_v1  ;;  %v2406_v18 = vmul.f32 1.442695, %v2355_v7  ;;  %v2362_v57 = vmul.f32 %v2330_v15, %v1914_v11  ;;  %v5315_v47 = vpop.eup %3527 }
 0x257   : > { %v1916_v19 = vand.u32 2147483647, %v5306_v36  ;;  %6239 = vst [vmem:[#allocation93_spill] sm:$0xff] %v5315_v47  ;;  %v5319_v2 = vpop.eup %3529  ;;  %3539 = vpow2.f32 %v2418_v30  ;;  %v5321_v38 = vmul.f32 0.5, %v1791_v61  ;;  %v5329_v48 = vmul.f32 0.5, %v1735_v54  ;;  %v1792_v61 = vpop.f32.mrf.mxu2 }
 0x258   : > { %6236 = vst [vmem:[#allocation90_spill] sm:$0xff] %v5304_v33  ;;  %v1911_v62 = vand.u32 2147483647, %v5304_v33  ;;  %v5323_v1 = vpop.eup %3531  ;;  %v2420_v11 = vmul.f32 1.442695, %v2362_v57  ;;  %3541 = vpow2.f32 %v2406_v18  ;;  %v5333_v53 = vmul.f32 0.5, %v1817_v16 }
 0x259   : > { %6240 = vst [vmem:[#allocation94_spill] sm:$0xff] %v5319_v2  ;;  %v1948_v21 = vmul.f32 0.3275911, %v1916_v19  ;;  %v2332_v52 = vsub.f32 0.0, %v1916_v19  ;;  %v1917_v33 = vand.u32 2147483647, %v5317_v50  ;;  %v5327_v47 = vpop.eup %3533  ;;  %3543 = vrcp.f32 %v1978_v32 }
 0x25a   : > { %v1943_v59 = vmul.f32 0.3275911, %v1911_v62  ;;  %v2327_v0 = vsub.f32 0.0, %v1911_v62  ;;  %6241 = vst [vmem:[#allocation95_spill] sm:$0xff] %v5321_v38  ;;  %vm2524_vm14 = vcmp.ge.f32.partialorder %v5306_v36, 0.0  ;;  %vm2525_vm0 = vcmp.ge.f32.partialorder %v5317_v50, 0.0 }
 0x25b   : > { %v1819_v24 = vpop.f32.mrf.mxu3  ;;  %v1980_v2 = vadd.f32 1.0, %v1948_v21  ;;  %v2364_v30 = vmul.f32 %v2332_v52, %v1916_v19  ;;  %v5331_v22 = vpop.eup %3535  ;;  %6242 = vst [vmem:[#allocation96_spill] sm:$0xff] %v5333_v53  ;;  %v2333_v18 = vsub.f32 0.0, %v1917_v33  ;;  %v1793_v52 = vadd.f32 %v1792_v61, %v4988_v29 }
 0x25c   : > { %v2359_v7 = vmul.f32 %v2327_v0, %v1911_v62  ;;  %v1820_v15 = vadd.f32 %v1819_v24, %v4986_v3  ;;  %v1975_v51 = vadd.f32 1.0, %v1943_v59  ;;  %v5337_v57 = vpop.eup %3537  ;;  %v5339_v3 = vmul.f32 0.5, %v1764_v31 }
 0x25d   : > { %6243 = vst [vmem:[#allocation97_spill] sm:$0xff] %v5337_v57  ;;  %3545 = vrcp.f32 %v1980_v2  ;;  %v1949_v0 = vmul.f32 0.3275911, %v1917_v33  ;;  %v5343_v19 = vpop.eup %3539  ;;  %v2424_v16 = vmul.f32 1.442695, %v2364_v30  ;;  %v2365_v32 = vmul.f32 %v2333_v18, %v1917_v33 }
 0x25e   : > { %v5335_v62 = vmul.f32 0.70710677, %v1820_v15  ;;  %v2414_v54 = vmul.f32 1.442695, %v2359_v7  ;;  %3547 = vpow2.f32 %v2420_v11  ;;  %v2040_v24 = vmul.f32 1.0614054, %v5323_v1  ;;  %v5348_v57 = vpop.eup %3541 }
 0x25f   : > { %v1981_v59 = vadd.f32 1.0, %v1949_v0  ;;  %3549 = vrcp.f32 %v1975_v51  ;;  %v5346_v31 = vmul.f32 0.70710677, %v1793_v52  ;;  %6244 = vst [vmem:[#allocation98_spill] sm:$0xff] %v5348_v57  ;;  %v2426_v7 = vmul.f32 1.442695, %v2365_v32  ;;  %v5351_v28 = vpop.eup %3543 }
 0x260   : > { %v1915_v21 = vand.u32 2147483647, %v5335_v62  ;;  %v2072_v58 = vadd.f32 -1.4531521, %v2040_v24  ;;  %v2041_v61 = vmul.f32 1.0614054, %v5327_v47 }
 0x261   : > { %3551 = vrcp.f32 %v1981_v59  ;;  %v5353_v30 = vmul.f32 0.5, %v1820_v15  ;;  %v1918_v51 = vand.u32 2147483647, %v5346_v31  ;;  %vm2517_vm3 = vcmp.ge.f32.partialorder %v5211_v14, 0.0 }
 0x262   : > { %v1947_v53 = vmul.f32 0.3275911, %v1915_v21  ;;  %v2331_v2 = vsub.f32 0.0, %v1915_v21  ;;  %3553 = vpow2.f32 %v2414_v54  ;;  %v2104_v59 = vmul.f32 %v5323_v1, %v2072_v58 }
 0x263   : > { %v1821_v11 = vpop.f32.mrf.mxu3  ;;  %6245 = vst [vmem:[#allocation99_spill] sm:$0xff] %v5353_v30  ;;  %v5356_v18 = vpop.eup %3545  ;;  %v2073_v32 = vadd.f32 -1.4531521, %v2041_v61  ;;  %3555 = vpow2.f32 %v2424_v16  ;;  %v1950_v23 = vmul.f32 0.3275911, %v1918_v51  ;;  %v2334_v37 = vsub.f32 0.0, %v1918_v51 }
 0x264   : > { %v1979_v33 = vadd.f32 1.0, %v1947_v53  ;;  %v2363_v0 = vmul.f32 %v2331_v2, %v1915_v21  ;;  %v1822_v49 = vadd.f32 %v1821_v11, %v4988_v29  ;;  %v5360_v57 = vpop.eup %3547  ;;  %3557 = vpow2.f32 %v2426_v7 }
 0x265   : > { %v2044_v53 = vmul.f32 1.0614054, %v5356_v18  ;;  %v2105_v21 = vmul.f32 %v5327_v47, %v2073_v32  ;;  %v5366_v2 = vpop.eup %3549  ;;  %v1982_v29 = vadd.f32 1.0, %v1950_v23  ;;  %v2366_v54 = vmul.f32 %v2334_v37, %v1918_v51 }
 0x266   : > { %v2422_v24 = vmul.f32 1.442695, %v2363_v0  ;;  %v5362_v15 = vmul.f32 0.70710677, %v1822_v49  ;;  %6247 = vst [vmem:[#allocation101_spill] sm:$0xff] %v5366_v2  ;;  %3559 = vrcp.f32 %v1979_v33  ;;  %v5370_v61 = vmul.f32 0.5, %v1793_v52 }
 0x267   : > { %v2136_v58 = vadd.f32 1.4214138, %v2104_v59  ;;  %v5368_v11 = vpop.eup %3551  ;;  %v2076_v7 = vadd.f32 -1.4531521, %v2044_v53  ;;  %v2428_v0 = vmul.f32 1.442695, %v2366_v54 }
 0x268   : > { %6246 = vst [vmem:[#allocation100_spill] sm:$0xff] %v5362_v15  ;;  %3561 = vpow2.f32 %v2422_v24  ;;  %v1919_v16 = vand.u32 2147483647, %v5362_v15  ;;  %v2045_v32 = vmul.f32 1.0614054, %v5368_v11  ;;  %v5375_v12 = vpop.eup %3553  ;;  %vm2522_vm4 = vcmp.ge.f32.partialorder %v5287_v35, 0.0 }
 0x269   : > { %6248 = vst [vmem:[#allocation102_spill] sm:$0xff] %v5370_v61  ;;  %3563 = vrcp.f32 %v1982_v29  ;;  %v2168_v30 = vmul.f32 %v5323_v1, %v2136_v58  ;;  %v2108_v37 = vmul.f32 %v5356_v18, %v2076_v7  ;;  %v2137_v51 = vadd.f32 1.4214138, %v2105_v21  ;;  %v5378_v59 = vpop.eup %3555 }
 0x26a   : > { %6249 = vst [vmem:[#allocation103_spill] sm:$0xff] %v5375_v12  ;;  %v1951_v33 = vmul.f32 0.3275911, %v1919_v16  ;;  %v2335_v23 = vsub.f32 0.0, %v1919_v16  ;;  %3565 = vpow2.f32 %v2428_v0  ;;  %v2077_v24 = vadd.f32 -1.4531521, %v2045_v32  ;;  %v5381_v29 = vpop.eup %3557 }
 0x26b   : > { %v2200_v52 = vadd.f32 -0.28449672, %v2168_v30  ;;  %v2032_v53 = vmul.f32 1.0614054, %v5213_v39  ;;  %v2140_v2 = vadd.f32 1.4214138, %v2108_v37  ;;  %v2169_v61 = vmul.f32 %v5327_v47, %v2137_v51 }
 0x26c   : > { %v1983_v54 = vadd.f32 1.0, %v1951_v33  ;;  %v2367_v58 = vmul.f32 %v2335_v23, %v1919_v16  ;;  %v5384_v12 = vpop.eup %3559  ;;  %v2109_v21 = vmul.f32 %v5368_v11, %v2077_v24  ;;  %v2036_v7 = vmul.f32 1.0614054, %v5281_v8 }
 0x26d   : > { %v2232_v38 = vmul.f32 %v5323_v1, %v2200_v52  ;;  %v2064_v0 = vadd.f32 -1.4531521, %v2032_v53  ;;  %v5391_v32 = vmul.f32 0.5, %v1822_v49  ;;  %v2172_v33 = vmul.f32 %v5356_v18, %v2140_v2 }
 0x26e   : > { %v5389_v30 = vpop.eup %3561  ;;  %3567 = vrcp.f32 %v1983_v54  ;;  %v2201_v16 = vadd.f32 -0.28449672, %v2169_v61  ;;  %v2141_v51 = vadd.f32 1.4214138, %v2109_v21  ;;  %v2068_v6 = vadd.f32 -1.4531521, %v2036_v7 }
 0x26f   : > { %6250 = vst [vmem:[#allocation104_spill] sm:$0xff] %v5389_v30  ;;  %v5394_v23 = vpop.eup %3563  ;;  %v2264_v37 = vadd.f32 0.2548296, %v2232_v38  ;;  %v2096_v52 = vmul.f32 %v5213_v39, %v2064_v0  ;;  %v2430_v24 = vmul.f32 1.442695, %v2367_v58  ;;  %vm2526_vm8 = vcmp.ge.f32.partialorder %v5346_v31, 0.0 }
 0x270   : > { %6251 = vst [vmem:[#allocation105_spill] sm:$0xff] %v5391_v32  ;;  %v2204_v20 = vadd.f32 -0.28449672, %v2172_v33  ;;  %v2233_v53 = vmul.f32 %v5327_v47, %v2201_v16  ;;  %v2033_v49 = vmul.f32 1.0614054, %v5250_v9  ;;  %v5400_v32 = vpop.eup %3565  ;;  %v2173_v61 = vmul.f32 %v5368_v11, %v2141_v51  ;;  %v6256_v31 = vld [vmem:[#allocation95_spill] sm:$0xff] }
 0x271   : > { %v2296_v2 = vmul.f32 %v5323_v1, %v2264_v37  ;;  %v2100_v38 = vmul.f32 %v5281_v8, %v2068_v6  ;;  %v2128_v54 = vadd.f32 1.4214138, %v2096_v52  ;;  %v2037_v0 = vmul.f32 1.0614054, %v5294_v4 }
 0x272   : > { %v2236_v21 = vmul.f32 %v5356_v18, %v2204_v20  ;;  %v2265_v7 = vadd.f32 0.2548296, %v2233_v53  ;;  %v2065_v58 = vadd.f32 -1.4531521, %v2033_v49  ;;  %v2205_v16 = vadd.f32 -0.28449672, %v2173_v61 }
 0x273   : > { %v2456_v33 = vmul.f32 %v5331_v22, %v2296_v2  ;;  %v2132_v30 = vadd.f32 1.4214138, %v2100_v38  ;;  %v2160_v15 = vmul.f32 %v5213_v39, %v2128_v54  ;;  %v2069_v51 = vadd.f32 -1.4531521, %v2037_v0 }
 0x274   : > { %v5410_v1 = vpop.eup %3567  ;;  %v2268_v37 = vadd.f32 0.2548296, %v2236_v21  ;;  %v2297_v6 = vmul.f32 %v5327_v47, %v2265_v7  ;;  %v2097_v20 = vmul.f32 %v5250_v9, %v2065_v58  ;;  %v2237_v53 = vmul.f32 %v5368_v11, %v2205_v16 }
 0x275   : > { %v2488_v52 = vsub.f32 1.0, %v2456_v33  ;;  %v2164_v49 = vmul.f32 %v5281_v8, %v2132_v30  ;;  %v2192_v22 = vadd.f32 -0.28449672, %v2160_v15  ;;  %v2101_v38 = vmul.f32 %v5294_v4, %v2069_v51 }
 0x276   : > { %v2300_v2 = vmul.f32 %v5356_v18, %v2268_v37  ;;  %v2457_v61 = vmul.f32 %v5343_v19, %v2297_v6  ;;  %v2129_v54 = vadd.f32 1.4214138, %v2097_v20  ;;  %v2269_v47 = vadd.f32 0.2548296, %v2237_v53 }
 0x277   : > { %v2552_v21 = vsub.f32 0.0, %v2488_v52  ;;  %v2196_v7 = vadd.f32 -0.28449672, %v2164_v49  ;;  %v2224_v0 = vmul.f32 %v5213_v39, %v2192_v22  ;;  %v2133_v16 = vadd.f32 1.4214138, %v2101_v38 }
 0x278   : > { %v2460_v58 = vmul.f32 %v5378_v59, %v2300_v2  ;;  %v2489_v33 = vsub.f32 1.0, %v2457_v61  ;;  %v2161_v15 = vmul.f32 %v5250_v9, %v2129_v54  ;;  %v2301_v19 = vmul.f32 %v5368_v11, %v2269_v47 }
 0x279   : > { %v2584_v18 = vsel %vm2520_vm12, %v2488_v52, %v2552_v21  ;;  %v2228_v30 = vmul.f32 %v5281_v8, %v2196_v7  ;;  %v2256_v37 = vadd.f32 0.2548296, %v2224_v0  ;;  %v2165_v53 = vmul.f32 %v5294_v4, %v2133_v16 }
 0x27a   : > { %v2492_v6 = vsub.f32 1.0, %v2460_v58  ;;  %v2616_v51 = vadd.f32 1.0, %v2584_v18  ;;  %v2553_v20 = vsub.f32 0.0, %v2489_v33  ;;  %v2461_v59 = vmul.f32 %v5381_v29, %v2301_v19 }
 0x27b   : > { %v2260_v49 = vadd.f32 0.2548296, %v2228_v30  ;;  %v2288_v22 = vmul.f32 %v5213_v39, %v2256_v37  ;;  %v2193_v2 = vadd.f32 -0.28449672, %v2161_v15  ;;  %3569 = vpow2.f32 %v2430_v24 }
 0x27c   : > { %v2556_v5 = vsub.f32 0.0, %v2492_v6  ;;  %v2585_v11 = vsel %vm2521_vm13, %v2489_v33, %v2553_v20  ;;  %v2197_v52 = vadd.f32 -0.28449672, %v2165_v53  ;;  %v2493_v61 = vsub.f32 1.0, %v2461_v59 }
 0x27d   : > { %v2617_v38 = vadd.f32 1.0, %v2585_v11  ;;  %v2292_v54 = vmul.f32 %v5281_v8, %v2260_v49  ;;  %v2448_v21 = vmul.f32 %v5228_v34, %v2288_v22  ;;  %v2648_v39 = vmul.f32 %v2616_v51, %v5291_v44 }
 0x27e   : > { %v2588_v29 = vsel %vm2524_vm14, %v2492_v6, %v2556_v5  ;;  %v2225_v47 = vmul.f32 %v5250_v9, %v2193_v2  ;;  %v2229_v24 = vmul.f32 %v5294_v4, %v2197_v52  ;;  %v2557_v0 = vsub.f32 0.0, %v2493_v61 }
 0x27f   : > { %v2620_v7 = vadd.f32 1.0, %v2588_v29  ;;  %v2452_v25 = vmul.f32 %v5285_v43, %v2292_v54  ;;  %v2042_v58 = vmul.f32 1.0614054, %v5351_v28  ;;  %v2649_v33 = vmul.f32 %v2617_v38, %v5297_v26 }
 0x280   : > { %v2480_v8 = vsub.f32 1.0, %v2448_v21  ;;  %v2257_v16 = vadd.f32 0.2548296, %v2225_v47  ;;  %v2261_v34 = vadd.f32 0.2548296, %v2229_v24  ;;  %v2589_v36 = vsel %vm2525_vm0, %v2493_v61, %v2557_v0 }
 0x281   : > { %v2652_v44 = vmul.f32 %v2620_v7, %v5329_v48  ;;  %v2484_v15 = vsub.f32 1.0, %v2452_v25  ;;  %v2046_v18 = vmul.f32 1.0614054, %v5394_v23  ;;  %v5451_v43 = vpop.eup %3569  ;;  %v2621_v19 = vadd.f32 1.0, %v2589_v36 }
 0x282   : > { %v2544_v30 = vsub.f32 0.0, %v2480_v8  ;;  %v2289_v26 = vmul.f32 %v5250_v9, %v2257_v16  ;;  %v2293_v37 = vmul.f32 %v5294_v4, %v2261_v34  ;;  %v2074_v20 = vadd.f32 -1.4531521, %v2042_v58 }
 0x283   : > { %v2672_v6 = vpack.c.bf16 %v2652_v44, %v2648_v39  ;;  %v2548_v51 = vsub.f32 0.0, %v2484_v15  ;;  %v2078_v53 = vadd.f32 -1.4531521, %v2046_v18  ;;  %v2653_v48 = vmul.f32 %v2621_v19, %v5339_v3 }
 0x284   : > { %v2576_v50 = vsel %vm2512_vm15, %v2480_v8, %v2544_v30  ;;  %v2449_v59 = vmul.f32 %v5253_v41, %v2289_v26  ;;  %v2453_v49 = vmul.f32 %v5300_v40, %v2293_v37  ;;  %v2106_v4 = vmul.f32 %v5351_v28, %v2074_v20 }
 0x285   : > { %2721 = vmatpush.bf16.msrb.mxu0 %v2672_v6  ;;  %v2580_v22 = vsel %vm2516_vm1, %v2484_v15, %v2548_v51  ;;  %v2608_v9 = vadd.f32 1.0, %v2576_v50  ;;  %v2110_v2 = vmul.f32 %v5394_v23, %v2078_v53  ;;  %v2673_v5 = vpack.c.bf16 %v2653_v48, %v2649_v33 }
 0x286   : > { %v2612_v11 = vadd.f32 1.0, %v2580_v22  ;;  %v2481_v52 = vsub.f32 1.0, %v2449_v59  ;;  %v2485_v3 = vsub.f32 1.0, %v2453_v49  ;;  %v2138_v61 = vadd.f32 1.4214138, %v2106_v4 }
 0x287   : > { %v2640_v55 = vmul.f32 %v2608_v9, %v5226_v10  ;;  %v2142_v38 = vadd.f32 1.4214138, %v2110_v2  ;;  %v2043_v41 = vmul.f32 1.0614054, %v5384_v12  ;;  %2740 = vmatpush.bf16.msrb.mxu1 %v2673_v5  ;;  %v2047_v21 = vmul.f32 1.0614054, %v5410_v1 }
 0x288   : > { %v2644_v40 = vmul.f32 %v2612_v11, %v5248_v46  ;;  %v2545_v60 = vsub.f32 0.0, %v2481_v52  ;;  %v2549_v54 = vsub.f32 0.0, %v2485_v3  ;;  %v2170_v29 = vmul.f32 %v5351_v28, %v2138_v61 }
 0x289   : > { %v2174_v39 = vmul.f32 %v5394_v23, %v2142_v38  ;;  %v2075_v47 = vadd.f32 -1.4531521, %v2043_v41  ;;  %v2024_v24 = vmul.f32 1.0614054, %v5142_v45  ;;  %v2079_v25 = vadd.f32 -1.4531521, %v2047_v21 }
 0x28a   : > { %v2668_v7 = vpack.c.bf16 %v2644_v40, %v2640_v55  ;;  %v2577_v10 = vsel %vm2513_vm2, %v2481_v52, %v2545_v60  ;;  %v2581_v0 = vsel %vm2517_vm3, %v2485_v3, %v2549_v54  ;;  %v2202_v33 = vadd.f32 -0.28449672, %v2170_v29 }
 0x28b   : > { %v2609_v46 = vadd.f32 1.0, %v2577_v10  ;;  %v2613_v58 = vadd.f32 1.0, %v2581_v0  ;;  %v2206_v8 = vadd.f32 -0.28449672, %v2174_v39  ;;  %v2107_v16 = vmul.f32 %v5384_v12, %v2075_v47  ;;  %v6252_v47 = vld [vmem:[#allocation100_spill] sm:$0xff] }
 0x28c   : > { %2722 = vmatpush.bf16.msrb.mxu0 %v2668_v7  ;;  %v2111_v34 = vmul.f32 %v5410_v1, %v2079_v25  ;;  %v2028_v44 = vmul.f32 1.0614054, %v5181_v13  ;;  %v2056_v36 = vadd.f32 -1.4531521, %v2024_v24  ;;  %v2234_v14 = vmul.f32 %v5351_v28, %v2202_v33 }
 0x28d   : > { %v2641_v15 = vmul.f32 %v2609_v46, %v5235_v63  ;;  %v2645_v17 = vmul.f32 %v2613_v58, %v5262_v42  ;;  %v2238_v18 = vmul.f32 %v5394_v23, %v2206_v8  ;;  %v2139_v19 = vadd.f32 1.4214138, %v2107_v16 }
 0x28e   : > { %v2143_v30 = vadd.f32 1.4214138, %v2111_v34  ;;  %v2060_v26 = vadd.f32 -1.4531521, %v2028_v44  ;;  %v2088_v37 = vmul.f32 %v5142_v45, %v2056_v36  ;;  %v2266_v51 = vadd.f32 0.2548296, %v2234_v14 }
 0x28f   : > { %v2669_v6 = vpack.c.bf16 %v2645_v17, %v2641_v15  ;;  %v2270_v20 = vadd.f32 0.2548296, %v2238_v18  ;;  %v2025_v53 = vmul.f32 1.0614054, %v5154_v56  ;;  %v2171_v63 = vmul.f32 %v5384_v12, %v2139_v19  ;;  %v6253_v36 = vld [vmem:[#allocation30_spill] sm:$0xff]  ;;  %v6254_v14 = vld [vmem:[#allocation104_spill] sm:$0xff] }
 0x290   : > { %v2175_v42 = vmul.f32 %v5410_v1, %v2143_v30  ;;  %v2092_v48 = vmul.f32 %v5181_v13, %v2060_v26  ;;  %v2120_v50 = vadd.f32 1.4214138, %v2088_v37  ;;  %v2298_v59 = vmul.f32 %v5351_v28, %v2266_v51  ;;  %v6255_v26 = vld [vmem:[#allocation35_spill] sm:$0xff] }
 0x291   : > { %2741 = vmatpush.bf16.msrb.mxu1 %v2669_v6  ;;  %v2302_v49 = vmul.f32 %v5394_v23, %v2270_v20  ;;  %v2029_v22 = vmul.f32 1.0614054, %v5195_v27  ;;  %v2057_v9 = vadd.f32 -1.4531521, %v2025_v53  ;;  %v2203_v4 = vadd.f32 -0.28449672, %v2171_v63 }
 0x292   : > { %v2207_v2 = vadd.f32 -0.28449672, %v2175_v42  ;;  %v2124_v5 = vadd.f32 1.4214138, %v2092_v48  ;;  %v2152_v11 = vmul.f32 %v5142_v45, %v2120_v50  ;;  %v2458_v52 = vmul.f32 %v5360_v57, %v2298_v59  ;;  %v6257_v6 = vld [vmem:[#allocation102_spill] sm:$0xff]  ;;  %v6258_v42 = vld [vmem:[#allocation59_spill] sm:$0xff] }
 0x293   : > { %v2462_v3 = vmul.f32 %v5400_v32, %v2302_v49  ;;  %v2061_v55 = vadd.f32 -1.4531521, %v2029_v22  ;;  %v2089_v61 = vmul.f32 %v5154_v56, %v2057_v9  ;;  %v2235_v38 = vmul.f32 %v5384_v12, %v2203_v4  ;;  %v6259_v22 = vld [vmem:[#allocation81_spill] sm:$0xff]  ;;  %v6260_v4 = vld [vmem:[#allocation32_spill] sm:$0xff] }
 0x294   : > { %v2239_v28 = vmul.f32 %v5410_v1, %v2207_v2  ;;  %v2156_v23 = vmul.f32 %v5181_v13, %v2124_v5  ;;  %v2184_v41 = vadd.f32 -0.28449672, %v2152_v11  ;;  %v2490_v40 = vsub.f32 1.0, %v2458_v52  ;;  %v6261_v2 = vld [vmem:[#allocation66_spill] sm:$0xff] }
 0x295   : > { %v2494_v60 = vsub.f32 1.0, %v2462_v3  ;;  %v2093_v54 = vmul.f32 %v5195_v27, %v2061_v55  ;;  %v2121_v21 = vadd.f32 1.4214138, %v2089_v61  ;;  %v2267_v29 = vadd.f32 0.2548296, %v2235_v38  ;;  %v6262_v61 = vld [vmem:[#allocation92_spill] sm:$0xff] }
 0x296   : > { %v2271_v39 = vadd.f32 0.2548296, %v2239_v28  ;;  %v2188_v57 = vadd.f32 -0.28449672, %v2156_v23  ;;  %v2216_v32 = vmul.f32 %v5142_v45, %v2184_v41  ;;  %vm2523_vm5 = vcmp.ge.f32.partialorder %v5335_v62, 0.0  ;;  %v6263_v23 = vld [vmem:[#allocation40_spill] sm:$0xff] }
 0x297   : > { %vm2527_vm6 = vcmp.ge.f32.partialorder %v6252_v47, 0.0  ;;  %v2554_v24 = vsub.f32 0.0, %v2490_v40  ;;  %v2558_v7 = vsub.f32 0.0, %v2494_v60  ;;  %v2125_v10 = vadd.f32 1.4214138, %v2093_v54  ;;  %v6266_v47 = vld [vmem:[#allocation105_spill] sm:$0xff] }
 0x298   : > { %v2153_v0 = vmul.f32 %v5154_v56, %v2121_v21  ;;  %v2299_v25 = vmul.f32 %v5384_v12, %v2267_v29  ;;  %v2303_v46 = vmul.f32 %v5410_v1, %v2271_v39  ;;  %v2220_v58 = vmul.f32 %v5181_v13, %v2188_v57  ;;  %v6264_v29 = vld [vmem:[#allocation61_spill] sm:$0xff]  ;;  %v6265_v57 = vld [vmem:[#allocation99_spill] sm:$0xff] }
 0x299   : > { %v2248_v33 = vadd.f32 0.2548296, %v2216_v32  ;;  %v2586_v8 = vsel %vm2522_vm4, %v2490_v40, %v2554_v24  ;;  %v2590_v16 = vsel %vm2526_vm8, %v2494_v60, %v2558_v7  ;;  %v2157_v34 = vmul.f32 %v5195_v27, %v2125_v10 }
 0x29a   : > { %v2185_v44 = vadd.f32 -0.28449672, %v2153_v0  ;;  %vm2504_vm7 = vcmp.ge.f32.partialorder %v6253_v36, 0.0  ;;  %v2618_v15 = vadd.f32 1.0, %v2586_v8  ;;  %v2622_v17 = vadd.f32 1.0, %v2590_v16 }
 0x29b   : > { %v2459_v12 = vmul.f32 %v6254_v14, %v2299_v25  ;;  %v2463_v1 = vmul.f32 %v5451_v43, %v2303_v46  ;;  %v2252_v18 = vadd.f32 0.2548296, %v2220_v58  ;;  %v2280_v19 = vmul.f32 %v5142_v45, %v2248_v33  ;;  %v6267_v25 = vld [vmem:[#allocation70_spill] sm:$0xff] }
 0x29c   : > { %v2189_v30 = vadd.f32 -0.28449672, %v2157_v34  ;;  %v2217_v35 = vmul.f32 %v5154_v56, %v2185_v44  ;;  %vm2508_vm9 = vcmp.ge.f32.partialorder %v6255_v26, 0.0  ;;  %v2650_v37 = vmul.f32 %v2618_v15, %v6256_v31  ;;  %v6268_v34 = vld [vmem:[#allocation97_spill] sm:$0xff]  ;;  %v6271_v31 = vld [vmem:[#allocation68_spill] sm:$0xff] }
 0x29d   : > { %v2654_v51 = vmul.f32 %v2622_v17, %v6257_v6  ;;  %v2491_v20 = vsub.f32 1.0, %v2459_v12  ;;  %v2495_v53 = vsub.f32 1.0, %v2463_v1  ;;  %v2284_v63 = vmul.f32 %v5181_v13, %v2252_v18  ;;  %v6269_v17 = vld [vmem:[#allocation57_spill] sm:$0xff] }
 0x29e   : > { %v2440_v48 = vmul.f32 %v6258_v42, %v2280_v19  ;;  %v2221_v43 = vmul.f32 %v5195_v27, %v2189_v30  ;;  %v2249_v50 = vadd.f32 0.2548296, %v2217_v35  ;;  %v2034_v9 = vmul.f32 1.0614054, %v6259_v22  ;;  %v6270_v19 = vld [vmem:[#allocation101_spill] sm:$0xff] }
 0x29f   : > { %v2674_v59 = vpack.c.bf16 %v2654_v51, %v2650_v37  ;;  %v2555_v45 = vsub.f32 0.0, %v2491_v20  ;;  %v2559_v49 = vsub.f32 0.0, %v2495_v53  ;;  %vm2505_vm10 = vcmp.ge.f32.partialorder %v6260_v4, 0.0  ;;  %v6272_v51 = vld [vmem:[#allocation36_spill] sm:$0xff] }
 0x2a0   : > { %v2444_v5 = vmul.f32 %v6261_v2, %v2284_v63  ;;  %v2472_v11 = vsub.f32 1.0, %v2440_v48  ;;  %v2253_v52 = vadd.f32 0.2548296, %v2221_v43  ;;  %v2281_v3 = vmul.f32 %v5154_v56, %v2249_v50  ;;  %v6274_v2 = vld [vmem:[#allocation63_spill] sm:$0xff] }
 0x2a1   : > { %2759 = vmatpush.bf16.msrb.mxu2 %v2674_v59  ;;  %v2587_v13 = vsel %vm2523_vm5, %v2491_v20, %v2555_v45  ;;  %v2591_v55 = vsel %vm2527_vm6, %v2495_v53, %v2559_v49  ;;  %v2038_v38 = vmul.f32 1.0614054, %v6262_v61  ;;  %v2066_v28 = vadd.f32 -1.4531521, %v2034_v9  ;;  %v6273_v45 = vld [vmem:[#allocation46_spill] sm:$0xff] }
 0x2a2   : > { %vm2509_vm11 = vcmp.ge.f32.partialorder %v6263_v23, 0.0  ;;  %v2619_v41 = vadd.f32 1.0, %v2587_v13  ;;  %v2623_v40 = vadd.f32 1.0, %v2591_v55  ;;  %v2476_v60 = vsub.f32 1.0, %v2444_v5 }
 0x2a3   : > { %v2536_v54 = vsub.f32 0.0, %v2472_v11  ;;  %v2285_v21 = vmul.f32 %v5195_v27, %v2253_v52  ;;  %v2441_v56 = vmul.f32 %v6264_v29, %v2281_v3  ;;  %v2070_v39 = vadd.f32 -1.4531521, %v2038_v38  ;;  %v6275_v38 = vld [vmem:[#allocation69_spill] sm:$0xff] }
 0x2a4   : > { %v2098_v62 = vmul.f32 %v6259_v22, %v2066_v28  ;;  %v2651_v32 = vmul.f32 %v2619_v41, %v6265_v57  ;;  %v2655_v24 = vmul.f32 %v2623_v40, %v6266_v47  ;;  %v2540_v7 = vsub.f32 0.0, %v2476_v60  ;;  %v6276_v40 = vld [vmem:[#allocation37_spill] sm:$0xff]  ;;  %v6278_v47 = vld [vmem:[#allocation47_spill] sm:$0xff] }
 0x2a5   : > { %v2568_v10 = vsel %vm2504_vm7, %v2472_v11, %v2536_v54  ;;  %v2445_v46 = vmul.f32 %v6267_v25, %v2285_v21  ;;  %v2473_v58 = vsub.f32 1.0, %v2441_v56  ;;  %v2102_v33 = vmul.f32 %v6262_v61, %v2070_v39  ;;  %v6277_v54 = vld [vmem:[#allocation58_spill] sm:$0xff] }
 0x2a6   : > { %v2600_v0 = vadd.f32 1.0, %v2568_v10  ;;  %v2675_v27 = vpack.c.bf16 %v2655_v24, %v2651_v32  ;;  %v2572_v8 = vsel %vm2508_vm9, %v2476_v60, %v2540_v7  ;;  %v2130_v16 = vadd.f32 1.4214138, %v2098_v62  ;;  %v6279_v7 = vld [vmem:[#allocation74_spill] sm:$0xff] }
 0x2a7   : > { %v2035_v44 = vmul.f32 1.0614054, %v6268_v34  ;;  %v2604_v15 = vadd.f32 1.0, %v2572_v8  ;;  %v2477_v12 = vsub.f32 1.0, %v2445_v46  ;;  %v2537_v1 = vsub.f32 0.0, %v2473_v58 }
 0x2a8   : > { %v2632_v14 = vmul.f32 %v2600_v0, %v6269_v17  ;;  %2778 = vmatpush.bf16.msrb.mxu3 %v2675_v27  ;;  %v2134_v36 = vadd.f32 1.4214138, %v2102_v33  ;;  %v2162_v18 = vmul.f32 %v6259_v22, %v2130_v16  ;;  %v2039_v30 = vmul.f32 1.0614054, %v6270_v19  ;;  %v6280_v33 = vld [vmem:[#allocation84_spill] sm:$0xff] }
 0x2a9   : > { %v2067_v35 = vadd.f32 -1.4531521, %v2035_v44  ;;  %v2636_v37 = vmul.f32 %v2604_v15, %v6271_v31  ;;  %v2541_v6 = vsub.f32 0.0, %v2477_v12  ;;  %v2569_v26 = vsel %vm2505_vm10, %v2473_v58, %v2537_v1 }
 0x2aa   : > { %v2016_v20 = vmul.f32 1.0614054, %v6272_v51  ;;  %v2601_v53 = vadd.f32 1.0, %v2569_v26  ;;  %v2166_v63 = vmul.f32 %v6262_v61, %v2134_v36  ;;  %v2194_v42 = vadd.f32 -0.28449672, %v2162_v18 }
 0x2ab   : > { %v2071_v48 = vadd.f32 -1.4531521, %v2039_v30  ;;  %v2664_v43 = vpack.c.bf16 %v2636_v37, %v2632_v14  ;;  %v2573_v50 = vsel %vm2509_vm11, %v2477_v12, %v2541_v6  ;;  %v2099_v59 = vmul.f32 %v6268_v34, %v2067_v35  ;;  %v6281_v14 = vld [vmem:[#allocation93_spill] sm:$0xff]  ;;  %v6282_v37 = vld [vmem:[#allocation87_spill] sm:$0xff] }
 0x2ac   : > { %v2020_v49 = vmul.f32 1.0614054, %v6273_v45  ;;  %v2605_v9 = vadd.f32 1.0, %v2573_v50  ;;  %v2633_v5 = vmul.f32 %v2601_v53, %v6274_v2  ;;  %v2198_v4 = vadd.f32 -0.28449672, %v2166_v63  ;;  %v6283_v50 = vld [vmem:[#allocation90_spill] sm:$0xff] }
 0x2ad   : > { %v2226_v11 = vmul.f32 %v6259_v22, %v2194_v42  ;;  %2723 = vmatpush.bf16.msrb.mxu0 %v2664_v43  ;;  %v2103_v52 = vmul.f32 %v6270_v19, %v2071_v48  ;;  %v2131_v3 = vadd.f32 1.4214138, %v2099_v59  ;;  %v2048_v13 = vadd.f32 -1.4531521, %v2016_v20 }
 0x2ae   : > { %v2052_v55 = vadd.f32 -1.4531521, %v2020_v49  ;;  %v2637_v28 = vmul.f32 %v2605_v9, %v6275_v38  ;;  %v2230_v23 = vmul.f32 %v6262_v61, %v2198_v4  ;;  %v2017_v60 = vmul.f32 1.0614054, %v6276_v40 }
 0x2af   : > { %v2258_v41 = vadd.f32 0.2548296, %v2226_v11  ;;  %vm2514_vm12 = vcmp.ge.f32.partialorder %v6277_v54, 0.0  ;;  %v2135_v21 = vadd.f32 1.4214138, %v2103_v52  ;;  %v2163_v29 = vmul.f32 %v6268_v34, %v2131_v3  ;;  %v6284_v11 = vld [vmem:[#allocation98_spill] sm:$0xff] }
 0x2b0   : > { %v2080_v56 = vmul.f32 %v6272_v51, %v2048_v13  ;;  %v2084_v39 = vmul.f32 %v6273_v45, %v2052_v55  ;;  %v2665_v62 = vpack.c.bf16 %v2637_v28, %v2633_v5  ;;  %v2262_v57 = vadd.f32 0.2548296, %v2230_v23  ;;  %v6285_v28 = vld [vmem:[#allocation21_spill] sm:$0xff] }
 0x2b1   : > { %v2290_v32 = vmul.f32 %v6259_v22, %v2258_v41  ;;  %v2021_v24 = vmul.f32 1.0614054, %v6278_v47  ;;  %vm2518_vm13 = vcmp.ge.f32.partialorder %v6279_v7, 0.0  ;;  %v2167_v10 = vmul.f32 %v6270_v19, %v2135_v21  ;;  %v6286_v23 = vld [vmem:[#allocation25_spill] sm:$0xff]  ;;  %v6288_v21 = vld [vmem:[#allocation103_spill] sm:$0xff] }
 0x2b2   : > { %v2195_v0 = vadd.f32 -0.28449672, %v2163_v29  ;;  %v2112_v25 = vadd.f32 1.4214138, %v2080_v56  ;;  %v2116_v46 = vadd.f32 1.4214138, %v2084_v39  ;;  %2742 = vmatpush.bf16.msrb.mxu1 %v2665_v62  ;;  %v2294_v58 = vmul.f32 %v6262_v61, %v2262_v57 }
 0x2b3   : > { %v2450_v27 = vmul.f32 %v6280_v33, %v2290_v32  ;;  %v2049_v8 = vadd.f32 -1.4531521, %v2017_v60  ;;  %v2053_v16 = vadd.f32 -1.4531521, %v2021_v24  ;;  %v2199_v44 = vadd.f32 -0.28449672, %v2167_v10 }
 0x2b4   : > { %v2227_v15 = vmul.f32 %v6268_v34, %v2195_v0  ;;  %v2144_v22 = vmul.f32 %v6272_v51, %v2112_v25  ;;  %v2148_v17 = vmul.f32 %v6273_v45, %v2116_v46  ;;  %v2454_v12 = vmul.f32 %v6281_v14, %v2294_v58  ;;  %v6287_v60 = vld [vmem:[#allocation80_spill] sm:$0xff]  ;;  %v6289_v32 = vld [vmem:[#allocation82_spill] sm:$0xff]  ;;  %v6291_v46 = vld [vmem:[#allocation39_spill] sm:$0xff] }
 0x2b5   : > { %v2482_v1 = vsub.f32 1.0, %v2450_v27  ;;  %v2081_v36 = vmul.f32 %v6276_v40, %v2049_v8  ;;  %v2085_v18 = vmul.f32 %v6278_v47, %v2053_v16  ;;  %v2231_v61 = vmul.f32 %v6270_v19, %v2199_v44  ;;  %v6290_v0 = vld [vmem:[#allocation62_spill] sm:$0xff]  ;;  %v6292_v33 = vld [vmem:[#allocation51_spill] sm:$0xff] }
 0x2b6   : > { %v2259_v30 = vadd.f32 0.2548296, %v2227_v15  ;;  %v2176_v35 = vadd.f32 -0.28449672, %v2144_v22  ;;  %v2180_v31 = vadd.f32 -0.28449672, %v2148_v17 }
 0x2b7   : > { %vm2515_vm14 = vcmp.ge.f32.partialorder %v6282_v37, 0.0  ;;  %v2486_v6 = vsub.f32 1.0, %v2454_v12  ;;  %v2546_v26 = vsub.f32 0.0, %v2482_v1  ;;  %v2113_v20 = vadd.f32 1.4214138, %v2081_v36  ;;  %v6293_v15 = vld [vmem:[#allocation72_spill] sm:$0xff] }
 0x2b8   : > { %v2117_v53 = vadd.f32 1.4214138, %v2085_v18  ;;  %v2263_v63 = vadd.f32 0.2548296, %v2231_v61  ;;  %v2291_v42 = vmul.f32 %v6268_v34, %v2259_v30  ;;  %v2208_v48 = vmul.f32 %v6272_v51, %v2176_v35  ;;  %v6294_v17 = vld [vmem:[#allocation23_spill] sm:$0xff]  ;;  %v6295_v14 = vld [vmem:[#allocation26_spill] sm:$0xff] }
 0x2b9   : > { %v2212_v43 = vmul.f32 %v6273_v45, %v2180_v31  ;;  %vm2519_vm0 = vcmp.ge.f32.partialorder %v6283_v50, 0.0  ;;  %v2550_v59 = vsub.f32 0.0, %v2486_v6  ;;  %v2578_v49 = vsel %vm2514_vm12, %v2482_v1, %v2546_v26 }
 0x2ba   : > { %v2145_v9 = vmul.f32 %v6276_v40, %v2113_v20  ;;  %v2149_v2 = vmul.f32 %v6278_v47, %v2117_v53  ;;  %v2610_v5 = vadd.f32 1.0, %v2578_v49  ;;  %v2295_v4 = vmul.f32 %v6270_v19, %v2263_v63  ;;  %v6297_v63 = vld [vmem:[#allocation41_spill] sm:$0xff]  ;;  %v6299_v49 = vld [vmem:[#allocation96_spill] sm:$0xff] }
 0x2bb   : > { %v2451_v52 = vmul.f32 %v6284_v11, %v2291_v42  ;;  %v2240_v34 = vadd.f32 0.2548296, %v2208_v48  ;;  %v2582_v3 = vsel %vm2518_vm13, %v2486_v6, %v2550_v59  ;;  %v2244_v13 = vadd.f32 0.2548296, %v2212_v43  ;;  %v6296_v6 = vld [vmem:[#allocation91_spill] sm:$0xff]  ;;  %v6298_v48 = vld [vmem:[#allocation53_spill] sm:$0xff] }
 0x2bc   : > { %v2177_v55 = vadd.f32 -0.28449672, %v2145_v9  ;;  %v2181_v38 = vadd.f32 -0.28449672, %v2149_v2  ;;  %vm2496_vm15 = vcmp.ge.f32.partialorder %v6285_v28, 0.0  ;;  %vm2500_vm1 = vcmp.ge.f32.partialorder %v6286_v23, 0.0 }
 0x2bd   : > { %v2614_v41 = vadd.f32 1.0, %v2582_v3  ;;  %v2642_v54 = vmul.f32 %v2610_v5, %v6287_v60  ;;  %v2455_v29 = vmul.f32 %v6288_v21, %v2295_v4  ;;  %v2483_v56 = vsub.f32 1.0, %v2451_v52  ;;  %v6300_v2 = vld [vmem:[#allocation88_spill] sm:$0xff]  ;;  %v6302_v60 = vld [vmem:[#allocation38_spill] sm:$0xff]  ;;  %v6303_v21 = vld [vmem:[#allocation49_spill] sm:$0xff] }
 0x2be   : > { %v2272_v19 = vmul.f32 %v6272_v51, %v2240_v34  ;;  %v2276_v39 = vmul.f32 %v6273_v45, %v2244_v13  ;;  %v2209_v62 = vmul.f32 %v6276_v40, %v2177_v55  ;;  %v2213_v57 = vmul.f32 %v6278_v47, %v2181_v38  ;;  %v6301_v38 = vld [vmem:[#allocation94_spill] sm:$0xff] }
 0x2bf   : > { %v2646_v24 = vmul.f32 %v2614_v41, %v6289_v32  ;;  %v2487_v7 = vsub.f32 1.0, %v2455_v29  ;;  %v2547_v10 = vsub.f32 0.0, %v2483_v56  ;;  %v2026_v25 = vmul.f32 1.0614054, %v6290_v0 }
 0x2c0   : > { %v2432_v58 = vmul.f32 %v6291_v46, %v2272_v19  ;;  %v2436_v27 = vmul.f32 %v6292_v33, %v2276_v39  ;;  %v2241_v8 = vadd.f32 0.2548296, %v2209_v62  ;;  %v2245_v16 = vadd.f32 0.2548296, %v2213_v57 }
 0x2c1   : > { %v2670_v44 = vpack.c.bf16 %v2646_v24, %v2642_v54  ;;  %v2551_v51 = vsub.f32 0.0, %v2487_v7  ;;  %v2579_v45 = vsel %vm2515_vm14, %v2483_v56, %v2547_v10  ;;  %v2030_v22 = vmul.f32 1.0614054, %v6293_v15 }
 0x2c2   : > { %vm2497_vm2 = vcmp.ge.f32.partialorder %v6294_v17, 0.0  ;;  %vm2501_vm3 = vcmp.ge.f32.partialorder %v6295_v14, 0.0  ;;  %v2611_v12 = vadd.f32 1.0, %v2579_v45  ;;  %v2464_v1 = vsub.f32 1.0, %v2432_v58  ;;  %v6306_v45 = vld [vmem:[#allocation42_spill] sm:$0xff] }
 0x2c3   : > { %v2468_v36 = vsub.f32 1.0, %v2436_v27  ;;  %v2273_v18 = vmul.f32 %v6276_v40, %v2241_v8  ;;  %2760 = vmatpush.bf16.msrb.mxu2 %v2670_v44  ;;  %v2583_v61 = vsel %vm2519_vm0, %v2487_v7, %v2551_v51  ;;  %v2277_v30 = vmul.f32 %v6278_v47, %v2245_v16  ;;  %v5637_v7 = vld [vmem:[%s5965_s7] sm:$0xff]  ;;  %v6304_v8 = vld [vmem:[#allocation43_spill] sm:$0xff] }
 0x2c4   : > { %v2058_v35 = vadd.f32 -1.4531521, %v2026_v25  ;;  %v2062_v31 = vadd.f32 -1.4531521, %v2030_v22  ;;  %v2615_v37 = vadd.f32 1.0, %v2583_v61  ;;  %v2643_v26 = vmul.f32 %v2611_v12, %v6296_v6  ;;  %v6305_v44 = vld [vmem:[#allocation54_spill] sm:$0xff] }
 0x2c5   : > { %v2528_v20 = vsub.f32 0.0, %v2464_v1  ;;  %v2532_v53 = vsub.f32 0.0, %v2468_v36  ;;  %v2433_v42 = vmul.f32 %v6297_v63, %v2273_v18  ;;  %v2437_v43 = vmul.f32 %v6298_v48, %v2277_v30  ;;  %v6307_v17 = vld [vmem:[#allocation50_spill] sm:$0xff]  ;;  %v6311_v48 = vld [vmem:[#allocation77_spill] sm:$0xff] }
 0x2c6   : > { %v2090_v59 = vmul.f32 %v6290_v0, %v2058_v35  ;;  %v2094_v40 = vmul.f32 %v6293_v15, %v2062_v31  ;;  %v2647_v50 = vmul.f32 %v2615_v37, %v6299_v49  ;;  %v2027_v5 = vmul.f32 1.0614054, %v6300_v2 }
 0x2c7   : > { %v2560_v47 = vsel %vm2496_vm15, %v2464_v1, %v2528_v20  ;;  %v2564_v9 = vsel %vm2500_vm1, %v2468_v36, %v2532_v53  ;;  %v2465_v52 = vsub.f32 1.0, %v2433_v42  ;;  %v2469_v34 = vsub.f32 1.0, %v2437_v43  ;;  %v6308_v36 = vld [vmem:[#allocation86_spill] sm:$0xff]  ;;  %v6310_v20 = vld [vmem:[#allocation44_spill] sm:$0xff] }
 0x2c8   : > { %v2592_v4 = vadd.f32 1.0, %v2560_v47  ;;  %v2596_v11 = vadd.f32 1.0, %v2564_v9  ;;  %v2671_v3 = vpack.c.bf16 %v2647_v50, %v2643_v26  ;;  %v2122_v13 = vadd.f32 1.4214138, %v2090_v59  ;;  %v6309_v26 = vld [vmem:[#allocation34_spill] sm:$0xff]  ;;  %v6312_v50 = vld [vmem:[#allocation83_spill] sm:$0xff] }
 0x2c9   : > { %v2126_v55 = vadd.f32 1.4214138, %v2094_v40  ;;  %v2031_v41 = vmul.f32 1.0614054, %v6301_v38  ;;  %v2529_v28 = vsub.f32 0.0, %v2465_v52  ;;  %v2533_v56 = vsub.f32 0.0, %v2469_v34 }
 0x2ca   : > { %v2624_v54 = vmul.f32 %v2592_v4, %v6302_v60  ;;  %v2628_v29 = vmul.f32 %v2596_v11, %v6303_v21  ;;  %2779 = vmatpush.bf16.msrb.mxu3 %v2671_v3  ;;  %v2154_v23 = vmul.f32 %v6290_v0, %v2122_v13  ;;  %v2059_v39 = vadd.f32 -1.4531521, %v2027_v5  ;;  %v6313_v9 = vld [vmem:[#allocation89_spill] sm:$0xff]  ;;  %v6315_v3 = vld [vmem:[#allocation75_spill] sm:$0xff] }
 0x2cb   : > { %v2158_v19 = vmul.f32 %v6293_v15, %v2126_v55  ;;  %v2063_v62 = vadd.f32 -1.4531521, %v2031_v41  ;;  %v2561_v32 = vsel %vm2497_vm2, %v2465_v52, %v2529_v28  ;;  %v2565_v24 = vsel %vm2501_vm3, %v2469_v34, %v2533_v56  ;;  %v6314_v52 = vld [vmem:[#allocation64_spill] sm:$0xff] }
 0x2cc   : > { %v2660_v57 = vpack.c.bf16 %v2628_v29, %v2624_v54  ;;  %vm2710_vm4 = vcmask 523264   ;;  %v2593_v10 = vadd.f32 1.0, %v2561_v32  ;;  %v2597_v25 = vadd.f32 1.0, %v2565_v24  ;;  %v6316_v32 = vld [vmem:[#allocation71_spill] sm:$0xff] }
 0x2cd   : > { %v2186_v46 = vadd.f32 -0.28449672, %v2154_v23  ;;  %v2190_v58 = vadd.f32 -0.28449672, %v2158_v19  ;;  %v2091_v33 = vmul.f32 %v6300_v2, %v2059_v39  ;;  %v2095_v27 = vmul.f32 %v6301_v38, %v2063_v62 }
 0x2ce   : > { %2724 = vmatpush.bf16.msrb.mxu0 %v2660_v57  ;;  %v2018_v16 = vmul.f32 1.0614054, %v6304_v8  ;;  %v2022_v51 = vmul.f32 1.0614054, %v6305_v44  ;;  %v2625_v22 = vmul.f32 %v2593_v10, %v6306_v45  ;;  %v2629_v14 = vmul.f32 %v2597_v25, %v6307_v17 }
 0x2cf   : > { %v2218_v12 = vmul.f32 %v6290_v0, %v2186_v46  ;;  %v2222_v1 = vmul.f32 %v6293_v15, %v2190_v58  ;;  %3571 = vpow2.f32 %v6308_v36  ;;  %v2123_v18 = vadd.f32 1.4214138, %v2091_v33 }
 0x2d0   : > { %v2127_v61 = vadd.f32 1.4214138, %v2095_v27  ;;  %v2050_v30 = vadd.f32 -1.4531521, %v2018_v16  ;;  %v2661_v35 = vpack.c.bf16 %v2629_v14, %v2625_v22  ;;  %v2054_v6 = vadd.f32 -1.4531521, %v2022_v51 }
 0x2d1   : > { %v2250_v31 = vadd.f32 0.2548296, %v2218_v12  ;;  %v2254_v37 = vadd.f32 0.2548296, %v2222_v1  ;;  %3321 = vmatmul.msk.bf16.vlgmr.msrb.gmra.mxu0 %vm2710_vm4, %v5637_v7  ;;  %vm2506_vm8 = vcmp.ge.f32.partialorder %v6309_v26, 0.0  ;;  %vm2510_vm5 = vcmp.ge.f32.partialorder %v6310_v20, 0.0 }
 0x2d2   : > { %v2155_v53 = vmul.f32 %v6300_v2, %v2123_v18  ;;  %v2159_v63 = vmul.f32 %v6301_v38, %v2127_v61  ;;  %v2082_v42 = vmul.f32 %v6304_v8, %v2050_v30  ;;  %v2019_v43 = vmul.f32 1.0614054, %v6311_v48  ;;  %2743 = vmatpush.bf16.msrb.mxu1 %v2661_v35 }
 0x2d3   : > { %v2282_v59 = vmul.f32 %v6290_v0, %v2250_v31  ;;  %v2286_v40 = vmul.f32 %v6293_v15, %v2254_v37  ;;  %v2086_v49 = vmul.f32 %v6305_v44, %v2054_v6  ;;  %v2023_v47 = vmul.f32 1.0614054, %v6312_v50  ;;  %v6317_v31 = vld [vmem:[#allocation65_spill] sm:$0xff] }
 0x2d4   : > { %3573 = vpow2.f32 %v6313_v9  ;;  %v2187_v5 = vadd.f32 -0.28449672, %v2155_v53  ;;  %v2191_v4 = vadd.f32 -0.28449672, %v2159_v63  ;;  %v2114_v11 = vadd.f32 1.4214138, %v2082_v42 }
 0x2d5   : > { %v2442_v34 = vmul.f32 %v6314_v52, %v2282_v59  ;;  %v2446_v13 = vmul.f32 %v6315_v3, %v2286_v40  ;;  %v2118_v55 = vadd.f32 1.4214138, %v2086_v49  ;;  %v2051_v41 = vadd.f32 -1.4531521, %v2019_v43  ;;  %v3572_v60 = vpop.eup %3571  ;;  %3323 = vmatmul.msk.bf16.vlgmr.msrb.gmra.mxu1 %vm2710_vm4, %v5637_v7  ;;  %v6318_v6 = vld [vmem:[#allocation73_spill] sm:$0xff]  ;;  %v6319_v40 = vld [vmem:[#allocation78_spill] sm:$0xff] }
 0x2d6   : > { %v2219_v0 = vmul.f32 %v6300_v2, %v2187_v5  ;;  %v2223_v15 = vmul.f32 %v6301_v38, %v2191_v4  ;;  %v2146_v54 = vmul.f32 %v6304_v8, %v2114_v11  ;;  %v2055_v21 = vadd.f32 -1.4531521, %v2023_v47  ;;  %v6320_v5 = vld [vmem:[#allocation45_spill] sm:$0xff]  ;;  %v6321_v11 = vld [vmem:[#allocation55_spill] sm:$0xff] }
 0x2d7   : > { %v2474_v29 = vsub.f32 1.0, %v2442_v34  ;;  %v2478_v28 = vsub.f32 1.0, %v2446_v13  ;;  %v2150_v56 = vmul.f32 %v6305_v44, %v2118_v55  ;;  %v2083_v23 = vmul.f32 %v6311_v48, %v2051_v41  ;;  %v6323_v13 = vld [vmem:[#allocation76_spill] sm:$0xff] }
 0x2d8   : > { %v2251_v19 = vadd.f32 0.2548296, %v2219_v0  ;;  %v2255_v39 = vadd.f32 0.2548296, %v2223_v15  ;;  %v2178_v62 = vadd.f32 -0.28449672, %v2146_v54  ;;  %v2087_v57 = vmul.f32 %v6312_v50, %v2055_v21 }
 0x2d9   : > { %vm2507_vm6 = vcmp.ge.f32.partialorder %v6316_v32, 0.0  ;;  %v2538_v24 = vsub.f32 0.0, %v2474_v29  ;;  %v2542_v10 = vsub.f32 0.0, %v2478_v28  ;;  %v2182_v25 = vadd.f32 -0.28449672, %v2150_v56 }
 0x2da   : > { %v2115_v46 = vadd.f32 1.4214138, %v2083_v23  ;;  %v3574_v58 = vpop.eup %3573  ;;  %v2283_v33 = vmul.f32 %v6300_v2, %v2251_v19  ;;  %v2287_v27 = vmul.f32 %v6301_v38, %v2255_v39  ;;  %v2210_v16 = vmul.f32 %v6304_v8, %v2178_v62  ;;  %v5684_v2 = vld [vmem:[%s5965_s7 + $0x8] sm:$0xff] }
 0x2db   : > { %v2119_v51 = vadd.f32 1.4214138, %v2087_v57  ;;  %v2570_v45 = vsel %vm2506_vm8, %v2474_v29, %v2538_v24  ;;  %v2574_v22 = vsel %vm2510_vm5, %v2478_v28, %v2542_v10  ;;  %v2214_v17 = vmul.f32 %v6305_v44, %v2182_v25  ;;  %v6324_v29 = vld [vmem:[#allocation22_spill] sm:$0xff]  ;;  %v6325_v24 = vld [vmem:[#allocation24_spill] sm:$0xff]  ;;  %v6326_v10 = vld [vmem:[#allocation29_spill] sm:$0xff] }
 0x2dc   : > { %v2147_v14 = vmul.f32 %v6311_v48, %v2115_v46  ;;  %v2602_v12 = vadd.f32 1.0, %v2570_v45  ;;  %v2606_v1 = vadd.f32 1.0, %v2574_v22  ;;  %v2443_v36 = vmul.f32 %v3572_v60, %v2283_v33  ;;  %v6327_v25 = vld [vmem:[#allocation79_spill] sm:$0xff]  ;;  %v6329_v22 = vld [vmem:[#allocation85_spill] sm:$0xff] }
 0x2dd   : > { %v2447_v18 = vmul.f32 %v3574_v58, %v2287_v27  ;;  %v2242_v38 = vadd.f32 0.2548296, %v2210_v16  ;;  %v2246_v61 = vadd.f32 0.2548296, %v2214_v17  ;;  %v2151_v30 = vmul.f32 %v6312_v50, %v2119_v51  ;;  %v6328_v58 = vld [vmem:[#allocation28_spill] sm:$0xff] }
 0x2de   : > { %v2179_v35 = vadd.f32 -0.28449672, %v2147_v14  ;;  %v2634_v37 = vmul.f32 %v2602_v12, %v6317_v31  ;;  %v2638_v26 = vmul.f32 %v2606_v1, %v6318_v6  ;;  %v2475_v20 = vsub.f32 1.0, %v2443_v36  ;;  %v6332_v6 = vld [vmem:[#allocation48_spill] sm:$0xff] }
 0x2df   : > { %v2479_v53 = vsub.f32 1.0, %v2447_v18  ;;  %v2274_v63 = vmul.f32 %v6304_v8, %v2242_v38  ;;  %v2278_v42 = vmul.f32 %v6305_v44, %v2246_v61  ;;  %v2183_v43 = vadd.f32 -0.28449672, %v2151_v30  ;;  %v6322_v8 = vld [vmem:[#allocation67_spill] sm:$0xff]  ;;  %v6330_v18 = vld [vmem:[#allocation52_spill] sm:$0xff] }
 0x2e0   : > { %v2211_v59 = vmul.f32 %v6311_v48, %v2179_v35  ;;  %vm2511_vm7 = vcmp.ge.f32.partialorder %v6319_v40, 0.0  ;;  %v2666_v49 = vpack.c.bf16 %v2638_v26, %v2634_v37  ;;  %v2539_v47 = vsub.f32 0.0, %v2475_v20  ;;  %v6331_v35 = vld [vmem:[#allocation60_spill] sm:$0xff] }
 0x2e1   : > { %v2543_v9 = vsub.f32 0.0, %v2479_v53  ;;  %v2434_v4 = vmul.f32 %v6320_v5, %v2274_v63  ;;  %v2438_v52 = vmul.f32 %v6321_v11, %v2278_v42  ;;  %v2215_v34 = vmul.f32 %v6312_v50, %v2183_v43  ;;  %3322 = vmatmul.msk.bf16.gmra.mxu0 %vm2710_vm4, %v5684_v2  ;;  %v5726_v5 = vpop.permute.xlu2 %2687  ;;  %v5729_v11 = vpop.permute.xlu0 %2692 }
 0x2e2   : > { %v2243_v3 = vadd.f32 0.2548296, %v2211_v59  ;;  %v1835_v44 = vmul.f32 0.5, %v6322_v8  ;;  %v1839_v55 = vmul.f32 0.5, %v6323_v13  ;;  %2761 = vmatpush.bf16.msrb.mxu2 %v2666_v49  ;;  %v2571_v41 = vsel %vm2507_vm6, %v2475_v20, %v2539_v47  ;;  %v6333_v20 = vld [vmem:[#allocation56_spill] sm:$0xff]  ;;  %v5724_v47 = vpop.permute.xlu1 %2682  ;;  %v6335_v8 = vld [vmem:[#allocation11_spill] sm:$0xff] }
 0x2e3   : > { %v2575_v60 = vsel %vm2511_vm7, %v2479_v53, %v2543_v9  ;;  %v2603_v0 = vadd.f32 1.0, %v2571_v41  ;;  %v2466_v54 = vsub.f32 1.0, %v2434_v4  ;;  %v2470_v21 = vsub.f32 1.0, %v2438_v52 }
 0x2e4   : > { %v2607_v15 = vadd.f32 1.0, %v2575_v60  ;;  %v1826_v28 = vmul.f32 0.5, %v6324_v29  ;;  %v2247_v56 = vadd.f32 0.2548296, %v2215_v34  ;;  %v2275_v23 = vmul.f32 %v6311_v48, %v2243_v3  ;;  %v6334_v34 = vld [vmem:[#allocation12_spill] sm:$0xff] }
 0x2e5   : > { %v2635_v19 = vmul.f32 %v2603_v0, %v1835_v44  ;;  %v2530_v62 = vsub.f32 0.0, %v2466_v54  ;;  %v2534_v57 = vsub.f32 0.0, %v2470_v21  ;;  %vm2498_vm9 = vcmp.ge.f32.partialorder %v6325_v24, 0.0  ;;  %3324 = vmatmul.msk.bf16.gmra.mxu1 %vm2710_vm4, %v5684_v2  ;;  %v6338_v24 = vld [vmem:[#allocation33_spill] sm:$0xff] }
 0x2e6   : > { %v2639_v39 = vmul.f32 %v2607_v15, %v1839_v55  ;;  %vm2502_vm10 = vcmp.ge.f32.partialorder %v6326_v10, 0.0  ;;  %v2279_v32 = vmul.f32 %v6312_v50, %v2247_v56  ;;  %v2435_v46 = vmul.f32 %v6327_v25, %v2275_v23 }
 0x2e7   : > { %v1830_v33 = vmul.f32 0.5, %v6328_v58  ;;  %v2562_v16 = vsel %vm2498_vm9, %v2466_v54, %v2530_v62  ;;  %v2566_v48 = vsel %vm2502_vm10, %v2470_v21, %v2534_v57  ;;  %vm2499_vm11 = vcmp.ge.f32.partialorder %v6330_v18, 0.0  ;;  %v6337_v54 = vld [vmem:[#allocation31_spill] sm:$0xff] }
 0x2e8   : > { %v2667_v27 = vpack.c.bf16 %v2639_v39, %v2635_v19  ;;  %v2594_v51 = vadd.f32 1.0, %v2562_v16  ;;  %v2598_v45 = vadd.f32 1.0, %v2566_v48  ;;  %v2439_v17 = vmul.f32 %v6329_v22, %v2279_v32 }
 0x2e9   : > { %v2467_v14 = vsub.f32 1.0, %v2435_v46  ;;  %vm2503_vm12 = vcmp.ge.f32.partialorder %v6331_v35, 0.0  ;;  %v1827_v26 = vmul.f32 0.5, %v6332_v6  ;;  %v1831_v53 = vmul.f32 0.5, %v6333_v20 }
 0x2ea   : > { %2780 = vmatpush.bf16.msrb.mxu3 %v2667_v27  ;;  %v2626_v12 = vmul.f32 %v2594_v51, %v1826_v28  ;;  %v2630_v1 = vmul.f32 %v2598_v45, %v1830_v33  ;;  %v2471_v36 = vsub.f32 1.0, %v2439_v17  ;;  %v5736_v55 = vpop.permute.xlu1 %2697 }
 0x2eb   : > { %v2531_v50 = vsub.f32 0.0, %v2467_v14 }
 0x2ec   : > { %v2662_v38 = vpack.c.bf16 %v2630_v1, %v2626_v12  ;;  %v2535_v61 = vsub.f32 0.0, %v2471_v36 }
 0x2ed   : > { %v2563_v30 = vsel %vm2499_vm11, %v2467_v14, %v2531_v50 }
 0x2ee   : > { %v2595_v31 = vadd.f32 1.0, %v2563_v30  ;;  %2762 = vmatpush.bf16.msrb.mxu2 %v2662_v38  ;;  %v2567_v37 = vsel %vm2503_vm12, %v2471_v36, %v2535_v61  ;;  %v6339_v30 = vld [vmem:[#allocation14_spill] sm:$0xff] }
 0x2ef   : > { %v2599_v63 = vadd.f32 1.0, %v2567_v37  ;;  %v6340_v37 = vld [vmem:[#allocation13_spill] sm:$0xff] }
 0x2f0   : > { %v2627_v42 = vmul.f32 %v2595_v31, %v1827_v26  ;;  %v6341_v26 = vld [vmem:[#allocation7_spill] sm:$0xff] }
 0x2f1   : > { %v2631_v43 = vmul.f32 %v2599_v63, %v1831_v53  ;;  %3325 = vmatmul.msk.bf16.vlgmr.msrb.gmra.mxu2 %vm2710_vm4, %v5637_v7 }
 0x2f3   : > { %v2663_v59 = vpack.c.bf16 %v2631_v43, %v2627_v42 }
 0x2f5   : > { %2781 = vmatpush.bf16.msrb.mxu3 %v2663_v59 }
 0x2f8   : > { %3327 = vmatmul.msk.bf16.vlgmr.msrb.gmra.mxu3 %vm2710_vm4, %v5637_v7 }
 0x301   : > { %3326 = vmatmul.msk.bf16.gmra.mxu2 %vm2710_vm4, %v5684_v2 }
 0x308   : > { %3328 = vmatmul.msk.bf16.gmra.mxu3 %vm2710_vm4, %v5684_v2  ;;  %v6336_v2 = vld [vmem:[#allocation27_spill] sm:$0xff] }
 0x34e   : > { %v2726_v40 = vpop.f32.mrf.mxu0 }
 0x34f   : > { %v2727_v52 = vadd.f32 %v2726_v40, %v5724_v47 }
 0x351   : > { %v2793_v44 = vadd.f32 %v2727_v52, %v6335_v8  ;;  %v5762_v52 = vpop.permute.xlu2 %2991 }
 0x352   : > { %v2745_v19 = vpop.f32.mrf.mxu1 }
 0x353   : > { %v2746_v18 = vadd.f32 %v2745_v19, %v5724_v47 }
 0x355   : > { %v2794_v6 = vadd.f32 %v2746_v18, %v6340_v37 }
 0x356   : > { %v2728_v49 = vpop.f32.mrf.mxu0 }
 0x357   : > { %v2729_v4 = vadd.f32 %v2728_v49, %v5726_v5 }
 0x359   : > { %v2797_v3 = vadd.f32 %v2729_v4, %v6334_v34  ;;  %v5764_v34 = vpop.permute.xlu0 %2996 }
 0x35a   : > { %v2747_v58 = vpop.f32.mrf.mxu1 }
 0x35b   : > { %v2817_v60 = vadd.f32 %v2797_v3, %v2793_v44  ;;  %v2748_v36 = vadd.f32 %v2747_v58, %v5726_v5 }
 0x35d   : > { %v2798_v35 = vadd.f32 %v2748_v36, %v6339_v30 }
 0x35e   : > { %v2731_v9 = vpop.f32.mrf.mxu0 }
 0x35f   : > { %v2732_v7 = vadd.f32 %v2731_v9, %v5729_v11  ;;  %v2826_v42 = vadd.f32 %v2798_v35, %v2794_v6  ;;  %v6342_v9 = vld [vmem:[#allocation8_spill] sm:$0xff] }
 0x361   : > { %v2801_v13 = vadd.f32 %v2732_v7, %v6336_v2 }
 0x362   : > { %v2750_v12 = vpop.f32.mrf.mxu1 }
 0x363   : > { %v2818_v15 = vadd.f32 %v2817_v60, %v2801_v13  ;;  %v2751_v38 = vadd.f32 %v2750_v12, %v5729_v11 }
 0x365   : > { %v2802_v20 = vadd.f32 %v2751_v38, %v6341_v26 }
 0x366   : > { %v2733_v41 = vpop.f32.mrf.mxu0 }
 0x367   : > { %v2734_v0 = vadd.f32 %v2733_v41, %v5736_v55  ;;  %v2827_v40 = vadd.f32 %v2826_v42, %v2802_v20 }
 0x369   : > { %v2805_v21 = vadd.f32 %v2734_v0, %v6337_v54  ;;  %v5766_v54 = vpop.permute.xlu2 %3006 }
 0x36a   : > { %v2752_v63 = vpop.f32.mrf.mxu1 }
 0x36b   : > { %v2819_v29 = vadd.f32 %v2818_v15, %v2805_v21  ;;  %v2753_v59 = vadd.f32 %v2752_v63, %v5736_v55 }
 0x36d   : > { %v2820_v28 = vrot.slane %v2819_v29, 4  ;;  %v2806_v4 = vadd.f32 %v2753_v59, %v6342_v9  ;;  %v6343_v9 = vld [vmem:[#allocation16_spill] sm:$0xff] }
 0x36f   : > { %v2821_v56 = vadd.f32 %v2820_v28, %v2819_v29  ;;  %v2828_v7 = vadd.f32 %v2827_v40, %v2806_v4  ;;  %v5768_v29 = vpop.permute.xlu1 %3001  ;;  %v5770_v28 = vpop.permute.xlu0 %3027 }
 0x371   : > { %v2822_v23 = vrot.slane %v2821_v56, 2  ;;  %v5788_v36 = vpop.permute.xlu2 %3037 }
 0x373   : > { %v2823_v39 = vadd.f32 %v2822_v23, %v2821_v56 }
 0x375   : > { %v2824_v62 = vrot.slane %v2823_v39, 1 }
 0x377   : > { %v2825_v57 = vadd.f32 %v2824_v62, %v2823_v39 }
 0x379   : > { %v2853_v10 = vmul.f32 %v2825_v57, %v6338_v24 }
 0x37b   : > { %v5741_v32 = vsub.f32 %v2793_v44, %v2853_v10  ;;  %v5743_v25 = vsub.f32 %v2797_v3, %v2853_v10  ;;  %v5745_v46 = vsub.f32 %v2801_v13, %v2853_v10  ;;  %v2869_v33 = vsub.f32 %v2805_v21, %v2853_v10  ;;  %v2764_v3 = vpop.f32.mrf.mxu2  ;;  %v2783_v8 = vpop.f32.mrf.mxu3 }
 0x37c   : > { %v2829_v44 = vrot.slane %v2828_v7, 4  ;;  %v2784_v40 = vadd.f32 %v2783_v8, %v5724_v47 }
 0x37d   : > { %v2873_v27 = vmul.f32 %v5741_v32, %v5741_v32  ;;  %v2877_v16 = vmul.f32 %v5743_v25, %v5743_v25  ;;  %v2881_v48 = vmul.f32 %v5745_v46, %v5745_v46  ;;  %v2885_v45 = vmul.f32 %v2869_v33, %v2869_v33 }
 0x37e   : > { %v2830_v2 = vadd.f32 %v2829_v44, %v2828_v7  ;;  %v6344_v7 = vld [vmem:[#allocation20_spill] sm:$0xff] }
 0x37f   : > { %v2889_v51 = vadd.f32 %v2877_v16, %v2873_v27 }
 0x380   : > { %v2831_v41 = vrot.slane %v2830_v2, 2 }
 0x381   : > { %v2890_v22 = vadd.f32 %v2889_v51, %v2881_v48 }
 0x382   : > { %v2832_v0 = vadd.f32 %v2831_v41, %v2830_v2  ;;  %v6345_v2 = vld [vmem:[#allocation15_spill] sm:$0xff]  ;;  %v6346_v41 = vld [vmem:[#allocation9_spill] sm:$0xff] }
 0x383   : > { %v2891_v17 = vadd.f32 %v2890_v22, %v2885_v45  ;;  %v2766_v23 = vpop.f32.mrf.mxu2  ;;  %v2785_v19 = vpop.f32.mrf.mxu3 }
 0x384   : > { %v2833_v21 = vrot.slane %v2832_v0, 1  ;;  %v2767_v30 = vadd.f32 %v2766_v23, %v5726_v5 }
 0x385   : > { %v2892_v14 = vrot.slane %v2891_v17, 4 }
 0x386   : > { %v2834_v39 = vadd.f32 %v2833_v21, %v2832_v0  ;;  %v6347_v0 = vld [vmem:[#allocation19_spill] sm:$0xff] }
 0x387   : > { %v2893_v1 = vadd.f32 %v2892_v14, %v2891_v17 }
 0x388   : > { %v2854_v57 = vmul.f32 %v2834_v39, %v6338_v24 }
 0x389   : > { %v2894_v50 = vrot.slane %v2893_v1, 2 }
 0x38a   : > { %v5773_v58 = vsub.f32 %v2794_v6, %v2854_v57  ;;  %v5775_v27 = vsub.f32 %v2798_v35, %v2854_v57  ;;  %v5777_v48 = vsub.f32 %v2802_v20, %v2854_v57  ;;  %v5782_v14 = vsub.f32 %v2806_v4, %v2854_v57 }
 0x38b   : > { %v2895_v61 = vadd.f32 %v2894_v50, %v2893_v1  ;;  %v2769_v6 = vpop.f32.mrf.mxu2  ;;  %v2788_v26 = vpop.f32.mrf.mxu3  ;;  %v2786_v20 = vadd.f32 %v2785_v19, %v5726_v5  ;;  %v2799_v4 = vadd.f32 %v2767_v30, %v6343_v9 }
 0x38c   : > { %v2874_v12 = vmul.f32 %v5773_v58, %v5773_v58  ;;  %v2878_v1 = vmul.f32 %v5775_v27, %v5775_v27  ;;  %v2882_v38 = vmul.f32 %v5777_v48, %v5777_v48  ;;  %v2886_v63 = vmul.f32 %v5782_v14, %v5782_v14 }
 0x38d   : > { %v2896_v31 = vrot.slane %v2895_v61, 1  ;;  %v2770_v59 = vadd.f32 %v2769_v6, %v5729_v11 }
 0x38f   : > { %v2897_v53 = vadd.f32 %v2896_v31, %v2895_v61  ;;  %v2898_v61 = vadd.f32 %v2878_v1, %v2874_v12 }
 0x391   : > { %v2925_v43 = vmul.f32 %v2897_v53, %v6338_v24  ;;  %v2899_v42 = vadd.f32 %v2898_v61, %v2882_v38 }
 0x393   : > { %v2929_v49 = vadd.f32 1e-05, %v2925_v43  ;;  %v2765_v43 = vadd.f32 %v2764_v3, %v5724_v47  ;;  %v2900_v5 = vadd.f32 %v2899_v42, %v2886_v63  ;;  %v2800_v3 = vadd.f32 %v2786_v20, %v6344_v7  ;;  %v2771_v23 = vpop.f32.mrf.mxu2  ;;  %v2790_v19 = vpop.f32.mrf.mxu3 }
 0x394   : > { %v2791_v57 = vadd.f32 %v2790_v19, %v5736_v55 }
 0x395   : > { %3575 = vrsqrt.f32 %v2929_v49  ;;  %vm2939_vm14 = vweird.f32 %v2929_v49  ;;  %v2901_v44 = vrot.slane %v2900_v5, 4 }
 0x397   : > { %v2902_v21 = vadd.f32 %v2901_v44, %v2900_v5 }
 0x399   : > { %v2903_v39 = vrot.slane %v2902_v21, 2 }
 0x39b   : > { %v3576_v13 = vpop.eup %3575 }
 0x39c   : > { %v2934_v60 = vmul.f32 %v3576_v13, %v2929_v49  ;;  %vm2940_vm13 = vweird.f32 %v3576_v13  ;;  %v2789_v49 = vadd.f32 %v2788_v26, %v5729_v11 }
 0x39d   : > { %vm2941_vm0 = vmor %vm2939_vm14, %vm2940_vm13 }
 0x39e   : > { %v2935_v15 = vmul.f32 %v3576_v13, %v2934_v60  ;;  %v2803_v60 = vadd.f32 %v2770_v59, %v6346_v41 }
 0x3a0   : > { %v2936_v56 = vmul.f32 0.5, %v2935_v15  ;;  %v2796_v15 = vadd.f32 %v2784_v40, %v6347_v0 }
 0x3a2   : > { %v2937_v62 = vsub.f32 1.5, %v2936_v56  ;;  %v6348_v56 = vld [vmem:[#allocation17_spill] sm:$0xff]  ;;  %v2844_v11 = vadd.f32 %v2800_v3, %v2796_v15 }
 0x3a3   : > { %v2804_v47 = vadd.f32 %v2789_v49, %v6348_v56 }
 0x3a4   : > { %v2938_v10 = vmul.f32 %v3576_v13, %v2937_v62  ;;  %v2772_v62 = vadd.f32 %v2771_v23, %v5736_v55 }
 0x3a6   : > { %v2942_v16 = vsel %vm2941_vm0, %v3576_v13, %v2938_v10  ;;  %v2795_v13 = vadd.f32 %v2765_v43, %v6345_v2 }
 0x3a7   : > { %v2973_v51 = vmul.f32 %v2942_v16, %v5741_v32  ;;  %v2977_v45 = vmul.f32 %v2942_v16, %v5743_v25  ;;  %v2981_v22 = vmul.f32 %v2942_v16, %v5745_v46  ;;  %v2985_v17 = vmul.f32 %v2942_v16, %v2869_v33  ;;  %v5794_v46 = vpop.permute.xlu1 %3032  ;;  %v5796_v33 = vpop.permute.xlu0 %3042 }
 0x3a8   : > { %v2835_v8 = vadd.f32 %v2799_v4, %v2795_v13  ;;  %v2904_v16 = vadd.f32 %v2903_v39, %v2902_v21 }
 0x3a9   : > { %v3009_v50 = vmul.f32 %v5762_v52, %v2973_v51  ;;  %v3013_v18 = vmul.f32 %v5764_v34, %v2977_v45  ;;  %v3017_v32 = vmul.f32 %v5768_v29, %v2981_v22  ;;  %v3021_v25 = vmul.f32 %v5766_v54, %v2985_v17  ;;  %v6349_v45 = vld [vmem:[#allocation10_spill] sm:$0xff] }
 0x3aa   : > { %v2836_v10 = vadd.f32 %v2835_v8, %v2803_v60  ;;  %v2845_v51 = vadd.f32 %v2844_v11, %v2804_v47  ;;  %v2807_v22 = vadd.f32 %v2772_v62, %v6349_v45  ;;  %v6350_v17 = vld [vmem:[#allocation18_spill] sm:$0xff]  ;;  %v2905_v1 = vrot.slane %v2904_v16, 1 }
 0x3ab   : > { %v3045_v35 = vadd.f32 %v5770_v28, %v3009_v50  ;;  %v3049_v31 = vadd.f32 %v5794_v46, %v3013_v18  ;;  %v3053_v37 = vadd.f32 %v5788_v36, %v3017_v32  ;;  %v3057_v53 = vadd.f32 %v5796_v33, %v3021_v25 }
 0x3ac   : > { %v2808_v12 = vadd.f32 %v2791_v57, %v6350_v17  ;;  %v2837_v50 = vadd.f32 %v2836_v10, %v2807_v22  ;;  %v2906_v32 = vadd.f32 %v2905_v1, %v2904_v16 }
 0x3ad   : > { %3061 = vst [vmem:[%s5810_s26] sm:$0xff] %v3045_v35 }
 0x3ae   : > { %3065 = vst [vmem:[%s5810_s26 + $0x20] sm:$0xff] %v3049_v31  ;;  %v2846_v18 = vadd.f32 %v2845_v51, %v2808_v12  ;;  %v2838_v25 = vrot.slane %v2837_v50, 4  ;;  %v2926_v61 = vmul.f32 %v2906_v32, %v6338_v24 }
 0x3af   : > { %3069 = vst [vmem:[%s5810_s26 + $0x40] sm:$0xff] %v3053_v37 }
 0x3b0   : > { %3073 = vst [vmem:[%s5810_s26 + $0x60] sm:$0xff] %v3057_v53  ;;  %v2847_v38 = vrot.slane %v2846_v18, 4  ;;  %v2839_v30 = vadd.f32 %v2838_v25, %v2837_v50  ;;  %v2930_v31 = vadd.f32 1e-05, %v2926_v61 }
 0x3b2   : > { %v2848_v35 = vadd.f32 %v2847_v38, %v2846_v18  ;;  %v2840_v37 = vrot.slane %v2839_v30, 2  ;;  %3577 = vrsqrt.f32 %v2930_v31  ;;  %vm2949_vm1 = vweird.f32 %v2930_v31 }
 0x3b4   : > { %v2849_v55 = vrot.slane %v2848_v35, 2  ;;  %v2841_v6 = vadd.f32 %v2840_v37, %v2839_v30 }
 0x3b6   : > { %v2850_v26 = vadd.f32 %v2849_v55, %v2848_v35  ;;  %v2842_v20 = vrot.slane %v2841_v6, 1 }
 0x3b8   : > { %v2851_v53 = vrot.slane %v2850_v26, 1  ;;  %v2843_v63 = vadd.f32 %v2842_v20, %v2841_v6  ;;  %v3578_v43 = vpop.eup %3577 }
 0x3b9   : > { %v2944_v5 = vmul.f32 %v3578_v43, %v2930_v31  ;;  %vm2950_vm15 = vweird.f32 %v3578_v43 }
 0x3ba   : > { %v2852_v42 = vadd.f32 %v2851_v53, %v2850_v26  ;;  %v2855_v59 = vmul.f32 %v2843_v63, %v6338_v24  ;;  %vm2951_vm2 = vmor %vm2949_vm1, %vm2950_vm15 }
 0x3bb   : > { %v2945_v44 = vmul.f32 %v3578_v43, %v2944_v5 }
 0x3bc   : > { %v2856_v40 = vmul.f32 %v2852_v42, %v6338_v24  ;;  %v5832_v49 = vsub.f32 %v2795_v13, %v2855_v59  ;;  %v5834_v9 = vsub.f32 %v2799_v4, %v2855_v59  ;;  %v5836_v7 = vsub.f32 %v2803_v60, %v2855_v59 }
 0x3bd   : > { %v5844_v21 = vsub.f32 %v2807_v22, %v2855_v59  ;;  %v2946_v8 = vmul.f32 0.5, %v2945_v44 }
 0x3be   : > { %v5838_v2 = vsub.f32 %v2796_v15, %v2856_v40  ;;  %v5840_v41 = vsub.f32 %v2800_v3, %v2856_v40  ;;  %v5842_v0 = vsub.f32 %v2804_v47, %v2856_v40  ;;  %v2875_v56 = vmul.f32 %v5832_v49, %v5832_v49 }
 0x3bf   : > { %v2879_v13 = vmul.f32 %v5834_v9, %v5834_v9  ;;  %v5850_v4 = vsub.f32 %v2808_v12, %v2856_v40  ;;  %v2883_v15 = vmul.f32 %v5836_v7, %v5836_v7  ;;  %v2947_v23 = vsub.f32 1.5, %v2946_v8 }
 0x3c0   : > { %v2876_v60 = vmul.f32 %v5838_v2, %v5838_v2  ;;  %v2880_v3 = vmul.f32 %v5840_v41, %v5840_v41  ;;  %v2884_v19 = vmul.f32 %v5842_v0, %v5842_v0  ;;  %v2887_v39 = vmul.f32 %v5844_v21, %v5844_v21 }
 0x3c1   : > { %v2907_v47 = vadd.f32 %v2879_v13, %v2875_v56  ;;  %v2948_v57 = vmul.f32 %v3578_v43, %v2947_v23  ;;  %v2888_v10 = vmul.f32 %v5850_v4, %v5850_v4 }
 0x3c2   : > { %v2916_v11 = vadd.f32 %v2880_v3, %v2876_v60 }
 0x3c3   : > { %v2908_v62 = vadd.f32 %v2907_v47, %v2883_v15  ;;  %v2952_v45 = vsel %vm2951_vm2, %v3578_v43, %v2948_v57 }
 0x3c4   : > { %v2917_v16 = vadd.f32 %v2916_v11, %v2884_v19  ;;  %v2974_v17 = vmul.f32 %v2952_v45, %v5773_v58  ;;  %v2978_v12 = vmul.f32 %v2952_v45, %v5775_v27  ;;  %v2982_v1 = vmul.f32 %v2952_v45, %v5777_v48 }
 0x3c5   : > { %v2909_v51 = vadd.f32 %v2908_v62, %v2887_v39  ;;  %v2986_v50 = vmul.f32 %v2952_v45, %v5782_v14 }
 0x3c6   : > { %v2918_v22 = vadd.f32 %v2917_v16, %v2888_v10  ;;  %v3010_v25 = vmul.f32 %v5762_v52, %v2974_v17  ;;  %v3014_v38 = vmul.f32 %v5764_v34, %v2978_v12  ;;  %v3018_v61 = vmul.f32 %v5768_v29, %v2982_v1 }
 0x3c7   : > { %v2910_v18 = vrot.slane %v2909_v51, 4  ;;  %v3022_v58 = vmul.f32 %v5766_v54, %v2986_v50 }
 0x3c8   : > { %v2919_v32 = vrot.slane %v2918_v22, 4  ;;  %v3046_v48 = vadd.f32 %v5770_v28, %v3010_v25  ;;  %v3050_v35 = vadd.f32 %v5794_v46, %v3014_v38  ;;  %v3054_v14 = vadd.f32 %v5788_v36, %v3018_v61 }
 0x3c9   : > { %v2911_v30 = vadd.f32 %v2910_v18, %v2909_v51  ;;  %v3058_v31 = vadd.f32 %v5796_v33, %v3022_v58 }
 0x3ca   : > { %v2920_v27 = vadd.f32 %v2919_v32, %v2918_v22  ;;  %3062 = vst [vmem:[%s5810_s26 + $0x8] sm:$0xff] %v3046_v48 }
 0x3cb   : > { %v2912_v37 = vrot.slane %v2911_v30, 2  ;;  %3066 = vst [vmem:[%s5810_s26 + $0x28] sm:$0xff] %v3050_v35 }
 0x3cc   : > { %v2921_v55 = vrot.slane %v2920_v27, 2  ;;  %3070 = vst [vmem:[%s5810_s26 + $0x48] sm:$0xff] %v3054_v14  ;;  %v3125_v14 = vld [vmem:[%s5810_s26 + $0x60] sm:$0xff] (%p3765_p6) }
 0x3cd   : > { %v2913_v6 = vadd.f32 %v2912_v37, %v2911_v30  ;;  %3074 = vst [vmem:[%s5810_s26 + $0x68] sm:$0xff] %v3058_v31  ;;  %v3117_v30 = vld [vmem:[%s5810_s26 + $0x40] sm:$0xff] (%p3765_p6) }
 0x3ce   : > { %v2922_v26 = vadd.f32 %v2921_v55, %v2920_v27  ;;  %3118 = vst [vmem:[%s3088_s12 + $0x80] sm:$0xff] (%p3765_p6), %v3117_v30 }
 0x3cf   : > { %v2914_v20 = vrot.slane %v2913_v6, 1  ;;  %3126 = vst [vmem:[%s3088_s12 + $0xc0] sm:$0xff] (%p3765_p6), %v3125_v14 }
 0x3d0   : > { %v2923_v53 = vrot.slane %v2922_v26, 1 }
 0x3d1   : > { %v2915_v63 = vadd.f32 %v2914_v20, %v2913_v6 }
 0x3d2   : > { %v2924_v42 = vadd.f32 %v2923_v53, %v2922_v26 }
 0x3d3   : > { %v2927_v43 = vmul.f32 %v2915_v63, %v6338_v24  ;;  %v3119_v27 = vld [vmem:[%s5810_s26 + $0x48] sm:$0xff] (%p3765_p6) }
 0x3d4   : > { %v2928_v59 = vmul.f32 %v2924_v42, %v6338_v24  ;;  %3120 = vst [vmem:[%s3088_s12 + $0x88] sm:$0xff] (%p3765_p6), %v3119_v27  ;;  %v3127_v31 = vld [vmem:[%s5810_s26 + $0x68] sm:$0xff] (%p3765_p6) }
 0x3d5   : > { %v2931_v40 = vadd.f32 1e-05, %v2927_v43  ;;  %3128 = vst [vmem:[%s3088_s12 + $0xc8] sm:$0xff] (%p3765_p6), %v3127_v31 }
 0x3d6   : > { %v2932_v5 = vadd.f32 1e-05, %v2928_v59 }
 0x3d7   : > { %3579 = vrsqrt.f32 %v2931_v40  ;;  %vm2959_vm4 = vweird.f32 %v2931_v40 }
 0x3d8   : > { %3581 = vrsqrt.f32 %v2932_v5  ;;  %vm2969_vm6 = vweird.f32 %v2932_v5 }
 0x3dd   : > { %v3580_v44 = vpop.eup %3579 }
 0x3de   : > { %v3582_v56 = vpop.eup %3581  ;;  %v2954_v13 = vmul.f32 %v3580_v44, %v2931_v40  ;;  %vm2960_vm3 = vweird.f32 %v3580_v44 }
 0x3df   : > { %v2964_v8 = vmul.f32 %v3582_v56, %v2932_v5  ;;  %vm2970_vm8 = vweird.f32 %v3582_v56  ;;  %vm2961_vm5 = vmor %vm2959_vm4, %vm2960_vm3 }
 0x3e0   : > { %v2955_v60 = vmul.f32 %v3580_v44, %v2954_v13  ;;  %vm2971_vm7 = vmor %vm2969_vm6, %vm2970_vm8 }
 0x3e1   : > { %v2965_v3 = vmul.f32 %v3582_v56, %v2964_v8 }
 0x3e2   : > { %v2956_v15 = vmul.f32 0.5, %v2955_v60 }
 0x3e3   : > { %v2966_v47 = vmul.f32 0.5, %v2965_v3 }
 0x3e4   : > { %v2957_v23 = vsub.f32 1.5, %v2956_v15 }
 0x3e5   : > { %v2967_v19 = vsub.f32 1.5, %v2966_v47 }
 0x3e6   : > { %v2958_v11 = vmul.f32 %v3580_v44, %v2957_v23 }
 0x3e7   : > { %v2968_v24 = vmul.f32 %v3582_v56, %v2967_v19 }
 0x3e8   : > { %v2962_v39 = vsel %vm2961_vm5, %v3580_v44, %v2958_v11 }
 0x3e9   : > { %v2975_v62 = vmul.f32 %v2962_v39, %v5832_v49  ;;  %v2979_v57 = vmul.f32 %v2962_v39, %v5834_v9  ;;  %v2983_v10 = vmul.f32 %v2962_v39, %v5836_v7  ;;  %v2987_v16 = vmul.f32 %v2962_v39, %v5844_v21 }
 0x3ea   : > { %v2972_v51 = vsel %vm2971_vm7, %v3582_v56, %v2968_v24 }
 0x3eb   : > { %v3011_v45 = vmul.f32 %v5762_v52, %v2975_v62  ;;  %v3015_v22 = vmul.f32 %v5764_v34, %v2979_v57  ;;  %v3019_v17 = vmul.f32 %v5768_v29, %v2983_v10  ;;  %v3023_v12 = vmul.f32 %v5766_v54, %v2987_v16 }
 0x3ec   : > { %v2976_v49 = vmul.f32 %v2972_v51, %v5838_v2  ;;  %v2980_v9 = vmul.f32 %v2972_v51, %v5840_v41  ;;  %v2984_v7 = vmul.f32 %v2972_v51, %v5842_v0  ;;  %v2988_v21 = vmul.f32 %v2972_v51, %v5850_v4 }
 0x3ed   : > { %v3047_v1 = vadd.f32 %v5770_v28, %v3011_v45  ;;  %v3051_v50 = vadd.f32 %v5794_v46, %v3015_v22  ;;  %v3055_v18 = vadd.f32 %v5788_v36, %v3019_v17  ;;  %v3059_v32 = vadd.f32 %v5796_v33, %v3023_v12 }
 0x3ee   : > { %v3012_v2 = vmul.f32 %v5762_v52, %v2976_v49  ;;  %v3016_v41 = vmul.f32 %v5764_v34, %v2980_v9  ;;  %v3020_v0 = vmul.f32 %v5768_v29, %v2984_v7  ;;  %v3024_v4 = vmul.f32 %v5766_v54, %v2988_v21  ;;  %v3101_v52 = vld [vmem:[%s5810_s26] sm:$0xff] (%p3765_p6)  ;;  %v3103_v34 = vld [vmem:[%s5810_s26 + $0x8] sm:$0xff] (%p3765_p6) }
 0x3ef   : > { %3063 = vst [vmem:[%s5810_s26 + $0x10] sm:$0xff] %v3047_v1 }
 0x3f0   : > { %3067 = vst [vmem:[%s5810_s26 + $0x30] sm:$0xff] %v3051_v50  ;;  %v3048_v25 = vadd.f32 %v5770_v28, %v3012_v2  ;;  %v3052_v38 = vadd.f32 %v5794_v46, %v3016_v41  ;;  %v3056_v61 = vadd.f32 %v5788_v36, %v3020_v0  ;;  %v3060_v58 = vadd.f32 %v5796_v33, %v3024_v4  ;;  %v3109_v28 = vld [vmem:[%s5810_s26 + $0x20] sm:$0xff] (%p3765_p6)  ;;  %v3111_v36 = vld [vmem:[%s5810_s26 + $0x28] sm:$0xff] (%p3765_p6) }
 0x3f1   : > { %3071 = vst [vmem:[%s5810_s26 + $0x50] sm:$0xff] %v3055_v18 }
 0x3f2   : > { %3075 = vst [vmem:[%s5810_s26 + $0x70] sm:$0xff] %v3059_v32  ;;  %3083 = sbr.rel (!%p3765_p6) target bundleno = 1027 (0x403), region = 114 }
 0x3f3   : > { %3064 = vst [vmem:[%s5810_s26 + $0x18] sm:$0xff] %v3048_v25 }
 0x3f4   : > { %3068 = vst [vmem:[%s5810_s26 + $0x38] sm:$0xff] %v3052_v38 }
 0x3f5   : > { %3072 = vst [vmem:[%s5810_s26 + $0x58] sm:$0xff] %v3056_v61 }
 0x3f6   : > { %3076 = vst [vmem:[%s5810_s26 + $0x78] sm:$0xff] %v3060_v58  ;;  %v3105_v54 = vld [vmem:[%s5810_s26 + $0x10] sm:$0xff] (%p3765_p6) }
 0x3f7   : > { %3102 = vst [vmem:[%s3088_s12] sm:$0xff] %v3101_v52  ;;  %v3113_v46 = vld [vmem:[%s5810_s26 + $0x30] sm:$0xff] }
 0x3f8   : > { %3104 = vst [vmem:[%s3088_s12 + $0x8] sm:$0xff] %v3103_v34  ;;  %v3121_v48 = vld [vmem:[%s5810_s26 + $0x50] sm:$0xff] }
 0x3f9   : > { %3106 = vst [vmem:[%s3088_s12 + $0x10] sm:$0xff] %v3105_v54  ;;  %v3129_v37 = vld [vmem:[%s5810_s26 + $0x70] sm:$0xff] }
 0x3fa   : > { %v3107_v29 = vld [vmem:[%s5810_s26 + $0x18] sm:$0xff]  ;;  %3110 = vst [vmem:[%s3088_s12 + $0x40] sm:$0xff] %v3109_v28 }
 0x3fb   : > { %3108 = vst [vmem:[%s3088_s12 + $0x18] sm:$0xff] %v3107_v29  ;;  %v3115_v33 = vld [vmem:[%s5810_s26 + $0x38] sm:$0xff] }
 0x3fc   : > { %3112 = vst [vmem:[%s3088_s12 + $0x48] sm:$0xff] %v3111_v36  ;;  %v3123_v35 = vld [vmem:[%s5810_s26 + $0x58] sm:$0xff] }
 0x3fd   : > { %3114 = vst [vmem:[%s3088_s12 + $0x50] sm:$0xff] %v3113_v46  ;;  %v3131_v55 = vld [vmem:[%s5810_s26 + $0x78] sm:$0xff] }
 0x3fe   : > { %3116 = vst [vmem:[%s3088_s12 + $0x58] sm:$0xff] %v3115_v33 }
 0x3ff   : > { %3122 = vst [vmem:[%s3088_s12 + $0x90] sm:$0xff] %v3121_v48 }
 0x400   : > { %3124 = vst [vmem:[%s3088_s12 + $0x98] sm:$0xff] %v3123_v35 }
 0x401   : > { %3130 = vst [vmem:[%s3088_s12 + $0xd0] sm:$0xff] %v3129_v37 }
 0x402   : > { %3132 = vst [vmem:[%s3088_s12 + $0xd8] sm:$0xff] %v3131_v55 }
 0x403 PF: > { %s21_s23 = sadd.s32 1, %s3649_s23   ;;  %s6352_s16 = sld [smem:[#allocation5_spill]] }
 0x404   : > { %p18_p0 = scmp.ge.s32.totalorder %s21_s23, 6   ;;  %s6353_s28 = sld [smem:[#allocation6_spill]] }
 0x405   : > { %s6354_s17 = smov %s3629_s18  ;;  %s6355_s18 = smov %s3773_s14 }
 0x406   : > { %s6356_s19 = smov %s3641_s21  ;;  %s6357_s20 = smov %s3645_s22 }
 0x407   :  { %20 = sbr.rel (!%p18_p0) target bundleno = 6 (0x6), region = 182 }
 0x409   : > { %s6358_s21 = smov %s6352_s16 }
 0x40a   : > { %s6359_s22 = smov %s6353_s28 }

</bundles_post_ra>
